<compile_context>
chip_gen: v5e
topology: v5e:2x2
jax: 0.10.0
libtpu: 0.0.40
codegen_flags: <defaults>
</compile_context>

<pallas_src>
import jax
import jax.numpy as jnp
from jax.experimental import pallas as pl
from jax.experimental.pallas import tpu as pltpu

ENC_C, ENC_H, ENC_W = 2048, 7, 7   # self.enc_feature_shape for 'resnet50'
OUTPUTS = 16                       # default `outputs`

_LANE = 128


def head_kernel(x_ref, w_ref, b_ref, o_ref):
    """Grid = (batch blocks, K blocks); K = C*H*W, lane-dense.

    x_ref: (TB, TK)  bf16/f32 encoder features (flattened NCHW, contiguous)
    w_ref: (TK, O)   bf16 fused pooling+fc weight  (W'[c*HW+s, o] = W[o,c]/HW)
    b_ref: (1, O)    f32 fc bias
    o_ref: (TB, O)   f32 log-probabilities; doubles as the f32 accumulator
                     across the inner ("arbitrary") K axis.
    """
    kk = pl.program_id(1)

    @pl.when(kk == 0)
    def _init():
        o_ref[...] = jnp.zeros_like(o_ref)

    # AdaptiveAvgPool2d(1) + Flatten + Linear fused into one MXU matmul:
    # bf16 inputs, f32 accumulation.  No VPU cast, no XLU spatial reduce.
    o_ref[...] += jnp.dot(x_ref[...], w_ref[...],
                          preferred_element_type=jnp.float32)

    @pl.when(kk == pl.num_programs(1) - 1)
    def _finalize():
        logits = o_ref[...] + b_ref[...]
        m = jnp.max(logits, axis=-1, keepdims=True)
        shifted = logits - m
        lse = jnp.log(jnp.sum(jnp.exp(shifted), axis=-1, keepdims=True))
        o_ref[...] = shifted - lse


def _pick_tiles(k, hw, o, feat_itemsize, w_itemsize):
    """Choose (nk, tb_cap, vmem_cap) from the generation's VMEM capacity."""
    try:
        vmem_cap = int(pltpu.get_tpu_info().vmem_capacity_bytes)
    except Exception:
        vmem_cap = 64 << 20                      # conservative (v7x-sized)
    budget = max(vmem_cap - (8 << 20), 8 << 20)  # headroom: internal scratch
    o_pad = pl.cdiv(o, _LANE) * _LANE            # VMEM lane padding of O axis

    # K split: nk == 1 keeps the fused weight fully resident (constant
    # index_map -> fetched from HBM once).  On small-VMEM parts, split K so
    # the double-buffered weight block uses at most half the budget and
    # accumulate in f32 across the "arbitrary" grid axis instead.
    nk = hw
    for d in [d for d in range(1, hw + 1) if hw % d == 0]:
        tk = k // d
        if tk != k and tk % _LANE != 0:
            continue
        if 2 * tk * o_pad * w_itemsize <= budget // 2:
            nk = d
            break
    tk = k // nk

    w_buf = 2 * tk * o_pad * w_itemsize
    per_row = 2 * (tk * feat_itemsize + o_pad * 4)   # dbl-buffered feat + out
    tb_cap = max(8, min(128, (budget - w_buf) // per_row))
    return nk, tb_cap, vmem_cap


def convnet_head(feats_nchw, w_fc, b_fc, *, batch_tile=None, k_split=None):
    """feats_nchw: (N, C, H, W) encoder features (bf16 preferred, f32 ok).
    w_fc: (O, C) torch-layout fc weight.  b_fc: (O,) bias.
    Returns (N, O) f32 log-probabilities, matching ConvNet.forward after enc.
    """
    n, c, h, w = feats_nchw.shape
    hw = h * w
    k = c * hw
    o = w_fc.shape[0]

    # NCHW -> (N, C*HW): metadata-only reshape (contiguous), lane-dense
    # (C*HW is a multiple of 128), so the feature tile has no lane padding
    # and every per-step DMA row is long & contiguous.
    x = feats_nchw.reshape(n, k)

    # Fused pooling + fc weight: W'[c*HW + s, o] = W[o, c] / HW, so
    #   x_flat @ W' + b  ==  fc(mean_{h,w}(feats)) + b.
    # Stored in the feature dtype (bf16 on the hot path): halves the HBM read
    # and the resident VMEM footprint vs f32 (tolerance re-validated below).
    w_fused = jnp.repeat(w_fc.T.astype(jnp.float32) / hw, hw,
                         axis=0).astype(x.dtype)                  # (K, O)
    b = b_fc.reshape(1, o).astype(jnp.float32)                    # (1, O)

    fi = x.dtype.itemsize
    wi = w_fused.dtype.itemsize
    nk, tb_cap, vmem_cap = _pick_tiles(k, hw, o, fi, wi)
    if k_split is not None:
        nk = k_split
    if batch_tile is not None:
        tb_cap = batch_tile
    tk = k // nk

    # Batch tile: big enough to amortize the ~0.35 us/step pipeline overhead,
    # small enough for double-buffered tiles to fit the per-gen VMEM budget.
    # Second-minor block dims must be multiples of 8 unless they span the
    # full axis, so for ragged batches keep tb % 8 == 0 and let Pallas
    # boundary-mask the last tile (garbage rows are never written back).
    tb = min(tb_cap, n)
    if tb < n:
        tb = max(8, (tb // 8) * 8)

    grid = (pl.cdiv(n, tb), nk)

    o_pad = pl.cdiv(o, _LANE) * _LANE
    need = 2 * tk * o_pad * wi + 2 * tb * tk * fi + 2 * tb * o_pad * 4
    vmem_limit = int(min(need + (6 << 20), vmem_cap - (2 << 20)))

    cost = pl.CostEstimate(
        flops=2 * n * k * o,
        transcendentals=n * o,
        bytes_accessed=(n * k * fi
                        + (grid[0] if nk > 1 else 1) * k * o * wi
                        + n * o * 4 + o * 4),
    )

    out = pl.pallas_call(
        head_kernel,
        out_shape=jax.ShapeDtypeStruct((n, o), jnp.float32),
        grid_spec=pltpu.PrefetchScalarGridSpec(
            num_scalar_prefetch=0,
            grid=grid,
            in_specs=[
                pl.BlockSpec((tb, tk), lambda i, kk: (i, kk)),   # features
                pl.BlockSpec((tk, o), lambda i, kk: (kk, 0)),    # fused weight
                pl.BlockSpec((1, o), lambda i, kk: (0, 0)),      # bias
            ],
            out_specs=pl.BlockSpec((tb, o), lambda i, kk: (i, 0)),
        ),
        compiler_params=pltpu.CompilerParams(
            dimension_semantics=("parallel", "arbitrary"),
            vmem_limit_bytes=vmem_limit),
        cost_estimate=cost,
    )(x, w_fused, b)
    return out


def reference_head(feats_nchw, w_fc, b_fc):
    pooled = jnp.mean(feats_nchw.astype(jnp.float32), axis=(2, 3))
    logits = jnp.matmul(pooled, w_fc.astype(jnp.float32).T,
                        precision=jax.lax.Precision.HIGHEST) + b_fc
    return jax.nn.log_softmax(logits, axis=1)


if __name__ == "__main__":
    key = jax.random.PRNGKey(0)
    k_feat, k_w, k_b = jax.random.split(key, 3)

    # Deterministic nn.Linear(2048, 16)-style init: U(-1/sqrt(fan_in), ...).
    bound = 1.0 / (ENC_C ** 0.5)
    w_fc = jax.random.uniform(k_w, (OUTPUTS, ENC_C), jnp.float32, -bound, bound)
    b_fc = jax.random.uniform(k_b, (OUTPUTS,), jnp.float32, -bound, bound)

    cases = [
        dict(batch=2),                            # tiny batch, auto tiles
        dict(batch=9),                            # auto tiles (tb == n)
        dict(batch=9, batch_tile=8, k_split=7),   # ragged last tile + K accum
    ]
    for case in cases:
        batch = case["batch"]
        # Synthetic encoder output (stand-in for ResNet50Encoder(x)), emitted
        # in bf16 as the real encoder would be for this bandwidth-bound head.
        feats = jax.random.normal(
            jax.random.fold_in(k_feat, batch),
            (batch, ENC_C, ENC_H, ENC_W), dtype=jnp.float32
        ).astype(jnp.bfloat16)

        out = jax.block_until_ready(
            convnet_head(feats, w_fc, b_fc,
                         batch_tile=case.get("batch_tile"),
                         k_split=case.get("k_split")))
        ref = reference_head(feats, w_fc, b_fc)
        assert out.shape == (batch, OUTPUTS)
        assert jnp.allclose(out, ref, atol=1e-3, rtol=1e-3), (
            f"Pallas head mismatch vs reference (case={case})")

    print("KERNEL_OK")
</pallas_src>

<mosaic_0001>
module attributes {stable_mosaic.version = 11 : i64} {
  func.func @head_kernel(%arg0: i32, %arg1: i32, %arg2: memref<2x14336xbf16, #tpu.memory_space<vmem>>, %arg3: memref<14336x16xbf16, #tpu.memory_space<vmem>>, %arg4: memref<1x16xf32, #tpu.memory_space<vmem>>, %arg5: memref<2x16xf32, #tpu.memory_space<vmem>>) attributes {dimension_semantics = [#tpu.dimension_semantics<parallel>, #tpu.dimension_semantics<arbitrary>], iteration_bounds = array<i64: 1, 7>, scalar_prefetch = 0 : i64, scratch_operands = 0 : i64, tpu.core_type = #tpu.core_type<tc>, window_params = [{transform_indices = @transform_0, window_bounds = array<i64: 2, 14336>}, {transform_indices = @transform_1, window_bounds = array<i64: 14336, 16>}, {pipeline_mode = #tpu.pipeline_mode<synchronous>, transform_indices = @transform_2, window_bounds = array<i64: 1, 16>}, {transform_indices = @transform_3, window_bounds = array<i64: 2, 16>}]} {
    %c0_i32 = arith.constant 0 : i32
    %0 = arith.cmpi eq, %arg1, %c0_i32 : i32
    %1 = arith.extui %0 : i1 to i32
    %c0_i32_0 = arith.constant 0 : i32
    %2 = arith.cmpi ne, %1, %c0_i32_0 : i32
    scf.if %2 {
      %cst_9 = arith.constant 0.000000e+00 : f32
      %12 = vector.broadcast %cst_9 : f32 to vector<2x16xf32>
      %c0_10 = arith.constant 0 : index
      %c0_11 = arith.constant 0 : index
      %13 = vector.load %arg5[%c0_10, %c0_11] : memref<2x16xf32, #tpu.memory_space<vmem>>, vector<2x16xf32>
      tpu.vector_store %arg5[%c0_10, %c0_11], %12 {strides = array<i32>} : memref<2x16xf32, #tpu.memory_space<vmem>>, vector<2x16xf32>,
    } else {
    }
    %c0 = arith.constant 0 : index
    %c0_1 = arith.constant 0 : index
    %3 = vector.load %arg5[%c0, %c0_1] : memref<2x16xf32, #tpu.memory_space<vmem>>, vector<2x16xf32>
    %c0_2 = arith.constant 0 : index
    %c0_3 = arith.constant 0 : index
    %4 = vector.load %arg2[%c0_2, %c0_3] : memref<2x14336xbf16, #tpu.memory_space<vmem>>, vector<2x14336xbf16>
    %c0_4 = arith.constant 0 : index
    %c0_5 = arith.constant 0 : index
    %5 = vector.load %arg3[%c0_4, %c0_5] : memref<14336x16xbf16, #tpu.memory_space<vmem>>, vector<14336x16xbf16>
    %cst = arith.constant dense<0.000000e+00> : vector<2x16xf32>
    %6 = tpu.matmul %4, %5, %cst {dimension_numbers = #tpu.dot_dimension_numbers<[1], [0], [0], [1], [0, 0, 1, 1], [], []>} : vector<2x14336xbf16>, vector<14336x16xbf16>, vector<2x16xf32> -> vector<2x16xf32>
    %7 = arith.addf %3, %6 : vector<2x16xf32>
    %c0_6 = arith.constant 0 : index
    %c0_7 = arith.constant 0 : index
    %8 = vector.load %arg5[%c0_6, %c0_7] : memref<2x16xf32, #tpu.memory_space<vmem>>, vector<2x16xf32>
    tpu.vector_store %arg5[%c0_6, %c0_7], %7 {strides = array<i32>} : memref<2x16xf32, #tpu.memory_space<vmem>>, vector<2x16xf32>,
    %c6_i32 = arith.constant 6 : i32
    %9 = arith.cmpi eq, %arg1, %c6_i32 : i32
    %10 = arith.extui %9 : i1 to i32
    %c0_i32_8 = arith.constant 0 : i32
    %11 = arith.cmpi ne, %10, %c0_i32_8 : i32
    scf.if %11 {
      %c0_9 = arith.constant 0 : index
      %c0_10 = arith.constant 0 : index
      %12 = vector.load %arg5[%c0_9, %c0_10] : memref<2x16xf32, #tpu.memory_space<vmem>>, vector<2x16xf32>
      %c0_11 = arith.constant 0 : index
      %c0_12 = arith.constant 0 : index
      %13 = vector.load %arg4[%c0_11, %c0_12] : memref<1x16xf32, #tpu.memory_space<vmem>>, vector<1x16xf32>
      %14 = vector.broadcast %13 : vector<1x16xf32> to vector<2x16xf32>
      %15 = arith.addf %12, %14 : vector<2x16xf32>
      %cst_13 = arith.constant dense<0xFF800000> : vector<2xf32>
      %16 = vector.multi_reduction <maximumf>, %15, %cst_13 [1] : vector<2x16xf32> to vector<2xf32>
      %17 = vector.shape_cast %16 : vector<2xf32> to vector<2x1xf32>
      %18 = vector.broadcast %17 : vector<2x1xf32> to vector<2x16xf32>
      %19 = arith.subf %15, %18 : vector<2x16xf32>
      %20 = math.exp %19 : vector<2x16xf32>
      %cst_14 = arith.constant dense<0.000000e+00> : vector<2xf32>
      %21 = vector.multi_reduction <add>, %20, %cst_14 [1] : vector<2x16xf32> to vector<2xf32>
      %22 = vector.shape_cast %21 : vector<2xf32> to vector<2x1xf32>
      %23 = math.log %22 : vector<2x1xf32>
      %24 = vector.broadcast %23 : vector<2x1xf32> to vector<2x16xf32>
      %25 = arith.subf %19, %24 : vector<2x16xf32>
      %c0_15 = arith.constant 0 : index
      %c0_16 = arith.constant 0 : index
      %26 = vector.load %arg5[%c0_15, %c0_16] : memref<2x16xf32, #tpu.memory_space<vmem>>, vector<2x16xf32>
      tpu.vector_store %arg5[%c0_15, %c0_16], %25 {strides = array<i32>} : memref<2x16xf32, #tpu.memory_space<vmem>>, vector<2x16xf32>,
    } else {
    }
    return
  }
  func.func @transform_0(%arg0: i32, %arg1: i32) -> (i32, i32) {
    %c0_i32 = arith.constant 0 : i32
    return %arg0, %arg1 : i32, i32
  }
  func.func @transform_1(%arg0: i32, %arg1: i32) -> (i32, i32) {
    %c0_i32 = arith.constant 0 : i32
    %c0_i32_0 = arith.constant 0 : i32
    return %arg1, %c0_i32 : i32, i32
  }
  func.func @transform_2(%arg0: i32, %arg1: i32) -> (i32, i32) {
    %c0_i32 = arith.constant 0 : i32
    %c0_i32_0 = arith.constant 0 : i32
    %c0_i32_1 = arith.constant 0 : i32
    return %c0_i32, %c0_i32_0 : i32, i32
  }
  func.func @transform_3(%arg0: i32, %arg1: i32) -> (i32, i32) {
    %c0_i32 = arith.constant 0 : i32
    %c0_i32_0 = arith.constant 0 : i32
    return %arg0, %c0_i32 : i32, i32
  }
}

</mosaic_0001>

<bundles_post_ra>
// kernel: tpu_custom_call.1
= control target key start
LH: loop header
LB: loop body
LE: loop exit
PB: predicated region body
PF: predicated region fallthrough
CT: control target
= control target key end

     0   :  { %8 = vsyncpa [#allocation3], 0  ;;  %s13814_s12 = smov 0   ;;  %s13816_s13 = smov 0   ;;  %s14813_s0 = inlined_call_operand.vmem [shape: bf16[2,100352], index: 0, kind: input, shape index: {}]   ;;  %s14814_s1 = inlined_call_operand.vmem [shape: bf16[100352,16], index: 1, kind: input, shape index: {}]   ;;  %s14815_s2 = inlined_call_operand.vmem [shape: f32[1,16], index: 2, kind: input, shape index: {}]   ;;  %s14816_s3 = inlined_call_operand.hbm [shape: f32[2,16], index: 3, kind: output, shape index: {}]  }
   0x1   :  { %s13818_s14 = smov 0  }
   0x2 LB: > { %s9208_s15 = sadd.s32 4294967295, %s13790_s14   ;;  %s23_s16 = sadd.s32 1, %s13786_s13  ;;  %s13790_s14 = sphi %s13818_s14, %s14_s14   ;;  %s13786_s13 = sphi %s13816_s13, %s14818_s13   ;;  %s13782_s12 = sphi %s13814_s12, %s14817_s12  }
   0x3   : > { %p24_p0 = scmp.ge.s32.totalorder %s23_s16, 7  ;;  %p9211_p1 = scmp.ge.s32.totalorder %s13790_s14, 1 }
   0x4   : > { %p167_p2 = scmp.lt.s32.totalorder %s13790_s14, 8 }
   0x5   : > { %s14820_s16 = smov (%p24_p0, %s23_s16), 0 }
   0x6   : > { %p168_p3 = pnand %p9211_p1, %p167_p2 }
   0x7   : > { %s194_s17 = smul.u32 (!%p168_p3), 112, %s13782_s12  ;;  %p9213_p6 = scmp.ne.s32.totalorder (!%p168_p3), %s13782_s12, 0 }
   0x8   : > { %171 = sbr.rel (%p168_p3) target bundleno = 1331 (0x533), region = 32 }
   0x9   : > { %s203_s18 = smul.u32 (!%p168_p3), 1792, %s13782_s12  ;;  %p197_p4 = scmp.lt.s32.totalorder (!%p168_p3), %s194_s17, 783 }
   0xb   : > { %p204_p5 = scmp.lt.s32.totalorder (!%p168_p3), %s203_s18, 12543 }
   0xd   : > { %s14822_s17 = smov (!%p197_p4, %s194_s17), 783  ;;  %s14824_s18 = smov (!%p204_p5, %s203_s18), 12543 }
   0xe   : > { %s13840_s21 = scalar_lea.vmem %s14813_s0, %s14822_s17  ;;  %s9212_s22 = sshll.u32 %s14824_s18, 2 }
   0xf   : > { %s13845_s25 = scalar_lea.vmem %s14814_s1, %s9212_s22  ;;  %212 = sbr.rel (%p9213_p6) target bundleno = 22 (0x16), region = 36 }
  0x14   : > { %vm213_vm0 = vcmask 123904   ;;  %v13792_v0 = vmov 0.0  }
  0x15   : > { %214 = vst.msk [vmem:[#allocation2] sm:$0x3] %vm213_vm0, %v13792_v0 }
  0x16 PF: > { %v12810_v1 = vld [vmem:[%s13845_s25 + $0x38] sm:$0xff]  ;;  %v12809_v5 = vld [vmem:[%s13845_s25 + $0x30] sm:$0xff]  ;;  %v12808_v9 = vld [vmem:[%s13845_s25 + $0x28] sm:$0xff]  ;;  %vm9107_vm1 = vcmask 123904   ;;  %p12798_p7 = scmp.ne.s32.totalorder %s13782_s12, 6 }
  0x17   : > { %v12818_v2 = vld [vmem:[%s13845_s25 + $0x78] sm:$0xff]  ;;  %7650 = vmatpush.bf16.msra.mxu0 %v12810_v1  ;;  %v12817_v6 = vld [vmem:[%s13845_s25 + $0x70] sm:$0xff]  ;;  %v12816_v10 = vld [vmem:[%s13845_s25 + $0x68] sm:$0xff] }
  0x18   : > { %v12826_v3 = vld [vmem:[%s13845_s25 + $0xb8] sm:$0xff]  ;;  %7663 = vmatpush.bf16.msra.mxu1 %v12818_v2  ;;  %v12825_v7 = vld [vmem:[%s13845_s25 + $0xb0] sm:$0xff]  ;;  %v12824_v11 = vld [vmem:[%s13845_s25 + $0xa8] sm:$0xff] }
  0x19   : > { %v12834_v4 = vld [vmem:[%s13845_s25 + $0xf8] sm:$0xff]  ;;  %7676 = vmatpush.bf16.msra.mxu2 %v12826_v3  ;;  %v12833_v8 = vld [vmem:[%s13845_s25 + $0xf0] sm:$0xff]  ;;  %v12832_v12 = vld [vmem:[%s13845_s25 + $0xe8] sm:$0xff] }
  0x1a   : > { %7689 = vmatpush.bf16.msra.mxu3 %v12834_v4  ;;  %v12807_v13 = vld [vmem:[%s13845_s25 + $0x20] sm:$0xff]  ;;  %v12806_v17 = vld [vmem:[%s13845_s25 + $0x18] sm:$0xff]  ;;  %v12805_v22 = vld [vmem:[%s13845_s25 + $0x10] sm:$0xff] }
  0x1b   : > { %7651 = vmatpush.bf16.msra.mxu0 %v12809_v5  ;;  %v12815_v14 = vld [vmem:[%s13845_s25 + $0x60] sm:$0xff]  ;;  %v12814_v18 = vld [vmem:[%s13845_s25 + $0x58] sm:$0xff]  ;;  %v12813_v23 = vld [vmem:[%s13845_s25 + $0x50] sm:$0xff] }
  0x1c   : > { %7664 = vmatpush.bf16.msra.mxu1 %v12817_v6  ;;  %v12823_v15 = vld [vmem:[%s13845_s25 + $0xa0] sm:$0xff]  ;;  %v12822_v19 = vld [vmem:[%s13845_s25 + $0x98] sm:$0xff]  ;;  %v12821_v24 = vld [vmem:[%s13845_s25 + $0x90] sm:$0xff] }
  0x1d   : > { %7677 = vmatpush.bf16.msra.mxu2 %v12825_v7  ;;  %v12831_v16 = vld [vmem:[%s13845_s25 + $0xe0] sm:$0xff]  ;;  %v12830_v20 = vld [vmem:[%s13845_s25 + $0xd8] sm:$0xff]  ;;  %v12829_v25 = vld [vmem:[%s13845_s25 + $0xd0] sm:$0xff] }
  0x1e   : > { %7690 = vmatpush.bf16.msra.mxu3 %v12833_v8  ;;  %v216_v21 = vld [vmem:[%s13840_s21] sm:$0xff]  ;;  %v12804_v26 = vld [vmem:[%s13845_s25 + $0x8] sm:$0xff]  ;;  %v12842_v34 = vld [vmem:[%s13845_s25 + $0x138] sm:$0xff] }
  0x1f   : > { %7652 = vmatpush.bf16.msra.mxu0 %v12808_v9  ;;  %2023 = vst [vmem:[#allocation1] ss:$9 sm:$0xff] %v216_v21  ;;  %v12812_v27 = vld [vmem:[%s13845_s25 + $0x48] sm:$0xff]  ;;  %v12803_v30 = vld [vmem:[%s13845_s25] sm:$0xff]  ;;  %v12850_v35 = vld [vmem:[%s13845_s25 + $0x178] sm:$0xff] }
  0x20   : > { %7665 = vmatpush.bf16.msra.mxu1 %v12816_v10  ;;  %v12820_v28 = vld [vmem:[%s13845_s25 + $0x88] sm:$0xff]  ;;  %v12811_v31 = vld [vmem:[%s13845_s25 + $0x40] sm:$0xff]  ;;  %v12858_v36 = vld [vmem:[%s13845_s25 + $0x1b8] sm:$0xff] }
  0x21   : > { %7678 = vmatpush.bf16.msra.mxu2 %v12824_v11  ;;  %v12828_v29 = vld [vmem:[%s13845_s25 + $0xc8] sm:$0xff]  ;;  %v12819_v32 = vld [vmem:[%s13845_s25 + $0x80] sm:$0xff]  ;;  %v12866_v37 = vld [vmem:[%s13845_s25 + $0x1f8] sm:$0xff] }
  0x22   : > { %7691 = vmatpush.bf16.msra.mxu3 %v12832_v12  ;;  %v12827_v33 = vld [vmem:[%s13845_s25 + $0xc0] sm:$0xff]  ;;  %v12841_v38 = vld [vmem:[%s13845_s25 + $0x130] sm:$0xff]  ;;  %v12840_v46 = vld [vmem:[%s13845_s25 + $0x128] sm:$0xff] }
  0x23   : > { %7653 = vmatpush.bf16.msra.mxu0 %v12807_v13  ;;  %v12849_v41 = vld [vmem:[%s13845_s25 + $0x170] sm:$0xff]  ;;  %v12848_v47 = vld [vmem:[%s13845_s25 + $0x168] sm:$0xff]  ;;  %v12839_v50 = vld [vmem:[%s13845_s25 + $0x120] sm:$0xff] }
  0x24   : > { %7666 = vmatpush.bf16.msra.mxu1 %v12815_v14  ;;  %v12857_v44 = vld [vmem:[%s13845_s25 + $0x1b0] sm:$0xff]  ;;  %v12856_v48 = vld [vmem:[%s13845_s25 + $0x1a8] sm:$0xff]  ;;  %v12847_v51 = vld [vmem:[%s13845_s25 + $0x160] sm:$0xff] }
  0x25   : > { %7679 = vmatpush.bf16.msra.mxu2 %v12823_v15  ;;  %v12865_v45 = vld [vmem:[%s13845_s25 + $0x1f0] sm:$0xff]  ;;  %v12864_v49 = vld [vmem:[%s13845_s25 + $0x1e8] sm:$0xff]  ;;  %v12855_v52 = vld [vmem:[%s13845_s25 + $0x1a0] sm:$0xff] }
  0x26   : > { %7692 = vmatpush.bf16.msra.mxu3 %v12831_v16  ;;  %v2026_v39 = vld [vmem:[#allocation1 + $0x12] sm:$0xff]  ;;  %v2024_v40 = vld [vmem:[#allocation1] sm:$0xff]  ;;  %v2025_v43 = vld [vmem:[#allocation1 + $0x9] sm:$0xff] }
  0x27   : > { %7654 = vmatpush.bf16.msra.mxu0 %v12806_v17  ;;  %v2027_v42 = vld [vmem:[#allocation1 + $0x1b] sm:$0xff]  ;;  %v12837_v58 = vld [vmem:[%s13845_s25 + $0x110] sm:$0xff]  ;;  %v12836_v62 = vld [vmem:[%s13845_s25 + $0x108] sm:$0xff] }
  0x28   : > { %7667 = vmatpush.bf16.msra.mxu1 %v12814_v18  ;;  %v12863_v53 = vld [vmem:[%s13845_s25 + $0x1e0] sm:$0xff]  ;;  %v12838_v54 = vld [vmem:[%s13845_s25 + $0x118] sm:$0xff]  ;;  %v12845_v59 = vld [vmem:[%s13845_s25 + $0x150] sm:$0xff] }
  0x29   : > { %7680 = vmatpush.bf16.msra.mxu2 %v12822_v19  ;;  %v12846_v55 = vld [vmem:[%s13845_s25 + $0x158] sm:$0xff]  ;;  %v12853_v60 = vld [vmem:[%s13845_s25 + $0x190] sm:$0xff]  ;;  %v12844_v63 = vld [vmem:[%s13845_s25 + $0x148] sm:$0xff] }
  0x2a   : > { %7693 = vmatpush.bf16.msra.mxu3 %v12830_v20  ;;  %v12854_v56 = vld [vmem:[%s13845_s25 + $0x198] sm:$0xff]  ;;  %v12861_v61 = vld [vmem:[%s13845_s25 + $0x1d0] sm:$0xff]  ;;  %v12852_v0 = vld [vmem:[%s13845_s25 + $0x188] sm:$0xff] }
  0x2b   : > { %7655 = vmatpush.bf16.msra.mxu0 %v12805_v22  ;;  %v12862_v57 = vld [vmem:[%s13845_s25 + $0x1d8] sm:$0xff]  ;;  %v12860_v1 = vld [vmem:[%s13845_s25 + $0x1c8] sm:$0xff]  ;;  %v12835_v7 = vld [vmem:[%s13845_s25 + $0x100] sm:$0xff] }
  0x2c   : > { %7668 = vmatpush.bf16.msra.mxu1 %v12813_v23  ;;  %v2030_v2 = vld [vmem:[#allocation1 + $0x36] sm:$0xff]  ;;  %v2028_v3 = vld [vmem:[#allocation1 + $0x24] sm:$0xff]  ;;  %v2029_v5 = vld [vmem:[#allocation1 + $0x2d] sm:$0xff] }
  0x2d   : > { %7681 = vmatpush.bf16.msra.mxu2 %v12821_v24  ;;  %v2031_v4 = vld [vmem:[#allocation1 + $0x3f] sm:$0xff]  ;;  %v217_v6 = vld [vmem:[%s13840_s21 + $0x8] sm:$0xff]  ;;  %v12873_v15 = vld [vmem:[%s13845_s25 + $0x230] sm:$0xff] }
  0x2e   : > { %7694 = vmatpush.bf16.msra.mxu3 %v12829_v25  ;;  %2033 = vst [vmem:[#allocation1] ss:$9 sm:$0xff] %v217_v6  ;;  %v12843_v8 = vld [vmem:[%s13845_s25 + $0x140] sm:$0xff]  ;;  %v12874_v11 = vld [vmem:[%s13845_s25 + $0x238] sm:$0xff]  ;;  %v12881_v16 = vld [vmem:[%s13845_s25 + $0x270] sm:$0xff] }
  0x2f   : > { %7656 = vmatpush.bf16.msra.mxu0 %v12804_v26  ;;  %v12851_v9 = vld [vmem:[%s13845_s25 + $0x180] sm:$0xff]  ;;  %v12882_v12 = vld [vmem:[%s13845_s25 + $0x278] sm:$0xff]  ;;  %v12889_v17 = vld [vmem:[%s13845_s25 + $0x2b0] sm:$0xff] }
  0x30   : > { %7669 = vmatpush.bf16.msra.mxu1 %v12812_v27  ;;  %v12859_v10 = vld [vmem:[%s13845_s25 + $0x1c0] sm:$0xff]  ;;  %v12890_v13 = vld [vmem:[%s13845_s25 + $0x2b8] sm:$0xff]  ;;  %v12897_v18 = vld [vmem:[%s13845_s25 + $0x2f0] sm:$0xff] }
  0x31   : > { %7682 = vmatpush.bf16.msra.mxu2 %v12820_v28  ;;  %v12898_v14 = vld [vmem:[%s13845_s25 + $0x2f8] sm:$0xff]  ;;  %v12872_v19 = vld [vmem:[%s13845_s25 + $0x228] sm:$0xff]  ;;  %v12871_v23 = vld [vmem:[%s13845_s25 + $0x220] sm:$0xff] }
  0x32   : > { %7695 = vmatpush.bf16.msra.mxu3 %v12828_v29  ;;  %v12880_v20 = vld [vmem:[%s13845_s25 + $0x268] sm:$0xff]  ;;  %v12879_v24 = vld [vmem:[%s13845_s25 + $0x260] sm:$0xff]  ;;  %v12870_v27 = vld [vmem:[%s13845_s25 + $0x218] sm:$0xff] }
  0x33   : > { %7657 = vmatpush.bf16.msra.mxu0 %v12803_v30  ;;  %v12888_v21 = vld [vmem:[%s13845_s25 + $0x2a8] sm:$0xff]  ;;  %v12887_v25 = vld [vmem:[%s13845_s25 + $0x2a0] sm:$0xff]  ;;  %v12878_v28 = vld [vmem:[%s13845_s25 + $0x258] sm:$0xff] }
  0x34   : > { %7670 = vmatpush.bf16.msra.mxu1 %v12811_v31  ;;  %v12896_v22 = vld [vmem:[%s13845_s25 + $0x2e8] sm:$0xff]  ;;  %v12895_v26 = vld [vmem:[%s13845_s25 + $0x2e0] sm:$0xff]  ;;  %v12886_v29 = vld [vmem:[%s13845_s25 + $0x298] sm:$0xff] }
  0x35   : > { %7683 = vmatpush.bf16.msra.mxu2 %v12819_v32  ;;  %v12894_v30 = vld [vmem:[%s13845_s25 + $0x2d8] sm:$0xff]  ;;  %v12869_v31 = vld [vmem:[%s13845_s25 + $0x210] sm:$0xff] }
  0x36   : > { %7696 = vmatpush.bf16.msra.mxu3 %v12827_v33  ;;  %7658 = vmatmul.bf16.vlgmr.msra.gmra.mxu0 %v2024_v40  ;;  %v12877_v32 = vld [vmem:[%s13845_s25 + $0x250] sm:$0xff]  ;;  %v12875_v40 = vld [vmem:[%s13845_s25 + $0x240] sm:$0xff] }
  0x37   : > { %7702 = vmatpush.bf16.msrb.mxu0 %v12842_v34  ;;  %7671 = vmatmul.bf16.vlgmr.msra.gmra.mxu1 %v2025_v43  ;;  %v12885_v33 = vld [vmem:[%s13845_s25 + $0x290] sm:$0xff]  ;;  %v12906_v43 = vld [vmem:[%s13845_s25 + $0x338] sm:$0xff] }
  0x38   : > { %7715 = vmatpush.bf16.msrb.mxu1 %v12850_v35  ;;  %7684 = vmatmul.bf16.vlgmr.msra.gmra.mxu2 %v2026_v39  ;;  %v12893_v34 = vld [vmem:[%s13845_s25 + $0x2d0] sm:$0xff]  ;;  %v12868_v35 = vld [vmem:[%s13845_s25 + $0x208] sm:$0xff]  ;;  %v12867_v39 = vld [vmem:[%s13845_s25 + $0x200] sm:$0xff] }
  0x39   : > { %7728 = vmatpush.bf16.msrb.mxu2 %v12858_v36  ;;  %7697 = vmatmul.bf16.vlgmr.msra.gmra.mxu3 %v2027_v42  ;;  %v12876_v36 = vld [vmem:[%s13845_s25 + $0x248] sm:$0xff]  ;;  %v12891_v42 = vld [vmem:[%s13845_s25 + $0x2c0] sm:$0xff]  ;;  %v12925_v6 = vld [vmem:[%s13845_s25 + $0x3d0] sm:$0xff] }
  0x3a   : > { %7741 = vmatpush.bf16.msrb.mxu3 %v12866_v37  ;;  %v12884_v37 = vld [vmem:[%s13845_s25 + $0x288] sm:$0xff] }
  0x3b   : > { %7703 = vmatpush.bf16.msrb.mxu0 %v12841_v38  ;;  %v12892_v38 = vld [vmem:[%s13845_s25 + $0x2c8] sm:$0xff] }
  0x3c   : > { %7716 = vmatpush.bf16.msrb.mxu1 %v12849_v41  ;;  %v12883_v41 = vld [vmem:[%s13845_s25 + $0x280] sm:$0xff] }
  0x3d   : > { %7729 = vmatpush.bf16.msrb.mxu2 %v12857_v44  ;;  %v12914_v44 = vld [vmem:[%s13845_s25 + $0x378] sm:$0xff] }
  0x3e   : > { %7742 = vmatpush.bf16.msrb.mxu3 %v12865_v45  ;;  %v12922_v45 = vld [vmem:[%s13845_s25 + $0x3b8] sm:$0xff] }
  0x3f   : > { %7704 = vmatpush.bf16.msrb.mxu0 %v12840_v46  ;;  %v12930_v46 = vld [vmem:[%s13845_s25 + $0x3f8] sm:$0xff] }
  0x40   : > { %7717 = vmatpush.bf16.msrb.mxu1 %v12848_v47  ;;  %v2034_v47 = vld [vmem:[#allocation1] sm:$0xff] }
  0x41   : > { %7730 = vmatpush.bf16.msrb.mxu2 %v12856_v48  ;;  %v2036_v48 = vld [vmem:[#allocation1 + $0x12] sm:$0xff] }
  0x42   : > { %7743 = vmatpush.bf16.msrb.mxu3 %v12864_v49  ;;  %v2035_v49 = vld [vmem:[#allocation1 + $0x9] sm:$0xff] }
  0x43   : > { %7705 = vmatpush.bf16.msrb.mxu0 %v12839_v50  ;;  %v2037_v50 = vld [vmem:[#allocation1 + $0x1b] sm:$0xff] }
  0x44   : > { %7718 = vmatpush.bf16.msrb.mxu1 %v12847_v51  ;;  %v12905_v51 = vld [vmem:[%s13845_s25 + $0x330] sm:$0xff] }
  0x45   : > { %7731 = vmatpush.bf16.msrb.mxu2 %v12855_v52  ;;  %v12913_v52 = vld [vmem:[%s13845_s25 + $0x370] sm:$0xff] }
  0x46   : > { %7744 = vmatpush.bf16.msrb.mxu3 %v12863_v53  ;;  %v12921_v53 = vld [vmem:[%s13845_s25 + $0x3b0] sm:$0xff] }
  0x47   : > { %7706 = vmatpush.bf16.msrb.mxu0 %v12838_v54  ;;  %v12929_v54 = vld [vmem:[%s13845_s25 + $0x3f0] sm:$0xff] }
  0x48   : > { %7719 = vmatpush.bf16.msrb.mxu1 %v12846_v55  ;;  %v12904_v55 = vld [vmem:[%s13845_s25 + $0x328] sm:$0xff] }
  0x49   : > { %7732 = vmatpush.bf16.msrb.mxu2 %v12854_v56  ;;  %v12912_v56 = vld [vmem:[%s13845_s25 + $0x368] sm:$0xff] }
  0x4a   : > { %7745 = vmatpush.bf16.msrb.mxu3 %v12862_v57  ;;  %v12920_v57 = vld [vmem:[%s13845_s25 + $0x3a8] sm:$0xff] }
  0x4b   : > { %7707 = vmatpush.bf16.msrb.mxu0 %v12837_v58  ;;  %v12928_v58 = vld [vmem:[%s13845_s25 + $0x3e8] sm:$0xff] }
  0x4c   : > { %7720 = vmatpush.bf16.msrb.mxu1 %v12845_v59  ;;  %v12903_v59 = vld [vmem:[%s13845_s25 + $0x320] sm:$0xff] }
  0x4d   : > { %7733 = vmatpush.bf16.msrb.mxu2 %v12853_v60  ;;  %v12911_v60 = vld [vmem:[%s13845_s25 + $0x360] sm:$0xff] }
  0x4e   : > { %7746 = vmatpush.bf16.msrb.mxu3 %v12861_v61  ;;  %v12919_v61 = vld [vmem:[%s13845_s25 + $0x3a0] sm:$0xff] }
  0x4f   : > { %7708 = vmatpush.bf16.msrb.mxu0 %v12836_v62  ;;  %v12927_v62 = vld [vmem:[%s13845_s25 + $0x3e0] sm:$0xff] }
  0x50   : > { %7721 = vmatpush.bf16.msrb.mxu1 %v12844_v63  ;;  %v12902_v63 = vld [vmem:[%s13845_s25 + $0x318] sm:$0xff] }
  0x51   : > { %7734 = vmatpush.bf16.msrb.mxu2 %v12852_v0  ;;  %v12910_v0 = vld [vmem:[%s13845_s25 + $0x358] sm:$0xff] }
  0x52   : > { %7747 = vmatpush.bf16.msrb.mxu3 %v12860_v1  ;;  %v12918_v1 = vld [vmem:[%s13845_s25 + $0x398] sm:$0xff] }
  0x53   : > { %7709 = vmatpush.bf16.msrb.mxu0 %v12835_v7  ;;  %v12900_v7 = vld [vmem:[%s13845_s25 + $0x308] sm:$0xff] }
  0x54   : > { %7722 = vmatpush.bf16.msrb.mxu1 %v12843_v8  ;;  %v12908_v8 = vld [vmem:[%s13845_s25 + $0x348] sm:$0xff] }
  0x55   : > { %7735 = vmatpush.bf16.msrb.mxu2 %v12851_v9  ;;  %v12916_v9 = vld [vmem:[%s13845_s25 + $0x388] sm:$0xff] }
  0x56   : > { %7748 = vmatpush.bf16.msrb.mxu3 %v12859_v10  ;;  %7710 = vmatmul.bf16.vlgmr.msrb.gmra.mxu0 %v2028_v3  ;;  %v12901_v3 = vld [vmem:[%s13845_s25 + $0x310] sm:$0xff]  ;;  %v12924_v10 = vld [vmem:[%s13845_s25 + $0x3c8] sm:$0xff] }
  0x57   : > { %7754 = vmatpush.bf16.msra.mxu0 %v12874_v11  ;;  %7723 = vmatmul.bf16.vlgmr.msrb.gmra.mxu1 %v2029_v5  ;;  %v12917_v5 = vld [vmem:[%s13845_s25 + $0x390] sm:$0xff]  ;;  %v2038_v11 = vld [vmem:[#allocation1 + $0x24] sm:$0xff] }
  0x58   : > { %7767 = vmatpush.bf16.msra.mxu1 %v12882_v12  ;;  %7736 = vmatmul.bf16.vlgmr.msrb.gmra.mxu2 %v2030_v2  ;;  %v12926_v2 = vld [vmem:[%s13845_s25 + $0x3d8] sm:$0xff] }
  0x59   : > { %7780 = vmatpush.bf16.msra.mxu2 %v12890_v13  ;;  %7749 = vmatmul.bf16.vlgmr.msrb.gmra.mxu3 %v2031_v4  ;;  %v12909_v4 = vld [vmem:[%s13845_s25 + $0x350] sm:$0xff] }
  0x5a   : > { %7793 = vmatpush.bf16.msra.mxu3 %v12898_v14  ;;  %v2040_v12 = vld [vmem:[#allocation1 + $0x36] sm:$0xff]  ;;  %v2039_v13 = vld [vmem:[#allocation1 + $0x2d] sm:$0xff]  ;;  %v2041_v14 = vld [vmem:[#allocation1 + $0x3f] sm:$0xff] }
  0x5b   : > { %7755 = vmatpush.bf16.msra.mxu0 %v12873_v15  ;;  %v218_v15 = vld [vmem:[%s13840_s21 + $0x10] sm:$0xff] }
  0x5c   : > { %7768 = vmatpush.bf16.msra.mxu1 %v12881_v16  ;;  %2043 = vst [vmem:[#allocation1] ss:$9 sm:$0xff] %v218_v15  ;;  %v12899_v16 = vld [vmem:[%s13845_s25 + $0x300] sm:$0xff] }
  0x5d   : > { %7781 = vmatpush.bf16.msra.mxu2 %v12889_v17  ;;  %v12907_v17 = vld [vmem:[%s13845_s25 + $0x340] sm:$0xff] }
  0x5e   : > { %7794 = vmatpush.bf16.msra.mxu3 %v12897_v18  ;;  %v12915_v18 = vld [vmem:[%s13845_s25 + $0x380] sm:$0xff] }
  0x5f   : > { %7756 = vmatpush.bf16.msra.mxu0 %v12872_v19  ;;  %v12923_v19 = vld [vmem:[%s13845_s25 + $0x3c0] sm:$0xff] }
  0x60   : > { %7769 = vmatpush.bf16.msra.mxu1 %v12880_v20  ;;  %v12938_v20 = vld [vmem:[%s13845_s25 + $0x438] sm:$0xff] }
  0x61   : > { %7782 = vmatpush.bf16.msra.mxu2 %v12888_v21  ;;  %v12946_v21 = vld [vmem:[%s13845_s25 + $0x478] sm:$0xff] }
  0x62   : > { %7795 = vmatpush.bf16.msra.mxu3 %v12896_v22  ;;  %v12954_v22 = vld [vmem:[%s13845_s25 + $0x4b8] sm:$0xff] }
  0x63   : > { %7757 = vmatpush.bf16.msra.mxu0 %v12871_v23  ;;  %v12962_v23 = vld [vmem:[%s13845_s25 + $0x4f8] sm:$0xff] }
  0x64   : > { %7770 = vmatpush.bf16.msra.mxu1 %v12879_v24  ;;  %v12937_v24 = vld [vmem:[%s13845_s25 + $0x430] sm:$0xff] }
  0x65   : > { %7783 = vmatpush.bf16.msra.mxu2 %v12887_v25  ;;  %v12945_v25 = vld [vmem:[%s13845_s25 + $0x470] sm:$0xff] }
  0x66   : > { %7796 = vmatpush.bf16.msra.mxu3 %v12895_v26  ;;  %v12953_v26 = vld [vmem:[%s13845_s25 + $0x4b0] sm:$0xff] }
  0x67   : > { %7758 = vmatpush.bf16.msra.mxu0 %v12870_v27  ;;  %v12961_v27 = vld [vmem:[%s13845_s25 + $0x4f0] sm:$0xff] }
  0x68   : > { %7771 = vmatpush.bf16.msra.mxu1 %v12878_v28  ;;  %v12936_v28 = vld [vmem:[%s13845_s25 + $0x428] sm:$0xff] }
  0x69   : > { %7784 = vmatpush.bf16.msra.mxu2 %v12886_v29  ;;  %v12944_v29 = vld [vmem:[%s13845_s25 + $0x468] sm:$0xff] }
  0x6a   : > { %7797 = vmatpush.bf16.msra.mxu3 %v12894_v30  ;;  %v12952_v30 = vld [vmem:[%s13845_s25 + $0x4a8] sm:$0xff] }
  0x6b   : > { %7759 = vmatpush.bf16.msra.mxu0 %v12869_v31  ;;  %v12960_v31 = vld [vmem:[%s13845_s25 + $0x4e8] sm:$0xff] }
  0x6c   : > { %7772 = vmatpush.bf16.msra.mxu1 %v12877_v32  ;;  %v12935_v32 = vld [vmem:[%s13845_s25 + $0x420] sm:$0xff] }
  0x6d   : > { %7785 = vmatpush.bf16.msra.mxu2 %v12885_v33  ;;  %v12943_v33 = vld [vmem:[%s13845_s25 + $0x460] sm:$0xff] }
  0x6e   : > { %7798 = vmatpush.bf16.msra.mxu3 %v12893_v34  ;;  %v12951_v34 = vld [vmem:[%s13845_s25 + $0x4a0] sm:$0xff] }
  0x6f   : > { %7760 = vmatpush.bf16.msra.mxu0 %v12868_v35  ;;  %v12959_v35 = vld [vmem:[%s13845_s25 + $0x4e0] sm:$0xff] }
  0x70   : > { %7773 = vmatpush.bf16.msra.mxu1 %v12876_v36  ;;  %v12934_v36 = vld [vmem:[%s13845_s25 + $0x418] sm:$0xff] }
  0x71   : > { %7786 = vmatpush.bf16.msra.mxu2 %v12884_v37  ;;  %v12942_v37 = vld [vmem:[%s13845_s25 + $0x458] sm:$0xff] }
  0x72   : > { %7799 = vmatpush.bf16.msra.mxu3 %v12892_v38  ;;  %v12950_v38 = vld [vmem:[%s13845_s25 + $0x498] sm:$0xff] }
  0x73   : > { %7761 = vmatpush.bf16.msra.mxu0 %v12867_v39  ;;  %v12958_v39 = vld [vmem:[%s13845_s25 + $0x4d8] sm:$0xff] }
  0x74   : > { %7774 = vmatpush.bf16.msra.mxu1 %v12875_v40  ;;  %v12933_v40 = vld [vmem:[%s13845_s25 + $0x410] sm:$0xff] }
  0x75   : > { %7787 = vmatpush.bf16.msra.mxu2 %v12883_v41  ;;  %v12941_v41 = vld [vmem:[%s13845_s25 + $0x450] sm:$0xff] }
  0x76   : > { %7800 = vmatpush.bf16.msra.mxu3 %v12891_v42  ;;  %7762 = vmatmul.bf16.vlgmr.msra.gmra.mxu0 %v2034_v47  ;;  %v12949_v42 = vld [vmem:[%s13845_s25 + $0x490] sm:$0xff]  ;;  %v12956_v47 = vld [vmem:[%s13845_s25 + $0x4c8] sm:$0xff] }
  0x77   : > { %7806 = vmatpush.bf16.msrb.mxu0 %v12906_v43  ;;  %7775 = vmatmul.bf16.vlgmr.msra.gmra.mxu1 %v2035_v49  ;;  %v12957_v43 = vld [vmem:[%s13845_s25 + $0x4d0] sm:$0xff]  ;;  %v12939_v49 = vld [vmem:[%s13845_s25 + $0x440] sm:$0xff] }
  0x78   : > { %7819 = vmatpush.bf16.msrb.mxu1 %v12914_v44  ;;  %7788 = vmatmul.bf16.vlgmr.msra.gmra.mxu2 %v2036_v48  ;;  %v12932_v44 = vld [vmem:[%s13845_s25 + $0x408] sm:$0xff]  ;;  %v12931_v48 = vld [vmem:[%s13845_s25 + $0x400] sm:$0xff] }
  0x79   : > { %7832 = vmatpush.bf16.msrb.mxu2 %v12922_v45  ;;  %7801 = vmatmul.bf16.vlgmr.msra.gmra.mxu3 %v2037_v50  ;;  %v12940_v45 = vld [vmem:[%s13845_s25 + $0x448] sm:$0xff]  ;;  %v12947_v50 = vld [vmem:[%s13845_s25 + $0x480] sm:$0xff] }
  0x7a   : > { %7845 = vmatpush.bf16.msrb.mxu3 %v12930_v46  ;;  %v12948_v46 = vld [vmem:[%s13845_s25 + $0x488] sm:$0xff] }
  0x7b   : > { %7807 = vmatpush.bf16.msrb.mxu0 %v12905_v51  ;;  %v12955_v51 = vld [vmem:[%s13845_s25 + $0x4c0] sm:$0xff] }
  0x7c   : > { %7820 = vmatpush.bf16.msrb.mxu1 %v12913_v52  ;;  %v12970_v52 = vld [vmem:[%s13845_s25 + $0x538] sm:$0xff] }
  0x7d   : > { %7833 = vmatpush.bf16.msrb.mxu2 %v12921_v53  ;;  %v12978_v53 = vld [vmem:[%s13845_s25 + $0x578] sm:$0xff] }
  0x7e   : > { %7846 = vmatpush.bf16.msrb.mxu3 %v12929_v54  ;;  %v12986_v54 = vld [vmem:[%s13845_s25 + $0x5b8] sm:$0xff] }
  0x7f   : > { %7808 = vmatpush.bf16.msrb.mxu0 %v12904_v55  ;;  %v12994_v55 = vld [vmem:[%s13845_s25 + $0x5f8] sm:$0xff] }
  0x80   : > { %7821 = vmatpush.bf16.msrb.mxu1 %v12912_v56  ;;  %v2044_v56 = vld [vmem:[#allocation1] sm:$0xff] }
  0x81   : > { %7834 = vmatpush.bf16.msrb.mxu2 %v12920_v57  ;;  %v2046_v57 = vld [vmem:[#allocation1 + $0x12] sm:$0xff] }
  0x82   : > { %7847 = vmatpush.bf16.msrb.mxu3 %v12928_v58  ;;  %v2045_v58 = vld [vmem:[#allocation1 + $0x9] sm:$0xff] }
  0x83   : > { %7809 = vmatpush.bf16.msrb.mxu0 %v12903_v59  ;;  %v2047_v59 = vld [vmem:[#allocation1 + $0x1b] sm:$0xff] }
  0x84   : > { %7822 = vmatpush.bf16.msrb.mxu1 %v12911_v60  ;;  %v12969_v60 = vld [vmem:[%s13845_s25 + $0x530] sm:$0xff] }
  0x85   : > { %7835 = vmatpush.bf16.msrb.mxu2 %v12919_v61  ;;  %v12977_v61 = vld [vmem:[%s13845_s25 + $0x570] sm:$0xff] }
  0x86   : > { %7848 = vmatpush.bf16.msrb.mxu3 %v12927_v62  ;;  %v12985_v62 = vld [vmem:[%s13845_s25 + $0x5b0] sm:$0xff] }
  0x87   : > { %7810 = vmatpush.bf16.msrb.mxu0 %v12902_v63  ;;  %v12993_v63 = vld [vmem:[%s13845_s25 + $0x5f0] sm:$0xff] }
  0x88   : > { %7823 = vmatpush.bf16.msrb.mxu1 %v12910_v0  ;;  %v12968_v0 = vld [vmem:[%s13845_s25 + $0x528] sm:$0xff] }
  0x89   : > { %7836 = vmatpush.bf16.msrb.mxu2 %v12918_v1  ;;  %v12976_v1 = vld [vmem:[%s13845_s25 + $0x568] sm:$0xff] }
  0x8a   : > { %7849 = vmatpush.bf16.msrb.mxu3 %v12926_v2  ;;  %v12984_v2 = vld [vmem:[%s13845_s25 + $0x5a8] sm:$0xff] }
  0x8b   : > { %7811 = vmatpush.bf16.msrb.mxu0 %v12901_v3  ;;  %v12992_v3 = vld [vmem:[%s13845_s25 + $0x5e8] sm:$0xff] }
  0x8c   : > { %7824 = vmatpush.bf16.msrb.mxu1 %v12909_v4 }
  0x8d   : > { %7837 = vmatpush.bf16.msrb.mxu2 %v12917_v5  ;;  %v12967_v5 = vld [vmem:[%s13845_s25 + $0x520] sm:$0xff] }
  0x8e   : > { %7850 = vmatpush.bf16.msrb.mxu3 %v12925_v6  ;;  %v12975_v6 = vld [vmem:[%s13845_s25 + $0x560] sm:$0xff] }
  0x8f   : > { %7812 = vmatpush.bf16.msrb.mxu0 %v12900_v7 }
  0x90   : > { %7825 = vmatpush.bf16.msrb.mxu1 %v12908_v8  ;;  %v12983_v8 = vld [vmem:[%s13845_s25 + $0x5a0] sm:$0xff] }
  0x91   : > { %7838 = vmatpush.bf16.msrb.mxu2 %v12916_v9  ;;  %v12991_v9 = vld [vmem:[%s13845_s25 + $0x5e0] sm:$0xff] }
  0x92   : > { %7851 = vmatpush.bf16.msrb.mxu3 %v12924_v10 }
  0x93   : > { %7813 = vmatpush.bf16.msrb.mxu0 %v12899_v16 }
  0x94   : > { %7826 = vmatpush.bf16.msrb.mxu1 %v12907_v17 }
  0x95   : > { %7839 = vmatpush.bf16.msrb.mxu2 %v12915_v18 }
  0x96   : > { %7852 = vmatpush.bf16.msrb.mxu3 %v12923_v19  ;;  %7814 = vmatmul.bf16.vlgmr.msrb.gmra.mxu0 %v2038_v11  ;;  %v12966_v11 = vld [vmem:[%s13845_s25 + $0x518] sm:$0xff]  ;;  %v12965_v19 = vld [vmem:[%s13845_s25 + $0x510] sm:$0xff] }
  0x97   : > { %7858 = vmatpush.bf16.msra.mxu0 %v12938_v20  ;;  %7827 = vmatmul.bf16.vlgmr.msrb.gmra.mxu1 %v2039_v13  ;;  %v12982_v13 = vld [vmem:[%s13845_s25 + $0x598] sm:$0xff]  ;;  %v12973_v20 = vld [vmem:[%s13845_s25 + $0x550] sm:$0xff] }
  0x98   : > { %7871 = vmatpush.bf16.msra.mxu1 %v12946_v21  ;;  %7840 = vmatmul.bf16.vlgmr.msrb.gmra.mxu2 %v2040_v12  ;;  %v12974_v12 = vld [vmem:[%s13845_s25 + $0x558] sm:$0xff] }
  0x99   : > { %7884 = vmatpush.bf16.msra.mxu2 %v12954_v22  ;;  %7853 = vmatmul.bf16.vlgmr.msrb.gmra.mxu3 %v2041_v14  ;;  %v12990_v14 = vld [vmem:[%s13845_s25 + $0x5d8] sm:$0xff] }
  0x9a   : > { %7897 = vmatpush.bf16.msra.mxu3 %v12962_v23  ;;  %v12981_v23 = vld [vmem:[%s13845_s25 + $0x590] sm:$0xff] }
  0x9b   : > { %7859 = vmatpush.bf16.msra.mxu0 %v12937_v24  ;;  %v12989_v24 = vld [vmem:[%s13845_s25 + $0x5d0] sm:$0xff] }
  0x9c   : > { %7872 = vmatpush.bf16.msra.mxu1 %v12945_v25  ;;  %v12964_v25 = vld [vmem:[%s13845_s25 + $0x508] sm:$0xff] }
  0x9d   : > { %7885 = vmatpush.bf16.msra.mxu2 %v12953_v26  ;;  %v12972_v26 = vld [vmem:[%s13845_s25 + $0x548] sm:$0xff] }
  0x9e   : > { %7898 = vmatpush.bf16.msra.mxu3 %v12961_v27  ;;  %v12980_v27 = vld [vmem:[%s13845_s25 + $0x588] sm:$0xff] }
  0x9f   : > { %7860 = vmatpush.bf16.msra.mxu0 %v12936_v28  ;;  %v12988_v28 = vld [vmem:[%s13845_s25 + $0x5c8] sm:$0xff] }
  0xa0   : > { %7873 = vmatpush.bf16.msra.mxu1 %v12944_v29  ;;  %v2048_v29 = vld [vmem:[#allocation1 + $0x24] sm:$0xff] }
  0xa1   : > { %7886 = vmatpush.bf16.msra.mxu2 %v12952_v30  ;;  %v2050_v30 = vld [vmem:[#allocation1 + $0x36] sm:$0xff] }
  0xa2   : > { %7899 = vmatpush.bf16.msra.mxu3 %v12960_v31 }
  0xa3   : > { %7861 = vmatpush.bf16.msra.mxu0 %v12935_v32  ;;  %v2049_v32 = vld [vmem:[#allocation1 + $0x2d] sm:$0xff] }
  0xa4   : > { %7874 = vmatpush.bf16.msra.mxu1 %v12943_v33  ;;  %v2051_v33 = vld [vmem:[#allocation1 + $0x3f] sm:$0xff] }
  0xa5   : > { %7887 = vmatpush.bf16.msra.mxu2 %v12951_v34 }
  0xa6   : > { %7900 = vmatpush.bf16.msra.mxu3 %v12959_v35  ;;  %v219_v35 = vld [vmem:[%s13840_s21 + $0x18] sm:$0xff] }
  0xa7   : > { %7862 = vmatpush.bf16.msra.mxu0 %v12934_v36  ;;  %2053 = vst [vmem:[#allocation1] ss:$9 sm:$0xff] %v219_v35  ;;  %v12963_v36 = vld [vmem:[%s13845_s25 + $0x500] sm:$0xff]  ;;  %v13056_v35 = vld [vmem:[%s13845_s25 + $0x7e8] sm:$0xff] }
  0xa8   : > { %7875 = vmatpush.bf16.msra.mxu1 %v12942_v37  ;;  %v12971_v37 = vld [vmem:[%s13845_s25 + $0x540] sm:$0xff] }
  0xa9   : > { %7888 = vmatpush.bf16.msra.mxu2 %v12950_v38  ;;  %v12979_v38 = vld [vmem:[%s13845_s25 + $0x580] sm:$0xff] }
  0xaa   : > { %7901 = vmatpush.bf16.msra.mxu3 %v12958_v39  ;;  %v12987_v39 = vld [vmem:[%s13845_s25 + $0x5c0] sm:$0xff] }
  0xab   : > { %7863 = vmatpush.bf16.msra.mxu0 %v12933_v40  ;;  %v13002_v40 = vld [vmem:[%s13845_s25 + $0x638] sm:$0xff] }
  0xac   : > { %7876 = vmatpush.bf16.msra.mxu1 %v12941_v41  ;;  %v13010_v41 = vld [vmem:[%s13845_s25 + $0x678] sm:$0xff] }
  0xad   : > { %7889 = vmatpush.bf16.msra.mxu2 %v12949_v42  ;;  %v13018_v42 = vld [vmem:[%s13845_s25 + $0x6b8] sm:$0xff] }
  0xae   : > { %7902 = vmatpush.bf16.msra.mxu3 %v12957_v43  ;;  %v13026_v43 = vld [vmem:[%s13845_s25 + $0x6f8] sm:$0xff] }
  0xaf   : > { %7864 = vmatpush.bf16.msra.mxu0 %v12932_v44  ;;  %v13001_v44 = vld [vmem:[%s13845_s25 + $0x630] sm:$0xff] }
  0xb0   : > { %7877 = vmatpush.bf16.msra.mxu1 %v12940_v45  ;;  %v13009_v45 = vld [vmem:[%s13845_s25 + $0x670] sm:$0xff] }
  0xb1   : > { %7890 = vmatpush.bf16.msra.mxu2 %v12948_v46  ;;  %v13017_v46 = vld [vmem:[%s13845_s25 + $0x6b0] sm:$0xff] }
  0xb2   : > { %7903 = vmatpush.bf16.msra.mxu3 %v12956_v47  ;;  %v13025_v47 = vld [vmem:[%s13845_s25 + $0x6f0] sm:$0xff] }
  0xb3   : > { %7865 = vmatpush.bf16.msra.mxu0 %v12931_v48  ;;  %v7659_v4 = vpop.f32.mrf.mxu0  ;;  %v13000_v48 = vld [vmem:[%s13845_s25 + $0x628] sm:$0xff] }
  0xb4   : > { %7878 = vmatpush.bf16.msra.mxu1 %v12939_v49  ;;  %v7672_v7 = vpop.f32.mrf.mxu1  ;;  %v13008_v49 = vld [vmem:[%s13845_s25 + $0x668] sm:$0xff] }
  0xb5   : > { %7891 = vmatpush.bf16.msra.mxu2 %v12947_v50  ;;  %v7673_v10 = vadd.f32 %v7672_v7, %v7659_v4  ;;  %v13016_v50 = vld [vmem:[%s13845_s25 + $0x6a8] sm:$0xff]  ;;  %v12997_v4 = vld [vmem:[%s13845_s25 + $0x610] sm:$0xff] }
  0xb6   : > { %7904 = vmatpush.bf16.msra.mxu3 %v12955_v51  ;;  %7866 = vmatmul.bf16.vlgmr.msra.gmra.mxu0 %v2044_v56  ;;  %v13024_v51 = vld [vmem:[%s13845_s25 + $0x6e8] sm:$0xff] }
  0xb7   : > { %7910 = vmatpush.bf16.msrb.mxu0 %v12970_v52  ;;  %7879 = vmatmul.bf16.vlgmr.msra.gmra.mxu1 %v2045_v58  ;;  %v13023_v58 = vld [vmem:[%s13845_s25 + $0x6e0] sm:$0xff] }
  0xb8   : > { %7923 = vmatpush.bf16.msrb.mxu1 %v12978_v53  ;;  %7892 = vmatmul.bf16.vlgmr.msra.gmra.mxu2 %v2046_v57  ;;  %v12999_v53 = vld [vmem:[%s13845_s25 + $0x620] sm:$0xff] }
  0xb9   : > { %7936 = vmatpush.bf16.msrb.mxu2 %v12986_v54  ;;  %7905 = vmatmul.bf16.vlgmr.msra.gmra.mxu3 %v2047_v59  ;;  %v13007_v54 = vld [vmem:[%s13845_s25 + $0x660] sm:$0xff] }
  0xba   : > { %7949 = vmatpush.bf16.msrb.mxu3 %v12994_v55  ;;  %v13015_v57 = vld [vmem:[%s13845_s25 + $0x6a0] sm:$0xff] }
  0xbb   : > { %7911 = vmatpush.bf16.msrb.mxu0 %v12969_v60  ;;  %v7685_v15 = vpop.f32.mrf.mxu2  ;;  %v7661_v18 = vpop.f32.mrf.mxu0  ;;  %v12998_v60 = vld [vmem:[%s13845_s25 + $0x618] sm:$0xff] }
  0xbc   : > { %7924 = vmatpush.bf16.msrb.mxu1 %v12977_v61  ;;  %v7686_v16 = vadd.f32 %v7685_v15, %v7673_v10  ;;  %v7698_v17 = vpop.f32.mrf.mxu3  ;;  %v7674_v22 = vpop.f32.mrf.mxu1  ;;  %v13006_v61 = vld [vmem:[%s13845_s25 + $0x658] sm:$0xff]  ;;  %v12996_v10 = vld [vmem:[%s13845_s25 + $0x608] sm:$0xff]  ;;  %v13011_v18 = vld [vmem:[%s13845_s25 + $0x680] sm:$0xff] }
  0xbd   : > { %7937 = vmatpush.bf16.msrb.mxu2 %v12985_v62  ;;  %v13014_v62 = vld [vmem:[%s13845_s25 + $0x698] sm:$0xff] }
  0xbe   : > { %7950 = vmatpush.bf16.msrb.mxu3 %v12993_v63  ;;  %v14033_v21 = vadd.f32 %v7698_v17, %v7686_v16  ;;  %v13022_v63 = vld [vmem:[%s13845_s25 + $0x6d8] sm:$0xff]  ;;  %v12995_v16 = vld [vmem:[%s13845_s25 + $0x600] sm:$0xff] }
  0xbf   : > { %7912 = vmatpush.bf16.msrb.mxu0 %v12968_v0  ;;  %v13003_v17 = vld [vmem:[%s13845_s25 + $0x640] sm:$0xff]  ;;  %v13050_v22 = vld [vmem:[%s13845_s25 + $0x7b8] sm:$0xff] }
  0xc0   : > { %7925 = vmatpush.bf16.msrb.mxu1 %v12976_v1 }
  0xc1   : > { %7938 = vmatpush.bf16.msrb.mxu2 %v12984_v2 }
  0xc2   : > { %7951 = vmatpush.bf16.msrb.mxu3 %v12992_v3 }
  0xc3   : > { %7913 = vmatpush.bf16.msrb.mxu0 %v12967_v5  ;;  %v7687_v31 = vpop.f32.mrf.mxu2  ;;  %v13005_v5 = vld [vmem:[%s13845_s25 + $0x650] sm:$0xff] }
  0xc4   : > { %7926 = vmatpush.bf16.msrb.mxu1 %v12975_v6  ;;  %v7700_v34 = vpop.f32.mrf.mxu3  ;;  %v13057_v31 = vld [vmem:[%s13845_s25 + $0x7f0] sm:$0xff] }
  0xc5   : > { %7939 = vmatpush.bf16.msrb.mxu2 %v12983_v8  ;;  %v13013_v8 = vld [vmem:[%s13845_s25 + $0x690] sm:$0xff]  ;;  %v13048_v34 = vld [vmem:[%s13845_s25 + $0x7a8] sm:$0xff] }
  0xc6   : > { %7952 = vmatpush.bf16.msrb.mxu3 %v12991_v9  ;;  %v13021_v9 = vld [vmem:[%s13845_s25 + $0x6d0] sm:$0xff] }
  0xc7   : > { %7914 = vmatpush.bf16.msrb.mxu0 %v12966_v11  ;;  %v13004_v11 = vld [vmem:[%s13845_s25 + $0x648] sm:$0xff] }
  0xc8   : > { %7927 = vmatpush.bf16.msrb.mxu1 %v12974_v12  ;;  %v13012_v12 = vld [vmem:[%s13845_s25 + $0x688] sm:$0xff] }
  0xc9   : > { %7940 = vmatpush.bf16.msrb.mxu2 %v12982_v13  ;;  %v13020_v13 = vld [vmem:[%s13845_s25 + $0x6c8] sm:$0xff] }
  0xca   : > { %7953 = vmatpush.bf16.msrb.mxu3 %v12990_v14 }
  0xcb   : > { %7915 = vmatpush.bf16.msrb.mxu0 %v12965_v19  ;;  %v13019_v19 = vld [vmem:[%s13845_s25 + $0x6c0] sm:$0xff] }
  0xcc   : > { %7928 = vmatpush.bf16.msrb.mxu1 %v12973_v20  ;;  %v13034_v20 = vld [vmem:[%s13845_s25 + $0x738] sm:$0xff] }
  0xcd   : > { %7941 = vmatpush.bf16.msrb.mxu2 %v12981_v23  ;;  %v13058_v23 = vld [vmem:[%s13845_s25 + $0x7f8] sm:$0xff] }
  0xce   : > { %7954 = vmatpush.bf16.msrb.mxu3 %v12989_v24  ;;  %v2054_v24 = vld [vmem:[#allocation1] sm:$0xff] }
  0xcf   : > { %7916 = vmatpush.bf16.msrb.mxu0 %v12964_v25  ;;  %v2056_v25 = vld [vmem:[#allocation1 + $0x12] sm:$0xff] }
  0xd0   : > { %7929 = vmatpush.bf16.msrb.mxu1 %v12972_v26  ;;  %v2055_v26 = vld [vmem:[#allocation1 + $0x9] sm:$0xff] }
  0xd1   : > { %7942 = vmatpush.bf16.msrb.mxu2 %v12980_v27  ;;  %v2057_v27 = vld [vmem:[#allocation1 + $0x1b] sm:$0xff] }
  0xd2   : > { %7955 = vmatpush.bf16.msrb.mxu3 %v12988_v28  ;;  %v13033_v28 = vld [vmem:[%s13845_s25 + $0x730] sm:$0xff] }
  0xd3   : > { %7917 = vmatpush.bf16.msrb.mxu0 %v12963_v36  ;;  %v7711_v52 = vpop.f32.mrf.mxu0 }
  0xd4   : > { %7930 = vmatpush.bf16.msrb.mxu1 %v12971_v37  ;;  %v7712_v55 = vadd.f32 %v7711_v52, %v14033_v21  ;;  %v7724_v56 = vpop.f32.mrf.mxu1  ;;  %v13042_v21 = vld [vmem:[%s13845_s25 + $0x778] sm:$0xff] }
  0xd5   : > { %7943 = vmatpush.bf16.msrb.mxu2 %v12979_v38  ;;  %v13031_v38 = vld [vmem:[%s13845_s25 + $0x720] sm:$0xff] }
  0xd6   : > { %7956 = vmatpush.bf16.msrb.mxu3 %v12987_v39  ;;  %7918 = vmatmul.bf16.vlgmr.msrb.gmra.mxu0 %v2048_v29  ;;  %v7725_v59 = vadd.f32 %v7724_v56, %v7712_v55  ;;  %v13041_v29 = vld [vmem:[%s13845_s25 + $0x770] sm:$0xff]  ;;  %v13039_v39 = vld [vmem:[%s13845_s25 + $0x760] sm:$0xff] }
  0xd7   : > { %7962 = vmatpush.bf16.msra.mxu0 %v13002_v40  ;;  %7931 = vmatmul.bf16.vlgmr.msrb.gmra.mxu1 %v2049_v32  ;;  %v13032_v32 = vld [vmem:[%s13845_s25 + $0x728] sm:$0xff]  ;;  %v13045_v56 = vld [vmem:[%s13845_s25 + $0x790] sm:$0xff] }
  0xd8   : > { %7975 = vmatpush.bf16.msra.mxu1 %v13010_v41  ;;  %7944 = vmatmul.bf16.vlgmr.msrb.gmra.mxu2 %v2050_v30  ;;  %v13049_v30 = vld [vmem:[%s13845_s25 + $0x7b0] sm:$0xff]  ;;  %v13047_v41 = vld [vmem:[%s13845_s25 + $0x7a0] sm:$0xff] }
  0xd9   : > { %7988 = vmatpush.bf16.msra.mxu2 %v13018_v42  ;;  %7957 = vmatmul.bf16.vlgmr.msrb.gmra.mxu3 %v2051_v33  ;;  %v13040_v33 = vld [vmem:[%s13845_s25 + $0x768] sm:$0xff]  ;;  %v13055_v42 = vld [vmem:[%s13845_s25 + $0x7e0] sm:$0xff] }
  0xda   : > { %8001 = vmatpush.bf16.msra.mxu3 %v13026_v43 }
  0xdb   : > { %7963 = vmatpush.bf16.msra.mxu0 %v13001_v44  ;;  %v7737_v0 = vpop.f32.mrf.mxu2  ;;  %v7713_v3 = vpop.f32.mrf.mxu0  ;;  %v13030_v44 = vld [vmem:[%s13845_s25 + $0x718] sm:$0xff] }
  0xdc   : > { %7976 = vmatpush.bf16.msra.mxu1 %v13009_v45  ;;  %v7738_v1 = vadd.f32 %v7737_v0, %v7725_v59  ;;  %v7750_v2 = vpop.f32.mrf.mxu3  ;;  %v7726_v7 = vpop.f32.mrf.mxu1  ;;  %v13038_v45 = vld [vmem:[%s13845_s25 + $0x758] sm:$0xff]  ;;  %v13036_v59 = vld [vmem:[%s13845_s25 + $0x748] sm:$0xff] }
  0xdd   : > { %7989 = vmatpush.bf16.msra.mxu2 %v13017_v46  ;;  %v13046_v46 = vld [vmem:[%s13845_s25 + $0x798] sm:$0xff]  ;;  %v13043_v7 = vld [vmem:[%s13845_s25 + $0x780] sm:$0xff] }
  0xde   : > { %8002 = vmatpush.bf16.msra.mxu3 %v13025_v47  ;;  %v7751_v6 = vadd.f32 %v7750_v2, %v7738_v1  ;;  %v13054_v47 = vld [vmem:[%s13845_s25 + $0x7d8] sm:$0xff]  ;;  %v2059_v1 = vld [vmem:[#allocation1 + $0x2d] sm:$0xff] }
  0xdf   : > { %7964 = vmatpush.bf16.msra.mxu0 %v13000_v48  ;;  %v2061_v2 = vld [vmem:[#allocation1 + $0x3f] sm:$0xff] }
  0xe0   : > { %7977 = vmatpush.bf16.msra.mxu1 %v13008_v49 }
  0xe1   : > { %7990 = vmatpush.bf16.msra.mxu2 %v13016_v50 }
  0xe2   : > { %8003 = vmatpush.bf16.msra.mxu3 %v13024_v51 }
  0xe3   : > { %7965 = vmatpush.bf16.msra.mxu0 %v12999_v53  ;;  %v7739_v14 = vpop.f32.mrf.mxu2  ;;  %v13029_v53 = vld [vmem:[%s13845_s25 + $0x710] sm:$0xff] }
  0xe4   : > { %7978 = vmatpush.bf16.msra.mxu1 %v13007_v54  ;;  %v7752_v15 = vpop.f32.mrf.mxu3  ;;  %v13037_v54 = vld [vmem:[%s13845_s25 + $0x750] sm:$0xff] }
  0xe5   : > { %7991 = vmatpush.bf16.msra.mxu2 %v13015_v57  ;;  %v13053_v57 = vld [vmem:[%s13845_s25 + $0x7d0] sm:$0xff] }
  0xe6   : > { %8004 = vmatpush.bf16.msra.mxu3 %v13023_v58  ;;  %v13028_v58 = vld [vmem:[%s13845_s25 + $0x708] sm:$0xff]  ;;  %v13073_v14 = vld [vmem:[%s13845_s25 + $0x870] sm:$0xff] }
  0xe7   : > { %7966 = vmatpush.bf16.msra.mxu0 %v12998_v60  ;;  %v13044_v60 = vld [vmem:[%s13845_s25 + $0x788] sm:$0xff]  ;;  %v13081_v15 = vld [vmem:[%s13845_s25 + $0x8b0] sm:$0xff] }
  0xe8   : > { %7979 = vmatpush.bf16.msra.mxu1 %v13006_v61  ;;  %v13052_v61 = vld [vmem:[%s13845_s25 + $0x7c8] sm:$0xff] }
  0xe9   : > { %7992 = vmatpush.bf16.msra.mxu2 %v13014_v62  ;;  %v2058_v62 = vld [vmem:[#allocation1 + $0x24] sm:$0xff] }
  0xea   : > { %8005 = vmatpush.bf16.msra.mxu3 %v13022_v63  ;;  %v2060_v63 = vld [vmem:[#allocation1 + $0x36] sm:$0xff] }
  0xeb   : > { %7967 = vmatpush.bf16.msra.mxu0 %v12997_v4  ;;  %v220_v4 = vld [vmem:[%s13840_s21 + $0x20] sm:$0xff] }
  0xec   : > { %7980 = vmatpush.bf16.msra.mxu1 %v13005_v5  ;;  %2063 = vst [vmem:[#allocation1] ss:$9 sm:$0xff] %v220_v4  ;;  %v13027_v5 = vld [vmem:[%s13845_s25 + $0x700] sm:$0xff]  ;;  %v13120_v4 = vld [vmem:[%s13845_s25 + $0x9e8] sm:$0xff] }
  0xed   : > { %7993 = vmatpush.bf16.msra.mxu2 %v13013_v8  ;;  %v13051_v8 = vld [vmem:[%s13845_s25 + $0x7c0] sm:$0xff] }
  0xee   : > { %8006 = vmatpush.bf16.msra.mxu3 %v13021_v9  ;;  %v13066_v9 = vld [vmem:[%s13845_s25 + $0x838] sm:$0xff] }
  0xef   : > { %7968 = vmatpush.bf16.msra.mxu0 %v12996_v10  ;;  %v13074_v10 = vld [vmem:[%s13845_s25 + $0x878] sm:$0xff] }
  0xf0   : > { %7981 = vmatpush.bf16.msra.mxu1 %v13004_v11  ;;  %v13082_v11 = vld [vmem:[%s13845_s25 + $0x8b8] sm:$0xff] }
  0xf1   : > { %7994 = vmatpush.bf16.msra.mxu2 %v13012_v12  ;;  %v13090_v12 = vld [vmem:[%s13845_s25 + $0x8f8] sm:$0xff] }
  0xf2   : > { %8007 = vmatpush.bf16.msra.mxu3 %v13020_v13  ;;  %v13065_v13 = vld [vmem:[%s13845_s25 + $0x830] sm:$0xff] }
  0xf3   : > { %7969 = vmatpush.bf16.msra.mxu0 %v12995_v16  ;;  %v7763_v36 = vpop.f32.mrf.mxu0  ;;  %v13089_v16 = vld [vmem:[%s13845_s25 + $0x8f0] sm:$0xff] }
  0xf4   : > { %7982 = vmatpush.bf16.msra.mxu1 %v13003_v17  ;;  %v7764_v37 = vadd.f32 %v7763_v36, %v7751_v6  ;;  %v7776_v40 = vpop.f32.mrf.mxu1  ;;  %v13035_v6 = vld [vmem:[%s13845_s25 + $0x740] sm:$0xff]  ;;  %v13064_v17 = vld [vmem:[%s13845_s25 + $0x828] sm:$0xff] }
  0xf5   : > { %7995 = vmatpush.bf16.msra.mxu2 %v13011_v18  ;;  %v13072_v18 = vld [vmem:[%s13845_s25 + $0x868] sm:$0xff] }
  0xf6   : > { %8008 = vmatpush.bf16.msra.mxu3 %v13019_v19  ;;  %7970 = vmatmul.bf16.vlgmr.msra.gmra.mxu0 %v2054_v24  ;;  %v7777_v43 = vadd.f32 %v7776_v40, %v7764_v37  ;;  %v13080_v19 = vld [vmem:[%s13845_s25 + $0x8a8] sm:$0xff]  ;;  %v13071_v24 = vld [vmem:[%s13845_s25 + $0x860] sm:$0xff] }
  0xf7   : > { %8014 = vmatpush.bf16.msrb.mxu0 %v13034_v20  ;;  %7983 = vmatmul.bf16.vlgmr.msra.gmra.mxu1 %v2055_v26  ;;  %v13088_v20 = vld [vmem:[%s13845_s25 + $0x8e8] sm:$0xff]  ;;  %v13079_v26 = vld [vmem:[%s13845_s25 + $0x8a0] sm:$0xff] }
  0xf8   : > { %8027 = vmatpush.bf16.msrb.mxu1 %v13042_v21  ;;  %7996 = vmatmul.bf16.vlgmr.msra.gmra.mxu2 %v2056_v25 }
  0xf9   : > { %8040 = vmatpush.bf16.msrb.mxu2 %v13050_v22  ;;  %8009 = vmatmul.bf16.vlgmr.msra.gmra.mxu3 %v2057_v27  ;;  %v13087_v27 = vld [vmem:[%s13845_s25 + $0x8e0] sm:$0xff] }
  0xfa   : > { %8053 = vmatpush.bf16.msrb.mxu3 %v13058_v23  ;;  %v13063_v23 = vld [vmem:[%s13845_s25 + $0x820] sm:$0xff] }
  0xfb   : > { %8015 = vmatpush.bf16.msrb.mxu0 %v13033_v28  ;;  %v7789_v48 = vpop.f32.mrf.mxu2  ;;  %v7765_v51 = vpop.f32.mrf.mxu0 }
  0xfc   : > { %8028 = vmatpush.bf16.msrb.mxu1 %v13041_v29  ;;  %v7790_v49 = vadd.f32 %v7789_v48, %v7777_v43  ;;  %v7802_v50 = vpop.f32.mrf.mxu3  ;;  %v7778_v55 = vpop.f32.mrf.mxu1  ;;  %v13062_v29 = vld [vmem:[%s13845_s25 + $0x818] sm:$0xff]  ;;  %v13060_v43 = vld [vmem:[%s13845_s25 + $0x808] sm:$0xff]  ;;  %v13075_v51 = vld [vmem:[%s13845_s25 + $0x880] sm:$0xff] }
  0xfd   : > { %8041 = vmatpush.bf16.msrb.mxu2 %v13049_v30  ;;  %v13070_v30 = vld [vmem:[%s13845_s25 + $0x858] sm:$0xff] }
  0xfe   : > { %8054 = vmatpush.bf16.msrb.mxu3 %v13057_v31  ;;  %v14099_v52 = vadd.f32 %v7802_v50, %v7790_v49  ;;  %v13078_v31 = vld [vmem:[%s13845_s25 + $0x898] sm:$0xff]  ;;  %v13059_v49 = vld [vmem:[%s13845_s25 + $0x800] sm:$0xff] }
  0xff   : > { %8016 = vmatpush.bf16.msrb.mxu0 %v13032_v32  ;;  %v13086_v32 = vld [vmem:[%s13845_s25 + $0x8d8] sm:$0xff]  ;;  %v13067_v50 = vld [vmem:[%s13845_s25 + $0x840] sm:$0xff] }
 0x100   : > { %8029 = vmatpush.bf16.msrb.mxu1 %v13040_v33  ;;  %v13114_v55 = vld [vmem:[%s13845_s25 + $0x9b8] sm:$0xff] }
 0x101   : > { %8042 = vmatpush.bf16.msrb.mxu2 %v13048_v34 }
 0x102   : > { %8055 = vmatpush.bf16.msrb.mxu3 %v13056_v35 }
 0x103   : > { %8017 = vmatpush.bf16.msrb.mxu0 %v13031_v38  ;;  %v7791_v0 = vpop.f32.mrf.mxu2  ;;  %v13061_v38 = vld [vmem:[%s13845_s25 + $0x810] sm:$0xff] }
 0x104   : > { %8030 = vmatpush.bf16.msrb.mxu1 %v13039_v39  ;;  %v7804_v3 = vpop.f32.mrf.mxu3  ;;  %v13069_v39 = vld [vmem:[%s13845_s25 + $0x850] sm:$0xff] }
 0x105   : > { %8043 = vmatpush.bf16.msrb.mxu2 %v13047_v41  ;;  %v13077_v41 = vld [vmem:[%s13845_s25 + $0x890] sm:$0xff]  ;;  %v13112_v3 = vld [vmem:[%s13845_s25 + $0x9a8] sm:$0xff] }
 0x106   : > { %8056 = vmatpush.bf16.msrb.mxu3 %v13055_v42  ;;  %v13085_v42 = vld [vmem:[%s13845_s25 + $0x8d0] sm:$0xff] }
 0x107   : > { %8018 = vmatpush.bf16.msrb.mxu0 %v13030_v44  ;;  %v13068_v44 = vld [vmem:[%s13845_s25 + $0x848] sm:$0xff]  ;;  %v13121_v0 = vld [vmem:[%s13845_s25 + $0x9f0] sm:$0xff] }
 0x108   : > { %8031 = vmatpush.bf16.msrb.mxu1 %v13038_v45  ;;  %v13076_v45 = vld [vmem:[%s13845_s25 + $0x888] sm:$0xff] }
 0x109   : > { %8044 = vmatpush.bf16.msrb.mxu2 %v13046_v46  ;;  %v13084_v46 = vld [vmem:[%s13845_s25 + $0x8c8] sm:$0xff] }
 0x10a   : > { %8057 = vmatpush.bf16.msrb.mxu3 %v13054_v47 }
 0x10b   : > { %8019 = vmatpush.bf16.msrb.mxu0 %v13029_v53  ;;  %v13098_v53 = vld [vmem:[%s13845_s25 + $0x938] sm:$0xff] }
 0x10c   : > { %8032 = vmatpush.bf16.msrb.mxu1 %v13037_v54  ;;  %v13106_v54 = vld [vmem:[%s13845_s25 + $0x978] sm:$0xff] }
 0x10d   : > { %8045 = vmatpush.bf16.msrb.mxu2 %v13045_v56  ;;  %v13122_v56 = vld [vmem:[%s13845_s25 + $0x9f8] sm:$0xff] }
 0x10e   : > { %8058 = vmatpush.bf16.msrb.mxu3 %v13053_v57  ;;  %v2064_v57 = vld [vmem:[#allocation1] sm:$0xff] }
 0x10f   : > { %8020 = vmatpush.bf16.msrb.mxu0 %v13028_v58  ;;  %v2066_v58 = vld [vmem:[#allocation1 + $0x12] sm:$0xff] }
 0x110   : > { %8033 = vmatpush.bf16.msrb.mxu1 %v13036_v59  ;;  %v2065_v59 = vld [vmem:[#allocation1 + $0x9] sm:$0xff] }
 0x111   : > { %8046 = vmatpush.bf16.msrb.mxu2 %v13044_v60  ;;  %v2067_v60 = vld [vmem:[#allocation1 + $0x1b] sm:$0xff] }
 0x112   : > { %8059 = vmatpush.bf16.msrb.mxu3 %v13052_v61  ;;  %v13097_v61 = vld [vmem:[%s13845_s25 + $0x930] sm:$0xff] }
 0x113   : > { %8021 = vmatpush.bf16.msrb.mxu0 %v13027_v5  ;;  %v7815_v21 = vpop.f32.mrf.mxu0 }
 0x114   : > { %8034 = vmatpush.bf16.msrb.mxu1 %v13035_v6  ;;  %v7816_v22 = vadd.f32 %v7815_v21, %v14099_v52  ;;  %v7828_v25 = vpop.f32.mrf.mxu1  ;;  %v13083_v52 = vld [vmem:[%s13845_s25 + $0x8c0] sm:$0xff] }
 0x115   : > { %8047 = vmatpush.bf16.msrb.mxu2 %v13043_v7  ;;  %v13095_v7 = vld [vmem:[%s13845_s25 + $0x920] sm:$0xff] }
 0x116   : > { %8060 = vmatpush.bf16.msrb.mxu3 %v13051_v8  ;;  %8022 = vmatmul.bf16.vlgmr.msrb.gmra.mxu0 %v2058_v62  ;;  %v7829_v28 = vadd.f32 %v7828_v25, %v7816_v22  ;;  %v13105_v62 = vld [vmem:[%s13845_s25 + $0x970] sm:$0xff]  ;;  %v13103_v8 = vld [vmem:[%s13845_s25 + $0x960] sm:$0xff] }
 0x117   : > { %8066 = vmatpush.bf16.msra.mxu0 %v13066_v9  ;;  %8035 = vmatmul.bf16.vlgmr.msrb.gmra.mxu1 %v2059_v1  ;;  %v13096_v1 = vld [vmem:[%s13845_s25 + $0x928] sm:$0xff]  ;;  %v13093_v22 = vld [vmem:[%s13845_s25 + $0x910] sm:$0xff] }
 0x118   : > { %8079 = vmatpush.bf16.msra.mxu1 %v13074_v10  ;;  %8048 = vmatmul.bf16.vlgmr.msrb.gmra.mxu2 %v2060_v63  ;;  %v13113_v63 = vld [vmem:[%s13845_s25 + $0x9b0] sm:$0xff]  ;;  %v13111_v10 = vld [vmem:[%s13845_s25 + $0x9a0] sm:$0xff] }
 0x119   : > { %8092 = vmatpush.bf16.msra.mxu2 %v13082_v11  ;;  %8061 = vmatmul.bf16.vlgmr.msrb.gmra.mxu3 %v2061_v2  ;;  %v13104_v2 = vld [vmem:[%s13845_s25 + $0x968] sm:$0xff]  ;;  %v13119_v11 = vld [vmem:[%s13845_s25 + $0x9e0] sm:$0xff]  ;;  %v13109_v25 = vld [vmem:[%s13845_s25 + $0x990] sm:$0xff] }
 0x11a   : > { %8105 = vmatpush.bf16.msra.mxu3 %v13090_v12 }
 0x11b   : > { %8067 = vmatpush.bf16.msra.mxu0 %v13065_v13  ;;  %v7841_v33 = vpop.f32.mrf.mxu2  ;;  %v7817_v36 = vpop.f32.mrf.mxu0  ;;  %v13094_v13 = vld [vmem:[%s13845_s25 + $0x918] sm:$0xff] }
 0x11c   : > { %8080 = vmatpush.bf16.msra.mxu1 %v13073_v14  ;;  %v7842_v34 = vadd.f32 %v7841_v33, %v7829_v28  ;;  %v7854_v35 = vpop.f32.mrf.mxu3  ;;  %v7830_v40 = vpop.f32.mrf.mxu1  ;;  %v13102_v14 = vld [vmem:[%s13845_s25 + $0x958] sm:$0xff]  ;;  %v13100_v28 = vld [vmem:[%s13845_s25 + $0x948] sm:$0xff] }
 0x11d   : > { %8093 = vmatpush.bf16.msra.mxu2 %v13081_v15  ;;  %v13110_v15 = vld [vmem:[%s13845_s25 + $0x998] sm:$0xff]  ;;  %v13107_v40 = vld [vmem:[%s13845_s25 + $0x980] sm:$0xff] }
 0x11e   : > { %8106 = vmatpush.bf16.msra.mxu3 %v13089_v16  ;;  %v7855_v37 = vadd.f32 %v7854_v35, %v7842_v34  ;;  %v13118_v16 = vld [vmem:[%s13845_s25 + $0x9d8] sm:$0xff]  ;;  %v2069_v34 = vld [vmem:[#allocation1 + $0x2d] sm:$0xff] }
 0x11f   : > { %8068 = vmatpush.bf16.msra.mxu0 %v13064_v17  ;;  %v2071_v35 = vld [vmem:[#allocation1 + $0x3f] sm:$0xff] }
 0x120   : > { %8081 = vmatpush.bf16.msra.mxu1 %v13072_v18 }
 0x121   : > { %8094 = vmatpush.bf16.msra.mxu2 %v13080_v19 }
 0x122   : > { %8107 = vmatpush.bf16.msra.mxu3 %v13088_v20 }
 0x123   : > { %8069 = vmatpush.bf16.msra.mxu0 %v13063_v23  ;;  %v7843_v47 = vpop.f32.mrf.mxu2  ;;  %v13101_v23 = vld [vmem:[%s13845_s25 + $0x950] sm:$0xff] }
 0x124   : > { %8082 = vmatpush.bf16.msra.mxu1 %v13071_v24  ;;  %v7856_v48 = vpop.f32.mrf.mxu3  ;;  %v13137_v47 = vld [vmem:[%s13845_s25 + $0xa70] sm:$0xff] }
 0x125   : > { %8095 = vmatpush.bf16.msra.mxu2 %v13079_v26  ;;  %v13117_v26 = vld [vmem:[%s13845_s25 + $0x9d0] sm:$0xff] }
 0x126   : > { %8108 = vmatpush.bf16.msra.mxu3 %v13087_v27  ;;  %v13092_v27 = vld [vmem:[%s13845_s25 + $0x908] sm:$0xff]  ;;  %v13145_v48 = vld [vmem:[%s13845_s25 + $0xab0] sm:$0xff] }
 0x127   : > { %8070 = vmatpush.bf16.msra.mxu0 %v13062_v29  ;;  %v13108_v29 = vld [vmem:[%s13845_s25 + $0x988] sm:$0xff] }
 0x128   : > { %8083 = vmatpush.bf16.msra.mxu1 %v13070_v30  ;;  %v13116_v30 = vld [vmem:[%s13845_s25 + $0x9c8] sm:$0xff] }
 0x129   : > { %8096 = vmatpush.bf16.msra.mxu2 %v13078_v31  ;;  %v2068_v31 = vld [vmem:[#allocation1 + $0x24] sm:$0xff] }
 0x12a   : > { %8109 = vmatpush.bf16.msra.mxu3 %v13086_v32  ;;  %v2070_v32 = vld [vmem:[#allocation1 + $0x36] sm:$0xff] }
 0x12b   : > { %8071 = vmatpush.bf16.msra.mxu0 %v13061_v38  ;;  %v13091_v38 = vld [vmem:[%s13845_s25 + $0x900] sm:$0xff] }
 0x12c   : > { %8084 = vmatpush.bf16.msra.mxu1 %v13069_v39  ;;  %v13099_v39 = vld [vmem:[%s13845_s25 + $0x940] sm:$0xff] }
 0x12d   : > { %8097 = vmatpush.bf16.msra.mxu2 %v13077_v41  ;;  %v13115_v41 = vld [vmem:[%s13845_s25 + $0x9c0] sm:$0xff] }
 0x12e   : > { %8110 = vmatpush.bf16.msra.mxu3 %v13085_v42  ;;  %v13130_v42 = vld [vmem:[%s13845_s25 + $0xa38] sm:$0xff] }
 0x12f   : > { %8072 = vmatpush.bf16.msra.mxu0 %v13060_v43  ;;  %v13138_v43 = vld [vmem:[%s13845_s25 + $0xa78] sm:$0xff] }
 0x130   : > { %8085 = vmatpush.bf16.msra.mxu1 %v13068_v44  ;;  %v13146_v44 = vld [vmem:[%s13845_s25 + $0xab8] sm:$0xff] }
 0x131   : > { %8098 = vmatpush.bf16.msra.mxu2 %v13076_v45  ;;  %v13154_v45 = vld [vmem:[%s13845_s25 + $0xaf8] sm:$0xff] }
 0x132   : > { %8111 = vmatpush.bf16.msra.mxu3 %v13084_v46  ;;  %v13129_v46 = vld [vmem:[%s13845_s25 + $0xa30] sm:$0xff] }
 0x133   : > { %8073 = vmatpush.bf16.msra.mxu0 %v13059_v49  ;;  %v7867_v5 = vpop.f32.mrf.mxu0  ;;  %v13153_v49 = vld [vmem:[%s13845_s25 + $0xaf0] sm:$0xff] }
 0x134   : > { %8086 = vmatpush.bf16.msra.mxu1 %v13067_v50  ;;  %v7868_v6 = vadd.f32 %v7867_v5, %v7855_v37  ;;  %v7880_v9 = vpop.f32.mrf.mxu1  ;;  %v221_v37 = vld [vmem:[%s13840_s21 + $0x28] sm:$0xff] }
 0x135   : > { %8099 = vmatpush.bf16.msra.mxu2 %v13075_v51  ;;  %2073 = vst [vmem:[#allocation1] ss:$9 sm:$0xff] %v221_v37  ;;  %v13128_v50 = vld [vmem:[%s13845_s25 + $0xa28] sm:$0xff] }
 0x136   : > { %8112 = vmatpush.bf16.msra.mxu3 %v13083_v52  ;;  %8074 = vmatmul.bf16.vlgmr.msra.gmra.mxu0 %v2064_v57  ;;  %v7881_v12 = vadd.f32 %v7880_v9, %v7868_v6  ;;  %v13136_v51 = vld [vmem:[%s13845_s25 + $0xa68] sm:$0xff]  ;;  %v13135_v57 = vld [vmem:[%s13845_s25 + $0xa60] sm:$0xff] }
 0x137   : > { %8118 = vmatpush.bf16.msrb.mxu0 %v13098_v53  ;;  %8087 = vmatmul.bf16.vlgmr.msra.gmra.mxu1 %v2065_v59  ;;  %v13144_v52 = vld [vmem:[%s13845_s25 + $0xaa8] sm:$0xff]  ;;  %v13143_v59 = vld [vmem:[%s13845_s25 + $0xaa0] sm:$0xff] }
 0x138   : > { %8131 = vmatpush.bf16.msrb.mxu1 %v13106_v54  ;;  %8100 = vmatmul.bf16.vlgmr.msra.gmra.mxu2 %v2066_v58  ;;  %v13152_v53 = vld [vmem:[%s13845_s25 + $0xae8] sm:$0xff] }
 0x139   : > { %8144 = vmatpush.bf16.msrb.mxu2 %v13114_v55  ;;  %8113 = vmatmul.bf16.vlgmr.msra.gmra.mxu3 %v2067_v60  ;;  %v13151_v60 = vld [vmem:[%s13845_s25 + $0xae0] sm:$0xff]  ;;  %v13184_v37 = vld [vmem:[%s13845_s25 + $0xbe8] sm:$0xff] }
 0x13a   : > { %8157 = vmatpush.bf16.msrb.mxu3 %v13122_v56  ;;  %v13127_v56 = vld [vmem:[%s13845_s25 + $0xa20] sm:$0xff] }
 0x13b   : > { %8119 = vmatpush.bf16.msrb.mxu0 %v13097_v61  ;;  %v7893_v17 = vpop.f32.mrf.mxu2  ;;  %v7869_v20 = vpop.f32.mrf.mxu0 }
 0x13c   : > { %8132 = vmatpush.bf16.msrb.mxu1 %v13105_v62  ;;  %v7894_v18 = vadd.f32 %v7893_v17, %v7881_v12  ;;  %v7906_v19 = vpop.f32.mrf.mxu3  ;;  %v7882_v24 = vpop.f32.mrf.mxu1  ;;  %v13126_v62 = vld [vmem:[%s13845_s25 + $0xa18] sm:$0xff]  ;;  %v13124_v12 = vld [vmem:[%s13845_s25 + $0xa08] sm:$0xff]  ;;  %v13139_v20 = vld [vmem:[%s13845_s25 + $0xa80] sm:$0xff] }
 0x13d   : > { %8145 = vmatpush.bf16.msrb.mxu2 %v13113_v63  ;;  %v13134_v63 = vld [vmem:[%s13845_s25 + $0xa58] sm:$0xff] }
 0x13e   : > { %8158 = vmatpush.bf16.msrb.mxu3 %v13121_v0  ;;  %v14167_v21 = vadd.f32 %v7906_v19, %v7894_v18  ;;  %v13142_v0 = vld [vmem:[%s13845_s25 + $0xa98] sm:$0xff]  ;;  %v13123_v18 = vld [vmem:[%s13845_s25 + $0xa00] sm:$0xff] }
 0x13f   : > { %8120 = vmatpush.bf16.msrb.mxu0 %v13096_v1  ;;  %v13150_v1 = vld [vmem:[%s13845_s25 + $0xad8] sm:$0xff]  ;;  %v13131_v19 = vld [vmem:[%s13845_s25 + $0xa40] sm:$0xff] }
 0x140   : > { %8133 = vmatpush.bf16.msrb.mxu1 %v13104_v2  ;;  %v13178_v24 = vld [vmem:[%s13845_s25 + $0xbb8] sm:$0xff] }
 0x141   : > { %8146 = vmatpush.bf16.msrb.mxu2 %v13112_v3 }
 0x142   : > { %8159 = vmatpush.bf16.msrb.mxu3 %v13120_v4 }
 0x143   : > { %8121 = vmatpush.bf16.msrb.mxu0 %v13095_v7  ;;  %v7895_v33 = vpop.f32.mrf.mxu2  ;;  %v13125_v7 = vld [vmem:[%s13845_s25 + $0xa10] sm:$0xff] }
 0x144   : > { %8134 = vmatpush.bf16.msrb.mxu1 %v13103_v8  ;;  %v7908_v36 = vpop.f32.mrf.mxu3  ;;  %v13133_v8 = vld [vmem:[%s13845_s25 + $0xa50] sm:$0xff] }
 0x145   : > { %8147 = vmatpush.bf16.msrb.mxu2 %v13111_v10  ;;  %v13141_v10 = vld [vmem:[%s13845_s25 + $0xa90] sm:$0xff]  ;;  %v13176_v36 = vld [vmem:[%s13845_s25 + $0xba8] sm:$0xff] }
 0x146   : > { %8160 = vmatpush.bf16.msrb.mxu3 %v13119_v11  ;;  %v13149_v11 = vld [vmem:[%s13845_s25 + $0xad0] sm:$0xff] }
 0x147   : > { %8122 = vmatpush.bf16.msrb.mxu0 %v13094_v13  ;;  %v13132_v13 = vld [vmem:[%s13845_s25 + $0xa48] sm:$0xff]  ;;  %v13185_v33 = vld [vmem:[%s13845_s25 + $0xbf0] sm:$0xff] }
 0x148   : > { %8135 = vmatpush.bf16.msrb.mxu1 %v13102_v14  ;;  %v13140_v14 = vld [vmem:[%s13845_s25 + $0xa88] sm:$0xff] }
 0x149   : > { %8148 = vmatpush.bf16.msrb.mxu2 %v13110_v15  ;;  %v13148_v15 = vld [vmem:[%s13845_s25 + $0xac8] sm:$0xff] }
 0x14a   : > { %8161 = vmatpush.bf16.msrb.mxu3 %v13118_v16 }
 0x14b   : > { %8123 = vmatpush.bf16.msrb.mxu0 %v13093_v22  ;;  %v13162_v22 = vld [vmem:[%s13845_s25 + $0xb38] sm:$0xff] }
 0x14c   : > { %8136 = vmatpush.bf16.msrb.mxu1 %v13101_v23  ;;  %v13170_v23 = vld [vmem:[%s13845_s25 + $0xb78] sm:$0xff] }
 0x14d   : > { %8149 = vmatpush.bf16.msrb.mxu2 %v13109_v25  ;;  %v13186_v25 = vld [vmem:[%s13845_s25 + $0xbf8] sm:$0xff] }
 0x14e   : > { %8162 = vmatpush.bf16.msrb.mxu3 %v13117_v26  ;;  %v2074_v26 = vld [vmem:[#allocation1] sm:$0xff] }
 0x14f   : > { %8124 = vmatpush.bf16.msrb.mxu0 %v13092_v27  ;;  %v2076_v27 = vld [vmem:[#allocation1 + $0x12] sm:$0xff] }
 0x150   : > { %8137 = vmatpush.bf16.msrb.mxu1 %v13100_v28  ;;  %v2075_v28 = vld [vmem:[#allocation1 + $0x9] sm:$0xff] }
 0x151   : > { %8150 = vmatpush.bf16.msrb.mxu2 %v13108_v29  ;;  %v2077_v29 = vld [vmem:[#allocation1 + $0x1b] sm:$0xff] }
 0x152   : > { %8163 = vmatpush.bf16.msrb.mxu3 %v13116_v30  ;;  %v13161_v30 = vld [vmem:[%s13845_s25 + $0xb30] sm:$0xff] }
 0x153   : > { %8125 = vmatpush.bf16.msrb.mxu0 %v13091_v38  ;;  %v7919_v54 = vpop.f32.mrf.mxu0 }
 0x154   : > { %8138 = vmatpush.bf16.msrb.mxu1 %v13099_v39  ;;  %v7920_v55 = vadd.f32 %v7919_v54, %v14167_v21  ;;  %v7932_v58 = vpop.f32.mrf.mxu1  ;;  %v13147_v21 = vld [vmem:[%s13845_s25 + $0xac0] sm:$0xff] }
 0x155   : > { %8151 = vmatpush.bf16.msrb.mxu2 %v13107_v40  ;;  %v13159_v40 = vld [vmem:[%s13845_s25 + $0xb20] sm:$0xff] }
 0x156   : > { %8164 = vmatpush.bf16.msrb.mxu3 %v13115_v41  ;;  %8126 = vmatmul.bf16.vlgmr.msrb.gmra.mxu0 %v2068_v31  ;;  %v7933_v61 = vadd.f32 %v7932_v58, %v7920_v55  ;;  %v13169_v31 = vld [vmem:[%s13845_s25 + $0xb70] sm:$0xff]  ;;  %v13167_v41 = vld [vmem:[%s13845_s25 + $0xb60] sm:$0xff] }
 0x157   : > { %8170 = vmatpush.bf16.msra.mxu0 %v13130_v42  ;;  %8139 = vmatmul.bf16.vlgmr.msrb.gmra.mxu1 %v2069_v34  ;;  %v13160_v34 = vld [vmem:[%s13845_s25 + $0xb28] sm:$0xff]  ;;  %v13157_v55 = vld [vmem:[%s13845_s25 + $0xb10] sm:$0xff] }
 0x158   : > { %8183 = vmatpush.bf16.msra.mxu1 %v13138_v43  ;;  %8152 = vmatmul.bf16.vlgmr.msrb.gmra.mxu2 %v2070_v32  ;;  %v13177_v32 = vld [vmem:[%s13845_s25 + $0xbb0] sm:$0xff]  ;;  %v13175_v43 = vld [vmem:[%s13845_s25 + $0xba0] sm:$0xff] }
 0x159   : > { %8196 = vmatpush.bf16.msra.mxu2 %v13146_v44  ;;  %8165 = vmatmul.bf16.vlgmr.msrb.gmra.mxu3 %v2071_v35  ;;  %v13168_v35 = vld [vmem:[%s13845_s25 + $0xb68] sm:$0xff]  ;;  %v13183_v44 = vld [vmem:[%s13845_s25 + $0xbe0] sm:$0xff]  ;;  %v13173_v58 = vld [vmem:[%s13845_s25 + $0xb90] sm:$0xff] }
 0x15a   : > { %8209 = vmatpush.bf16.msra.mxu3 %v13154_v45 }
 0x15b   : > { %8171 = vmatpush.bf16.msra.mxu0 %v13129_v46  ;;  %v7945_v2 = vpop.f32.mrf.mxu2  ;;  %v7921_v5 = vpop.f32.mrf.mxu0  ;;  %v13158_v46 = vld [vmem:[%s13845_s25 + $0xb18] sm:$0xff] }
 0x15c   : > { %8184 = vmatpush.bf16.msra.mxu1 %v13137_v47  ;;  %v7946_v3 = vadd.f32 %v7945_v2, %v7933_v61  ;;  %v7958_v4 = vpop.f32.mrf.mxu3  ;;  %v7934_v9 = vpop.f32.mrf.mxu1  ;;  %v13166_v47 = vld [vmem:[%s13845_s25 + $0xb58] sm:$0xff]  ;;  %v13164_v61 = vld [vmem:[%s13845_s25 + $0xb48] sm:$0xff] }
 0x15d   : > { %8197 = vmatpush.bf16.msra.mxu2 %v13145_v48  ;;  %v13174_v48 = vld [vmem:[%s13845_s25 + $0xb98] sm:$0xff]  ;;  %v13171_v9 = vld [vmem:[%s13845_s25 + $0xb80] sm:$0xff] }
 0x15e   : > { %8210 = vmatpush.bf16.msra.mxu3 %v13153_v49  ;;  %v7959_v6 = vadd.f32 %v7958_v4, %v7946_v3  ;;  %v13182_v49 = vld [vmem:[%s13845_s25 + $0xbd8] sm:$0xff]  ;;  %v2079_v3 = vld [vmem:[#allocation1 + $0x2d] sm:$0xff] }
 0x15f   : > { %8172 = vmatpush.bf16.msra.mxu0 %v13128_v50  ;;  %v2081_v4 = vld [vmem:[#allocation1 + $0x3f] sm:$0xff] }
 0x160   : > { %8185 = vmatpush.bf16.msra.mxu1 %v13136_v51 }
 0x161   : > { %8198 = vmatpush.bf16.msra.mxu2 %v13144_v52 }
 0x162   : > { %8211 = vmatpush.bf16.msra.mxu3 %v13152_v53 }
 0x163   : > { %8173 = vmatpush.bf16.msra.mxu0 %v13127_v56  ;;  %v7947_v16 = vpop.f32.mrf.mxu2  ;;  %v13165_v56 = vld [vmem:[%s13845_s25 + $0xb50] sm:$0xff] }
 0x164   : > { %8186 = vmatpush.bf16.msra.mxu1 %v13135_v57  ;;  %v7960_v17 = vpop.f32.mrf.mxu3  ;;  %v13201_v16 = vld [vmem:[%s13845_s25 + $0xc70] sm:$0xff] }
 0x165   : > { %8199 = vmatpush.bf16.msra.mxu2 %v13143_v59  ;;  %v13181_v59 = vld [vmem:[%s13845_s25 + $0xbd0] sm:$0xff] }
 0x166   : > { %8212 = vmatpush.bf16.msra.mxu3 %v13151_v60  ;;  %v13156_v60 = vld [vmem:[%s13845_s25 + $0xb08] sm:$0xff]  ;;  %v13209_v17 = vld [vmem:[%s13845_s25 + $0xcb0] sm:$0xff] }
 0x167   : > { %8174 = vmatpush.bf16.msra.mxu0 %v13126_v62  ;;  %v13172_v62 = vld [vmem:[%s13845_s25 + $0xb88] sm:$0xff] }
 0x168   : > { %8187 = vmatpush.bf16.msra.mxu1 %v13134_v63  ;;  %v13180_v63 = vld [vmem:[%s13845_s25 + $0xbc8] sm:$0xff] }
 0x169   : > { %8200 = vmatpush.bf16.msra.mxu2 %v13142_v0  ;;  %v2078_v0 = vld [vmem:[#allocation1 + $0x24] sm:$0xff] }
 0x16a   : > { %8213 = vmatpush.bf16.msra.mxu3 %v13150_v1  ;;  %v2080_v1 = vld [vmem:[#allocation1 + $0x36] sm:$0xff] }
 0x16b   : > { %8175 = vmatpush.bf16.msra.mxu0 %v13125_v7  ;;  %v13155_v7 = vld [vmem:[%s13845_s25 + $0xb00] sm:$0xff] }
 0x16c   : > { %8188 = vmatpush.bf16.msra.mxu1 %v13133_v8  ;;  %v13163_v8 = vld [vmem:[%s13845_s25 + $0xb40] sm:$0xff] }
 0x16d   : > { %8201 = vmatpush.bf16.msra.mxu2 %v13141_v10  ;;  %v13179_v10 = vld [vmem:[%s13845_s25 + $0xbc0] sm:$0xff] }
 0x16e   : > { %8214 = vmatpush.bf16.msra.mxu3 %v13149_v11  ;;  %v13194_v11 = vld [vmem:[%s13845_s25 + $0xc38] sm:$0xff] }
 0x16f   : > { %8176 = vmatpush.bf16.msra.mxu0 %v13124_v12  ;;  %v13202_v12 = vld [vmem:[%s13845_s25 + $0xc78] sm:$0xff] }
 0x170   : > { %8189 = vmatpush.bf16.msra.mxu1 %v13132_v13  ;;  %v13210_v13 = vld [vmem:[%s13845_s25 + $0xcb8] sm:$0xff] }
 0x171   : > { %8202 = vmatpush.bf16.msra.mxu2 %v13140_v14  ;;  %v13218_v14 = vld [vmem:[%s13845_s25 + $0xcf8] sm:$0xff] }
 0x172   : > { %8215 = vmatpush.bf16.msra.mxu3 %v13148_v15  ;;  %v13193_v15 = vld [vmem:[%s13845_s25 + $0xc30] sm:$0xff] }
 0x173   : > { %8177 = vmatpush.bf16.msra.mxu0 %v13123_v18  ;;  %v7971_v38 = vpop.f32.mrf.mxu0  ;;  %v13217_v18 = vld [vmem:[%s13845_s25 + $0xcf0] sm:$0xff] }
 0x174   : > { %8190 = vmatpush.bf16.msra.mxu1 %v13131_v19  ;;  %v7972_v39 = vadd.f32 %v7971_v38, %v7959_v6  ;;  %v7984_v42 = vpop.f32.mrf.mxu1  ;;  %v222_v6 = vld [vmem:[%s13840_s21 + $0x30] sm:$0xff]  ;;  %v13192_v19 = vld [vmem:[%s13845_s25 + $0xc28] sm:$0xff] }
 0x175   : > { %8203 = vmatpush.bf16.msra.mxu2 %v13139_v20  ;;  %2083 = vst [vmem:[#allocation1] ss:$9 sm:$0xff] %v222_v6  ;;  %v13200_v20 = vld [vmem:[%s13845_s25 + $0xc68] sm:$0xff] }
 0x176   : > { %8216 = vmatpush.bf16.msra.mxu3 %v13147_v21  ;;  %8178 = vmatmul.bf16.vlgmr.msra.gmra.mxu0 %v2074_v26  ;;  %v7985_v45 = vadd.f32 %v7984_v42, %v7972_v39  ;;  %v13208_v21 = vld [vmem:[%s13845_s25 + $0xca8] sm:$0xff]  ;;  %v13199_v26 = vld [vmem:[%s13845_s25 + $0xc60] sm:$0xff] }
 0x177   : > { %8222 = vmatpush.bf16.msrb.mxu0 %v13162_v22  ;;  %8191 = vmatmul.bf16.vlgmr.msra.gmra.mxu1 %v2075_v28  ;;  %v13216_v22 = vld [vmem:[%s13845_s25 + $0xce8] sm:$0xff]  ;;  %v13207_v28 = vld [vmem:[%s13845_s25 + $0xca0] sm:$0xff] }
 0x178   : > { %8235 = vmatpush.bf16.msrb.mxu1 %v13170_v23  ;;  %8204 = vmatmul.bf16.vlgmr.msra.gmra.mxu2 %v2076_v27  ;;  %v13248_v6 = vld [vmem:[%s13845_s25 + $0xde8] sm:$0xff] }
 0x179   : > { %8248 = vmatpush.bf16.msrb.mxu2 %v13178_v24  ;;  %8217 = vmatmul.bf16.vlgmr.msra.gmra.mxu3 %v2077_v29  ;;  %v13215_v29 = vld [vmem:[%s13845_s25 + $0xce0] sm:$0xff] }
 0x17a   : > { %8261 = vmatpush.bf16.msrb.mxu3 %v13186_v25  ;;  %v13191_v25 = vld [vmem:[%s13845_s25 + $0xc20] sm:$0xff] }
 0x17b   : > { %8223 = vmatpush.bf16.msrb.mxu0 %v13161_v30  ;;  %v7997_v50 = vpop.f32.mrf.mxu2  ;;  %v7973_v53 = vpop.f32.mrf.mxu0 }
 0x17c   : > { %8236 = vmatpush.bf16.msrb.mxu1 %v13169_v31  ;;  %v7998_v51 = vadd.f32 %v7997_v50, %v7985_v45  ;;  %v8010_v52 = vpop.f32.mrf.mxu3  ;;  %v7986_v57 = vpop.f32.mrf.mxu1  ;;  %v13190_v31 = vld [vmem:[%s13845_s25 + $0xc18] sm:$0xff]  ;;  %v13188_v45 = vld [vmem:[%s13845_s25 + $0xc08] sm:$0xff]  ;;  %v13203_v53 = vld [vmem:[%s13845_s25 + $0xc80] sm:$0xff] }
 0x17d   : > { %8249 = vmatpush.bf16.msrb.mxu2 %v13177_v32  ;;  %v13198_v32 = vld [vmem:[%s13845_s25 + $0xc58] sm:$0xff] }
 0x17e   : > { %8262 = vmatpush.bf16.msrb.mxu3 %v13185_v33  ;;  %v14235_v54 = vadd.f32 %v8010_v52, %v7998_v51  ;;  %v13206_v33 = vld [vmem:[%s13845_s25 + $0xc98] sm:$0xff]  ;;  %v13187_v51 = vld [vmem:[%s13845_s25 + $0xc00] sm:$0xff] }
 0x17f   : > { %8224 = vmatpush.bf16.msrb.mxu0 %v13160_v34  ;;  %v13214_v34 = vld [vmem:[%s13845_s25 + $0xcd8] sm:$0xff]  ;;  %v13195_v52 = vld [vmem:[%s13845_s25 + $0xc40] sm:$0xff] }
 0x180   : > { %8237 = vmatpush.bf16.msrb.mxu1 %v13168_v35  ;;  %v13242_v57 = vld [vmem:[%s13845_s25 + $0xdb8] sm:$0xff] }
 0x181   : > { %8250 = vmatpush.bf16.msrb.mxu2 %v13176_v36 }
 0x182   : > { %8263 = vmatpush.bf16.msrb.mxu3 %v13184_v37 }
 0x183   : > { %8225 = vmatpush.bf16.msrb.mxu0 %v13159_v40  ;;  %v7999_v2 = vpop.f32.mrf.mxu2  ;;  %v13189_v40 = vld [vmem:[%s13845_s25 + $0xc10] sm:$0xff] }
 0x184   : > { %8238 = vmatpush.bf16.msrb.mxu1 %v13167_v41  ;;  %v8012_v5 = vpop.f32.mrf.mxu3  ;;  %v13197_v41 = vld [vmem:[%s13845_s25 + $0xc50] sm:$0xff] }
 0x185   : > { %8251 = vmatpush.bf16.msrb.mxu2 %v13175_v43  ;;  %v13205_v43 = vld [vmem:[%s13845_s25 + $0xc90] sm:$0xff]  ;;  %v13240_v5 = vld [vmem:[%s13845_s25 + $0xda8] sm:$0xff] }
 0x186   : > { %8264 = vmatpush.bf16.msrb.mxu3 %v13183_v44  ;;  %v13213_v44 = vld [vmem:[%s13845_s25 + $0xcd0] sm:$0xff] }
 0x187   : > { %8226 = vmatpush.bf16.msrb.mxu0 %v13158_v46  ;;  %v13196_v46 = vld [vmem:[%s13845_s25 + $0xc48] sm:$0xff]  ;;  %v13249_v2 = vld [vmem:[%s13845_s25 + $0xdf0] sm:$0xff] }
 0x188   : > { %8239 = vmatpush.bf16.msrb.mxu1 %v13166_v47  ;;  %v13204_v47 = vld [vmem:[%s13845_s25 + $0xc88] sm:$0xff] }
 0x189   : > { %8252 = vmatpush.bf16.msrb.mxu2 %v13174_v48  ;;  %v13212_v48 = vld [vmem:[%s13845_s25 + $0xcc8] sm:$0xff] }
 0x18a   : > { %8265 = vmatpush.bf16.msrb.mxu3 %v13182_v49 }
 0x18b   : > { %8227 = vmatpush.bf16.msrb.mxu0 %v13157_v55  ;;  %v13226_v55 = vld [vmem:[%s13845_s25 + $0xd38] sm:$0xff] }
 0x18c   : > { %8240 = vmatpush.bf16.msrb.mxu1 %v13165_v56  ;;  %v13234_v56 = vld [vmem:[%s13845_s25 + $0xd78] sm:$0xff] }
 0x18d   : > { %8253 = vmatpush.bf16.msrb.mxu2 %v13173_v58  ;;  %v13250_v58 = vld [vmem:[%s13845_s25 + $0xdf8] sm:$0xff] }
 0x18e   : > { %8266 = vmatpush.bf16.msrb.mxu3 %v13181_v59  ;;  %v2084_v59 = vld [vmem:[#allocation1] sm:$0xff] }
 0x18f   : > { %8228 = vmatpush.bf16.msrb.mxu0 %v13156_v60  ;;  %v2086_v60 = vld [vmem:[#allocation1 + $0x12] sm:$0xff] }
 0x190   : > { %8241 = vmatpush.bf16.msrb.mxu1 %v13164_v61  ;;  %v2085_v61 = vld [vmem:[#allocation1 + $0x9] sm:$0xff] }
 0x191   : > { %8254 = vmatpush.bf16.msrb.mxu2 %v13172_v62  ;;  %v2087_v62 = vld [vmem:[#allocation1 + $0x1b] sm:$0xff] }
 0x192   : > { %8267 = vmatpush.bf16.msrb.mxu3 %v13180_v63  ;;  %v13225_v63 = vld [vmem:[%s13845_s25 + $0xd30] sm:$0xff] }
 0x193   : > { %8229 = vmatpush.bf16.msrb.mxu0 %v13155_v7  ;;  %v8023_v23 = vpop.f32.mrf.mxu0 }
 0x194   : > { %8242 = vmatpush.bf16.msrb.mxu1 %v13163_v8  ;;  %v8024_v24 = vadd.f32 %v8023_v23, %v14235_v54  ;;  %v8036_v27 = vpop.f32.mrf.mxu1  ;;  %v13211_v54 = vld [vmem:[%s13845_s25 + $0xcc0] sm:$0xff] }
 0x195   : > { %8255 = vmatpush.bf16.msrb.mxu2 %v13171_v9  ;;  %v13223_v9 = vld [vmem:[%s13845_s25 + $0xd20] sm:$0xff] }
 0x196   : > { %8268 = vmatpush.bf16.msrb.mxu3 %v13179_v10  ;;  %8230 = vmatmul.bf16.vlgmr.msrb.gmra.mxu0 %v2078_v0  ;;  %v8037_v30 = vadd.f32 %v8036_v27, %v8024_v24  ;;  %v13233_v0 = vld [vmem:[%s13845_s25 + $0xd70] sm:$0xff]  ;;  %v13231_v10 = vld [vmem:[%s13845_s25 + $0xd60] sm:$0xff] }
 0x197   : > { %8274 = vmatpush.bf16.msra.mxu0 %v13194_v11  ;;  %8243 = vmatmul.bf16.vlgmr.msrb.gmra.mxu1 %v2079_v3  ;;  %v13224_v3 = vld [vmem:[%s13845_s25 + $0xd28] sm:$0xff]  ;;  %v13221_v24 = vld [vmem:[%s13845_s25 + $0xd10] sm:$0xff] }
 0x198   : > { %8287 = vmatpush.bf16.msra.mxu1 %v13202_v12  ;;  %8256 = vmatmul.bf16.vlgmr.msrb.gmra.mxu2 %v2080_v1  ;;  %v13241_v1 = vld [vmem:[%s13845_s25 + $0xdb0] sm:$0xff]  ;;  %v13239_v12 = vld [vmem:[%s13845_s25 + $0xda0] sm:$0xff] }
 0x199   : > { %8300 = vmatpush.bf16.msra.mxu2 %v13210_v13  ;;  %8269 = vmatmul.bf16.vlgmr.msrb.gmra.mxu3 %v2081_v4  ;;  %v13232_v4 = vld [vmem:[%s13845_s25 + $0xd68] sm:$0xff]  ;;  %v13247_v13 = vld [vmem:[%s13845_s25 + $0xde0] sm:$0xff]  ;;  %v13237_v27 = vld [vmem:[%s13845_s25 + $0xd90] sm:$0xff] }
 0x19a   : > { %8313 = vmatpush.bf16.msra.mxu3 %v13218_v14 }
 0x19b   : > { %8275 = vmatpush.bf16.msra.mxu0 %v13193_v15  ;;  %v8049_v35 = vpop.f32.mrf.mxu2  ;;  %v8025_v38 = vpop.f32.mrf.mxu0  ;;  %v13222_v15 = vld [vmem:[%s13845_s25 + $0xd18] sm:$0xff] }
 0x19c   : > { %8288 = vmatpush.bf16.msra.mxu1 %v13201_v16  ;;  %v8050_v36 = vadd.f32 %v8049_v35, %v8037_v30  ;;  %v8062_v37 = vpop.f32.mrf.mxu3  ;;  %v8038_v42 = vpop.f32.mrf.mxu1  ;;  %v13230_v16 = vld [vmem:[%s13845_s25 + $0xd58] sm:$0xff]  ;;  %v13228_v30 = vld [vmem:[%s13845_s25 + $0xd48] sm:$0xff] }
 0x19d   : > { %8301 = vmatpush.bf16.msra.mxu2 %v13209_v17  ;;  %v13238_v17 = vld [vmem:[%s13845_s25 + $0xd98] sm:$0xff]  ;;  %v13235_v42 = vld [vmem:[%s13845_s25 + $0xd80] sm:$0xff] }
 0x19e   : > { %8314 = vmatpush.bf16.msra.mxu3 %v13217_v18  ;;  %v8063_v39 = vadd.f32 %v8062_v37, %v8050_v36  ;;  %v13246_v18 = vld [vmem:[%s13845_s25 + $0xdd8] sm:$0xff]  ;;  %v2089_v36 = vld [vmem:[#allocation1 + $0x2d] sm:$0xff] }
 0x19f   : > { %8276 = vmatpush.bf16.msra.mxu0 %v13192_v19  ;;  %v2091_v37 = vld [vmem:[#allocation1 + $0x3f] sm:$0xff] }
 0x1a0   : > { %8289 = vmatpush.bf16.msra.mxu1 %v13200_v20 }
 0x1a1   : > { %8302 = vmatpush.bf16.msra.mxu2 %v13208_v21 }
 0x1a2   : > { %8315 = vmatpush.bf16.msra.mxu3 %v13216_v22 }
 0x1a3   : > { %8277 = vmatpush.bf16.msra.mxu0 %v13191_v25  ;;  %v8051_v49 = vpop.f32.mrf.mxu2  ;;  %v13229_v25 = vld [vmem:[%s13845_s25 + $0xd50] sm:$0xff] }
 0x1a4   : > { %8290 = vmatpush.bf16.msra.mxu1 %v13199_v26  ;;  %v8064_v50 = vpop.f32.mrf.mxu3  ;;  %v13265_v49 = vld [vmem:[%s13845_s25 + $0xe70] sm:$0xff] }
 0x1a5   : > { %8303 = vmatpush.bf16.msra.mxu2 %v13207_v28  ;;  %v13245_v28 = vld [vmem:[%s13845_s25 + $0xdd0] sm:$0xff] }
 0x1a6   : > { %8316 = vmatpush.bf16.msra.mxu3 %v13215_v29  ;;  %v13220_v29 = vld [vmem:[%s13845_s25 + $0xd08] sm:$0xff]  ;;  %v13273_v50 = vld [vmem:[%s13845_s25 + $0xeb0] sm:$0xff] }
 0x1a7   : > { %8278 = vmatpush.bf16.msra.mxu0 %v13190_v31  ;;  %v13236_v31 = vld [vmem:[%s13845_s25 + $0xd88] sm:$0xff] }
 0x1a8   : > { %8291 = vmatpush.bf16.msra.mxu1 %v13198_v32  ;;  %v13244_v32 = vld [vmem:[%s13845_s25 + $0xdc8] sm:$0xff] }
 0x1a9   : > { %8304 = vmatpush.bf16.msra.mxu2 %v13206_v33  ;;  %v2088_v33 = vld [vmem:[#allocation1 + $0x24] sm:$0xff] }
 0x1aa   : > { %8317 = vmatpush.bf16.msra.mxu3 %v13214_v34  ;;  %v2090_v34 = vld [vmem:[#allocation1 + $0x36] sm:$0xff] }
 0x1ab   : > { %8279 = vmatpush.bf16.msra.mxu0 %v13189_v40  ;;  %v13219_v40 = vld [vmem:[%s13845_s25 + $0xd00] sm:$0xff] }
 0x1ac   : > { %8292 = vmatpush.bf16.msra.mxu1 %v13197_v41  ;;  %v13227_v41 = vld [vmem:[%s13845_s25 + $0xd40] sm:$0xff] }
 0x1ad   : > { %8305 = vmatpush.bf16.msra.mxu2 %v13205_v43  ;;  %v13243_v43 = vld [vmem:[%s13845_s25 + $0xdc0] sm:$0xff] }
 0x1ae   : > { %8318 = vmatpush.bf16.msra.mxu3 %v13213_v44  ;;  %v13258_v44 = vld [vmem:[%s13845_s25 + $0xe38] sm:$0xff] }
 0x1af   : > { %8280 = vmatpush.bf16.msra.mxu0 %v13188_v45  ;;  %v13266_v45 = vld [vmem:[%s13845_s25 + $0xe78] sm:$0xff] }
 0x1b0   : > { %8293 = vmatpush.bf16.msra.mxu1 %v13196_v46  ;;  %v13274_v46 = vld [vmem:[%s13845_s25 + $0xeb8] sm:$0xff] }
 0x1b1   : > { %8306 = vmatpush.bf16.msra.mxu2 %v13204_v47  ;;  %v13282_v47 = vld [vmem:[%s13845_s25 + $0xef8] sm:$0xff] }
 0x1b2   : > { %8319 = vmatpush.bf16.msra.mxu3 %v13212_v48  ;;  %v13257_v48 = vld [vmem:[%s13845_s25 + $0xe30] sm:$0xff] }
 0x1b3   : > { %8281 = vmatpush.bf16.msra.mxu0 %v13187_v51  ;;  %v8075_v7 = vpop.f32.mrf.mxu0  ;;  %v13281_v51 = vld [vmem:[%s13845_s25 + $0xef0] sm:$0xff] }
 0x1b4   : > { %8294 = vmatpush.bf16.msra.mxu1 %v13195_v52  ;;  %v8076_v8 = vadd.f32 %v8075_v7, %v8063_v39  ;;  %v8088_v11 = vpop.f32.mrf.mxu1  ;;  %v223_v39 = vld [vmem:[%s13840_s21 + $0x38] sm:$0xff]  ;;  %v13256_v52 = vld [vmem:[%s13845_s25 + $0xe28] sm:$0xff] }
 0x1b5   : > { %8307 = vmatpush.bf16.msra.mxu2 %v13203_v53  ;;  %2093 = vst [vmem:[#allocation1] ss:$9 sm:$0xff] %v223_v39  ;;  %v13264_v53 = vld [vmem:[%s13845_s25 + $0xe68] sm:$0xff] }
 0x1b6   : > { %8320 = vmatpush.bf16.msra.mxu3 %v13211_v54  ;;  %8282 = vmatmul.bf16.vlgmr.msra.gmra.mxu0 %v2084_v59  ;;  %v8089_v14 = vadd.f32 %v8088_v11, %v8076_v8  ;;  %v13272_v54 = vld [vmem:[%s13845_s25 + $0xea8] sm:$0xff]  ;;  %v13263_v59 = vld [vmem:[%s13845_s25 + $0xe60] sm:$0xff] }
 0x1b7   : > { %8326 = vmatpush.bf16.msrb.mxu0 %v13226_v55  ;;  %8295 = vmatmul.bf16.vlgmr.msra.gmra.mxu1 %v2085_v61  ;;  %v13280_v55 = vld [vmem:[%s13845_s25 + $0xee8] sm:$0xff]  ;;  %v13271_v61 = vld [vmem:[%s13845_s25 + $0xea0] sm:$0xff] }
 0x1b8   : > { %8339 = vmatpush.bf16.msrb.mxu1 %v13234_v56  ;;  %8308 = vmatmul.bf16.vlgmr.msra.gmra.mxu2 %v2086_v60  ;;  %v13312_v39 = vld [vmem:[%s13845_s25 + $0xfe8] sm:$0xff] }
 0x1b9   : > { %8352 = vmatpush.bf16.msrb.mxu2 %v13242_v57  ;;  %8321 = vmatmul.bf16.vlgmr.msra.gmra.mxu3 %v2087_v62  ;;  %v13279_v62 = vld [vmem:[%s13845_s25 + $0xee0] sm:$0xff] }
 0x1ba   : > { %8365 = vmatpush.bf16.msrb.mxu3 %v13250_v58  ;;  %v13255_v58 = vld [vmem:[%s13845_s25 + $0xe20] sm:$0xff] }
 0x1bb   : > { %8327 = vmatpush.bf16.msrb.mxu0 %v13225_v63  ;;  %v8101_v19 = vpop.f32.mrf.mxu2  ;;  %v8077_v22 = vpop.f32.mrf.mxu0 }
 0x1bc   : > { %8340 = vmatpush.bf16.msrb.mxu1 %v13233_v0  ;;  %v8102_v20 = vadd.f32 %v8101_v19, %v8089_v14  ;;  %v8114_v21 = vpop.f32.mrf.mxu3  ;;  %v8090_v26 = vpop.f32.mrf.mxu1  ;;  %v13254_v0 = vld [vmem:[%s13845_s25 + $0xe18] sm:$0xff]  ;;  %v13252_v14 = vld [vmem:[%s13845_s25 + $0xe08] sm:$0xff]  ;;  %v13267_v22 = vld [vmem:[%s13845_s25 + $0xe80] sm:$0xff] }
 0x1bd   : > { %8353 = vmatpush.bf16.msrb.mxu2 %v13241_v1  ;;  %v13262_v1 = vld [vmem:[%s13845_s25 + $0xe58] sm:$0xff] }
 0x1be   : > { %8366 = vmatpush.bf16.msrb.mxu3 %v13249_v2  ;;  %v14303_v23 = vadd.f32 %v8114_v21, %v8102_v20  ;;  %v13270_v2 = vld [vmem:[%s13845_s25 + $0xe98] sm:$0xff]  ;;  %v13251_v20 = vld [vmem:[%s13845_s25 + $0xe00] sm:$0xff] }
 0x1bf   : > { %8328 = vmatpush.bf16.msrb.mxu0 %v13224_v3  ;;  %v13278_v3 = vld [vmem:[%s13845_s25 + $0xed8] sm:$0xff]  ;;  %v13259_v21 = vld [vmem:[%s13845_s25 + $0xe40] sm:$0xff] }
 0x1c0   : > { %8341 = vmatpush.bf16.msrb.mxu1 %v13232_v4  ;;  %v13306_v26 = vld [vmem:[%s13845_s25 + $0xfb8] sm:$0xff] }
 0x1c1   : > { %8354 = vmatpush.bf16.msrb.mxu2 %v13240_v5 }
 0x1c2   : > { %8367 = vmatpush.bf16.msrb.mxu3 %v13248_v6 }
 0x1c3   : > { %8329 = vmatpush.bf16.msrb.mxu0 %v13223_v9  ;;  %v8103_v35 = vpop.f32.mrf.mxu2  ;;  %v13253_v9 = vld [vmem:[%s13845_s25 + $0xe10] sm:$0xff] }
 0x1c4   : > { %8342 = vmatpush.bf16.msrb.mxu1 %v13231_v10  ;;  %v8116_v38 = vpop.f32.mrf.mxu3  ;;  %v13261_v10 = vld [vmem:[%s13845_s25 + $0xe50] sm:$0xff] }
 0x1c5   : > { %8355 = vmatpush.bf16.msrb.mxu2 %v13239_v12  ;;  %v13269_v12 = vld [vmem:[%s13845_s25 + $0xe90] sm:$0xff]  ;;  %v13304_v38 = vld [vmem:[%s13845_s25 + $0xfa8] sm:$0xff] }
 0x1c6   : > { %8368 = vmatpush.bf16.msrb.mxu3 %v13247_v13  ;;  %v13277_v13 = vld [vmem:[%s13845_s25 + $0xed0] sm:$0xff] }
 0x1c7   : > { %8330 = vmatpush.bf16.msrb.mxu0 %v13222_v15  ;;  %v13260_v15 = vld [vmem:[%s13845_s25 + $0xe48] sm:$0xff]  ;;  %v13313_v35 = vld [vmem:[%s13845_s25 + $0xff0] sm:$0xff] }
 0x1c8   : > { %8343 = vmatpush.bf16.msrb.mxu1 %v13230_v16  ;;  %v13268_v16 = vld [vmem:[%s13845_s25 + $0xe88] sm:$0xff] }
 0x1c9   : > { %8356 = vmatpush.bf16.msrb.mxu2 %v13238_v17  ;;  %v13276_v17 = vld [vmem:[%s13845_s25 + $0xec8] sm:$0xff] }
 0x1ca   : > { %8369 = vmatpush.bf16.msrb.mxu3 %v13246_v18 }
 0x1cb   : > { %8331 = vmatpush.bf16.msrb.mxu0 %v13221_v24  ;;  %v13290_v24 = vld [vmem:[%s13845_s25 + $0xf38] sm:$0xff] }
 0x1cc   : > { %8344 = vmatpush.bf16.msrb.mxu1 %v13229_v25  ;;  %v13298_v25 = vld [vmem:[%s13845_s25 + $0xf78] sm:$0xff] }
 0x1cd   : > { %8357 = vmatpush.bf16.msrb.mxu2 %v13237_v27  ;;  %v13314_v27 = vld [vmem:[%s13845_s25 + $0xff8] sm:$0xff] }
 0x1ce   : > { %8370 = vmatpush.bf16.msrb.mxu3 %v13245_v28  ;;  %v2094_v28 = vld [vmem:[#allocation1] sm:$0xff] }
 0x1cf   : > { %8332 = vmatpush.bf16.msrb.mxu0 %v13220_v29  ;;  %v2096_v29 = vld [vmem:[#allocation1 + $0x12] sm:$0xff] }
 0x1d0   : > { %8345 = vmatpush.bf16.msrb.mxu1 %v13228_v30  ;;  %v2095_v30 = vld [vmem:[#allocation1 + $0x9] sm:$0xff] }
 0x1d1   : > { %8358 = vmatpush.bf16.msrb.mxu2 %v13236_v31  ;;  %v2097_v31 = vld [vmem:[#allocation1 + $0x1b] sm:$0xff] }
 0x1d2   : > { %8371 = vmatpush.bf16.msrb.mxu3 %v13244_v32  ;;  %v13289_v32 = vld [vmem:[%s13845_s25 + $0xf30] sm:$0xff] }
 0x1d3   : > { %8333 = vmatpush.bf16.msrb.mxu0 %v13219_v40  ;;  %v8127_v56 = vpop.f32.mrf.mxu0 }
 0x1d4   : > { %8346 = vmatpush.bf16.msrb.mxu1 %v13227_v41  ;;  %v8128_v57 = vadd.f32 %v8127_v56, %v14303_v23  ;;  %v8140_v60 = vpop.f32.mrf.mxu1  ;;  %v13275_v23 = vld [vmem:[%s13845_s25 + $0xec0] sm:$0xff] }
 0x1d5   : > { %8359 = vmatpush.bf16.msrb.mxu2 %v13235_v42  ;;  %v13287_v42 = vld [vmem:[%s13845_s25 + $0xf20] sm:$0xff] }
 0x1d6   : > { %8372 = vmatpush.bf16.msrb.mxu3 %v13243_v43  ;;  %8334 = vmatmul.bf16.vlgmr.msrb.gmra.mxu0 %v2088_v33  ;;  %v8141_v63 = vadd.f32 %v8140_v60, %v8128_v57  ;;  %v13297_v33 = vld [vmem:[%s13845_s25 + $0xf70] sm:$0xff]  ;;  %v13295_v43 = vld [vmem:[%s13845_s25 + $0xf60] sm:$0xff] }
 0x1d7   : > { %8378 = vmatpush.bf16.msra.mxu0 %v13258_v44  ;;  %8347 = vmatmul.bf16.vlgmr.msrb.gmra.mxu1 %v2089_v36  ;;  %v13288_v36 = vld [vmem:[%s13845_s25 + $0xf28] sm:$0xff]  ;;  %v13285_v57 = vld [vmem:[%s13845_s25 + $0xf10] sm:$0xff] }
 0x1d8   : > { %8391 = vmatpush.bf16.msra.mxu1 %v13266_v45  ;;  %8360 = vmatmul.bf16.vlgmr.msrb.gmra.mxu2 %v2090_v34  ;;  %v13305_v34 = vld [vmem:[%s13845_s25 + $0xfb0] sm:$0xff]  ;;  %v13303_v45 = vld [vmem:[%s13845_s25 + $0xfa0] sm:$0xff] }
 0x1d9   : > { %8404 = vmatpush.bf16.msra.mxu2 %v13274_v46  ;;  %8373 = vmatmul.bf16.vlgmr.msrb.gmra.mxu3 %v2091_v37  ;;  %v13296_v37 = vld [vmem:[%s13845_s25 + $0xf68] sm:$0xff]  ;;  %v13311_v46 = vld [vmem:[%s13845_s25 + $0xfe0] sm:$0xff]  ;;  %v13301_v60 = vld [vmem:[%s13845_s25 + $0xf90] sm:$0xff] }
 0x1da   : > { %8417 = vmatpush.bf16.msra.mxu3 %v13282_v47 }
 0x1db   : > { %8379 = vmatpush.bf16.msra.mxu0 %v13257_v48  ;;  %v8153_v4 = vpop.f32.mrf.mxu2  ;;  %v8129_v7 = vpop.f32.mrf.mxu0  ;;  %v13286_v48 = vld [vmem:[%s13845_s25 + $0xf18] sm:$0xff] }
 0x1dc   : > { %8392 = vmatpush.bf16.msra.mxu1 %v13265_v49  ;;  %v8154_v5 = vadd.f32 %v8153_v4, %v8141_v63  ;;  %v8166_v6 = vpop.f32.mrf.mxu3  ;;  %v8142_v11 = vpop.f32.mrf.mxu1  ;;  %v13294_v49 = vld [vmem:[%s13845_s25 + $0xf58] sm:$0xff]  ;;  %v13292_v63 = vld [vmem:[%s13845_s25 + $0xf48] sm:$0xff] }
 0x1dd   : > { %8405 = vmatpush.bf16.msra.mxu2 %v13273_v50  ;;  %v13302_v50 = vld [vmem:[%s13845_s25 + $0xf98] sm:$0xff]  ;;  %v13299_v11 = vld [vmem:[%s13845_s25 + $0xf80] sm:$0xff] }
 0x1de   : > { %8418 = vmatpush.bf16.msra.mxu3 %v13281_v51  ;;  %v8167_v8 = vadd.f32 %v8166_v6, %v8154_v5  ;;  %v13310_v51 = vld [vmem:[%s13845_s25 + $0xfd8] sm:$0xff]  ;;  %v2099_v5 = vld [vmem:[#allocation1 + $0x2d] sm:$0xff] }
 0x1df   : > { %8380 = vmatpush.bf16.msra.mxu0 %v13256_v52  ;;  %v2101_v6 = vld [vmem:[#allocation1 + $0x3f] sm:$0xff] }
 0x1e0   : > { %8393 = vmatpush.bf16.msra.mxu1 %v13264_v53 }
 0x1e1   : > { %8406 = vmatpush.bf16.msra.mxu2 %v13272_v54 }
 0x1e2   : > { %8419 = vmatpush.bf16.msra.mxu3 %v13280_v55 }
 0x1e3   : > { %8381 = vmatpush.bf16.msra.mxu0 %v13255_v58  ;;  %v8155_v18 = vpop.f32.mrf.mxu2  ;;  %v13293_v58 = vld [vmem:[%s13845_s25 + $0xf50] sm:$0xff] }
 0x1e4   : > { %8394 = vmatpush.bf16.msra.mxu1 %v13263_v59  ;;  %v8168_v19 = vpop.f32.mrf.mxu3  ;;  %v13329_v18 = vld [vmem:[%s13845_s25 + $0x1070] sm:$0xff] }
 0x1e5   : > { %8407 = vmatpush.bf16.msra.mxu2 %v13271_v61  ;;  %v13309_v61 = vld [vmem:[%s13845_s25 + $0xfd0] sm:$0xff] }
 0x1e6   : > { %8420 = vmatpush.bf16.msra.mxu3 %v13279_v62  ;;  %v13284_v62 = vld [vmem:[%s13845_s25 + $0xf08] sm:$0xff]  ;;  %v13337_v19 = vld [vmem:[%s13845_s25 + $0x10b0] sm:$0xff] }
 0x1e7   : > { %8382 = vmatpush.bf16.msra.mxu0 %v13254_v0  ;;  %v13300_v0 = vld [vmem:[%s13845_s25 + $0xf88] sm:$0xff] }
 0x1e8   : > { %8395 = vmatpush.bf16.msra.mxu1 %v13262_v1  ;;  %v13308_v1 = vld [vmem:[%s13845_s25 + $0xfc8] sm:$0xff] }
 0x1e9   : > { %8408 = vmatpush.bf16.msra.mxu2 %v13270_v2  ;;  %v2098_v2 = vld [vmem:[#allocation1 + $0x24] sm:$0xff] }
 0x1ea   : > { %8421 = vmatpush.bf16.msra.mxu3 %v13278_v3  ;;  %v2100_v3 = vld [vmem:[#allocation1 + $0x36] sm:$0xff] }
 0x1eb   : > { %8383 = vmatpush.bf16.msra.mxu0 %v13253_v9  ;;  %v13283_v9 = vld [vmem:[%s13845_s25 + $0xf00] sm:$0xff] }
 0x1ec   : > { %8396 = vmatpush.bf16.msra.mxu1 %v13261_v10  ;;  %v13291_v10 = vld [vmem:[%s13845_s25 + $0xf40] sm:$0xff] }
 0x1ed   : > { %8409 = vmatpush.bf16.msra.mxu2 %v13269_v12  ;;  %v13307_v12 = vld [vmem:[%s13845_s25 + $0xfc0] sm:$0xff] }
 0x1ee   : > { %8422 = vmatpush.bf16.msra.mxu3 %v13277_v13  ;;  %v13322_v13 = vld [vmem:[%s13845_s25 + $0x1038] sm:$0xff] }
 0x1ef   : > { %8384 = vmatpush.bf16.msra.mxu0 %v13252_v14  ;;  %v13330_v14 = vld [vmem:[%s13845_s25 + $0x1078] sm:$0xff] }
 0x1f0   : > { %8397 = vmatpush.bf16.msra.mxu1 %v13260_v15  ;;  %v13338_v15 = vld [vmem:[%s13845_s25 + $0x10b8] sm:$0xff] }
 0x1f1   : > { %8410 = vmatpush.bf16.msra.mxu2 %v13268_v16  ;;  %v13346_v16 = vld [vmem:[%s13845_s25 + $0x10f8] sm:$0xff] }
 0x1f2   : > { %8423 = vmatpush.bf16.msra.mxu3 %v13276_v17  ;;  %v13321_v17 = vld [vmem:[%s13845_s25 + $0x1030] sm:$0xff] }
 0x1f3   : > { %8385 = vmatpush.bf16.msra.mxu0 %v13251_v20  ;;  %v8179_v40 = vpop.f32.mrf.mxu0  ;;  %v13345_v20 = vld [vmem:[%s13845_s25 + $0x10f0] sm:$0xff] }
 0x1f4   : > { %8398 = vmatpush.bf16.msra.mxu1 %v13259_v21  ;;  %v8180_v41 = vadd.f32 %v8179_v40, %v8167_v8  ;;  %v8192_v44 = vpop.f32.mrf.mxu1  ;;  %v224_v8 = vld [vmem:[%s13840_s21 + $0x40] sm:$0xff]  ;;  %v13320_v21 = vld [vmem:[%s13845_s25 + $0x1028] sm:$0xff] }
 0x1f5   : > { %8411 = vmatpush.bf16.msra.mxu2 %v13267_v22  ;;  %2103 = vst [vmem:[#allocation1] ss:$9 sm:$0xff] %v224_v8  ;;  %v13328_v22 = vld [vmem:[%s13845_s25 + $0x1068] sm:$0xff] }
 0x1f6   : > { %8424 = vmatpush.bf16.msra.mxu3 %v13275_v23  ;;  %8386 = vmatmul.bf16.vlgmr.msra.gmra.mxu0 %v2094_v28  ;;  %v8193_v47 = vadd.f32 %v8192_v44, %v8180_v41  ;;  %v13336_v23 = vld [vmem:[%s13845_s25 + $0x10a8] sm:$0xff]  ;;  %v13327_v28 = vld [vmem:[%s13845_s25 + $0x1060] sm:$0xff] }
 0x1f7   : > { %8430 = vmatpush.bf16.msrb.mxu0 %v13290_v24  ;;  %8399 = vmatmul.bf16.vlgmr.msra.gmra.mxu1 %v2095_v30  ;;  %v13344_v24 = vld [vmem:[%s13845_s25 + $0x10e8] sm:$0xff]  ;;  %v13335_v30 = vld [vmem:[%s13845_s25 + $0x10a0] sm:$0xff] }
 0x1f8   : > { %8443 = vmatpush.bf16.msrb.mxu1 %v13298_v25  ;;  %8412 = vmatmul.bf16.vlgmr.msra.gmra.mxu2 %v2096_v29  ;;  %v13376_v8 = vld [vmem:[%s13845_s25 + $0x11e8] sm:$0xff] }
 0x1f9   : > { %8456 = vmatpush.bf16.msrb.mxu2 %v13306_v26  ;;  %8425 = vmatmul.bf16.vlgmr.msra.gmra.mxu3 %v2097_v31  ;;  %v13343_v31 = vld [vmem:[%s13845_s25 + $0x10e0] sm:$0xff] }
 0x1fa   : > { %8469 = vmatpush.bf16.msrb.mxu3 %v13314_v27  ;;  %v13319_v27 = vld [vmem:[%s13845_s25 + $0x1020] sm:$0xff] }
 0x1fb   : > { %8431 = vmatpush.bf16.msrb.mxu0 %v13289_v32  ;;  %v8205_v52 = vpop.f32.mrf.mxu2  ;;  %v8181_v55 = vpop.f32.mrf.mxu0 }
 0x1fc   : > { %8444 = vmatpush.bf16.msrb.mxu1 %v13297_v33  ;;  %v8206_v53 = vadd.f32 %v8205_v52, %v8193_v47  ;;  %v8218_v54 = vpop.f32.mrf.mxu3  ;;  %v8194_v59 = vpop.f32.mrf.mxu1  ;;  %v13318_v33 = vld [vmem:[%s13845_s25 + $0x1018] sm:$0xff]  ;;  %v13316_v47 = vld [vmem:[%s13845_s25 + $0x1008] sm:$0xff]  ;;  %v13331_v55 = vld [vmem:[%s13845_s25 + $0x1080] sm:$0xff] }
 0x1fd   : > { %8457 = vmatpush.bf16.msrb.mxu2 %v13305_v34  ;;  %v13326_v34 = vld [vmem:[%s13845_s25 + $0x1058] sm:$0xff] }
 0x1fe   : > { %8470 = vmatpush.bf16.msrb.mxu3 %v13313_v35  ;;  %v14371_v56 = vadd.f32 %v8218_v54, %v8206_v53  ;;  %v13334_v35 = vld [vmem:[%s13845_s25 + $0x1098] sm:$0xff]  ;;  %v13315_v53 = vld [vmem:[%s13845_s25 + $0x1000] sm:$0xff] }
 0x1ff   : > { %8432 = vmatpush.bf16.msrb.mxu0 %v13288_v36  ;;  %v13342_v36 = vld [vmem:[%s13845_s25 + $0x10d8] sm:$0xff]  ;;  %v13323_v54 = vld [vmem:[%s13845_s25 + $0x1040] sm:$0xff] }
 0x200   : > { %8445 = vmatpush.bf16.msrb.mxu1 %v13296_v37  ;;  %v13370_v59 = vld [vmem:[%s13845_s25 + $0x11b8] sm:$0xff] }
 0x201   : > { %8458 = vmatpush.bf16.msrb.mxu2 %v13304_v38 }
 0x202   : > { %8471 = vmatpush.bf16.msrb.mxu3 %v13312_v39 }
 0x203   : > { %8433 = vmatpush.bf16.msrb.mxu0 %v13287_v42  ;;  %v8207_v4 = vpop.f32.mrf.mxu2  ;;  %v13317_v42 = vld [vmem:[%s13845_s25 + $0x1010] sm:$0xff] }
 0x204   : > { %8446 = vmatpush.bf16.msrb.mxu1 %v13295_v43  ;;  %v8220_v7 = vpop.f32.mrf.mxu3  ;;  %v13325_v43 = vld [vmem:[%s13845_s25 + $0x1050] sm:$0xff] }
 0x205   : > { %8459 = vmatpush.bf16.msrb.mxu2 %v13303_v45  ;;  %v13333_v45 = vld [vmem:[%s13845_s25 + $0x1090] sm:$0xff]  ;;  %v13368_v7 = vld [vmem:[%s13845_s25 + $0x11a8] sm:$0xff] }
 0x206   : > { %8472 = vmatpush.bf16.msrb.mxu3 %v13311_v46  ;;  %v13341_v46 = vld [vmem:[%s13845_s25 + $0x10d0] sm:$0xff] }
 0x207   : > { %8434 = vmatpush.bf16.msrb.mxu0 %v13286_v48  ;;  %v13324_v48 = vld [vmem:[%s13845_s25 + $0x1048] sm:$0xff]  ;;  %v13377_v4 = vld [vmem:[%s13845_s25 + $0x11f0] sm:$0xff] }
 0x208   : > { %8447 = vmatpush.bf16.msrb.mxu1 %v13294_v49  ;;  %v13332_v49 = vld [vmem:[%s13845_s25 + $0x1088] sm:$0xff] }
 0x209   : > { %8460 = vmatpush.bf16.msrb.mxu2 %v13302_v50  ;;  %v13340_v50 = vld [vmem:[%s13845_s25 + $0x10c8] sm:$0xff] }
 0x20a   : > { %8473 = vmatpush.bf16.msrb.mxu3 %v13310_v51 }
 0x20b   : > { %8435 = vmatpush.bf16.msrb.mxu0 %v13285_v57  ;;  %v13354_v57 = vld [vmem:[%s13845_s25 + $0x1138] sm:$0xff] }
 0x20c   : > { %8448 = vmatpush.bf16.msrb.mxu1 %v13293_v58  ;;  %v13362_v58 = vld [vmem:[%s13845_s25 + $0x1178] sm:$0xff] }
 0x20d   : > { %8461 = vmatpush.bf16.msrb.mxu2 %v13301_v60  ;;  %v13378_v60 = vld [vmem:[%s13845_s25 + $0x11f8] sm:$0xff] }
 0x20e   : > { %8474 = vmatpush.bf16.msrb.mxu3 %v13309_v61  ;;  %v2104_v61 = vld [vmem:[#allocation1] sm:$0xff] }
 0x20f   : > { %8436 = vmatpush.bf16.msrb.mxu0 %v13284_v62  ;;  %v2106_v62 = vld [vmem:[#allocation1 + $0x12] sm:$0xff] }
 0x210   : > { %8449 = vmatpush.bf16.msrb.mxu1 %v13292_v63  ;;  %v2105_v63 = vld [vmem:[#allocation1 + $0x9] sm:$0xff] }
 0x211   : > { %8462 = vmatpush.bf16.msrb.mxu2 %v13300_v0  ;;  %v2107_v0 = vld [vmem:[#allocation1 + $0x1b] sm:$0xff] }
 0x212   : > { %8475 = vmatpush.bf16.msrb.mxu3 %v13308_v1  ;;  %v13353_v1 = vld [vmem:[%s13845_s25 + $0x1130] sm:$0xff] }
 0x213   : > { %8437 = vmatpush.bf16.msrb.mxu0 %v13283_v9  ;;  %v8231_v25 = vpop.f32.mrf.mxu0 }
 0x214   : > { %8450 = vmatpush.bf16.msrb.mxu1 %v13291_v10  ;;  %v8232_v26 = vadd.f32 %v8231_v25, %v14371_v56  ;;  %v8244_v29 = vpop.f32.mrf.mxu1  ;;  %v13339_v56 = vld [vmem:[%s13845_s25 + $0x10c0] sm:$0xff] }
 0x215   : > { %8463 = vmatpush.bf16.msrb.mxu2 %v13299_v11  ;;  %v13351_v11 = vld [vmem:[%s13845_s25 + $0x1120] sm:$0xff] }
 0x216   : > { %8476 = vmatpush.bf16.msrb.mxu3 %v13307_v12  ;;  %8438 = vmatmul.bf16.vlgmr.msrb.gmra.mxu0 %v2098_v2  ;;  %v8245_v32 = vadd.f32 %v8244_v29, %v8232_v26  ;;  %v13361_v2 = vld [vmem:[%s13845_s25 + $0x1170] sm:$0xff]  ;;  %v13359_v12 = vld [vmem:[%s13845_s25 + $0x1160] sm:$0xff] }
 0x217   : > { %8482 = vmatpush.bf16.msra.mxu0 %v13322_v13  ;;  %8451 = vmatmul.bf16.vlgmr.msrb.gmra.mxu1 %v2099_v5  ;;  %v13352_v5 = vld [vmem:[%s13845_s25 + $0x1128] sm:$0xff]  ;;  %v13349_v26 = vld [vmem:[%s13845_s25 + $0x1110] sm:$0xff] }
 0x218   : > { %8495 = vmatpush.bf16.msra.mxu1 %v13330_v14  ;;  %8464 = vmatmul.bf16.vlgmr.msrb.gmra.mxu2 %v2100_v3  ;;  %v13369_v3 = vld [vmem:[%s13845_s25 + $0x11b0] sm:$0xff]  ;;  %v13367_v14 = vld [vmem:[%s13845_s25 + $0x11a0] sm:$0xff] }
 0x219   : > { %8508 = vmatpush.bf16.msra.mxu2 %v13338_v15  ;;  %8477 = vmatmul.bf16.vlgmr.msrb.gmra.mxu3 %v2101_v6  ;;  %v13360_v6 = vld [vmem:[%s13845_s25 + $0x1168] sm:$0xff]  ;;  %v13375_v15 = vld [vmem:[%s13845_s25 + $0x11e0] sm:$0xff]  ;;  %v13365_v29 = vld [vmem:[%s13845_s25 + $0x1190] sm:$0xff] }
 0x21a   : > { %8521 = vmatpush.bf16.msra.mxu3 %v13346_v16 }
 0x21b   : > { %8483 = vmatpush.bf16.msra.mxu0 %v13321_v17  ;;  %v8257_v37 = vpop.f32.mrf.mxu2  ;;  %v8233_v40 = vpop.f32.mrf.mxu0  ;;  %v13350_v17 = vld [vmem:[%s13845_s25 + $0x1118] sm:$0xff] }
 0x21c   : > { %8496 = vmatpush.bf16.msra.mxu1 %v13329_v18  ;;  %v8258_v38 = vadd.f32 %v8257_v37, %v8245_v32  ;;  %v8270_v39 = vpop.f32.mrf.mxu3  ;;  %v8246_v44 = vpop.f32.mrf.mxu1  ;;  %v13358_v18 = vld [vmem:[%s13845_s25 + $0x1158] sm:$0xff]  ;;  %v13356_v32 = vld [vmem:[%s13845_s25 + $0x1148] sm:$0xff] }
 0x21d   : > { %8509 = vmatpush.bf16.msra.mxu2 %v13337_v19  ;;  %v13366_v19 = vld [vmem:[%s13845_s25 + $0x1198] sm:$0xff]  ;;  %v13363_v44 = vld [vmem:[%s13845_s25 + $0x1180] sm:$0xff] }
 0x21e   : > { %8522 = vmatpush.bf16.msra.mxu3 %v13345_v20  ;;  %v8271_v41 = vadd.f32 %v8270_v39, %v8258_v38  ;;  %v13374_v20 = vld [vmem:[%s13845_s25 + $0x11d8] sm:$0xff]  ;;  %v2109_v38 = vld [vmem:[#allocation1 + $0x2d] sm:$0xff] }
 0x21f   : > { %8484 = vmatpush.bf16.msra.mxu0 %v13320_v21  ;;  %v2111_v39 = vld [vmem:[#allocation1 + $0x3f] sm:$0xff] }
 0x220   : > { %8497 = vmatpush.bf16.msra.mxu1 %v13328_v22 }
 0x221   : > { %8510 = vmatpush.bf16.msra.mxu2 %v13336_v23 }
 0x222   : > { %8523 = vmatpush.bf16.msra.mxu3 %v13344_v24 }
 0x223   : > { %8485 = vmatpush.bf16.msra.mxu0 %v13319_v27  ;;  %v8259_v51 = vpop.f32.mrf.mxu2  ;;  %v13357_v27 = vld [vmem:[%s13845_s25 + $0x1150] sm:$0xff] }
 0x224   : > { %8498 = vmatpush.bf16.msra.mxu1 %v13327_v28  ;;  %v8272_v52 = vpop.f32.mrf.mxu3  ;;  %v13393_v51 = vld [vmem:[%s13845_s25 + $0x1270] sm:$0xff] }
 0x225   : > { %8511 = vmatpush.bf16.msra.mxu2 %v13335_v30  ;;  %v13373_v30 = vld [vmem:[%s13845_s25 + $0x11d0] sm:$0xff] }
 0x226   : > { %8524 = vmatpush.bf16.msra.mxu3 %v13343_v31  ;;  %v13348_v31 = vld [vmem:[%s13845_s25 + $0x1108] sm:$0xff]  ;;  %v13401_v52 = vld [vmem:[%s13845_s25 + $0x12b0] sm:$0xff] }
 0x227   : > { %8486 = vmatpush.bf16.msra.mxu0 %v13318_v33  ;;  %v13364_v33 = vld [vmem:[%s13845_s25 + $0x1188] sm:$0xff] }
 0x228   : > { %8499 = vmatpush.bf16.msra.mxu1 %v13326_v34  ;;  %v13372_v34 = vld [vmem:[%s13845_s25 + $0x11c8] sm:$0xff] }
 0x229   : > { %8512 = vmatpush.bf16.msra.mxu2 %v13334_v35  ;;  %v2108_v35 = vld [vmem:[#allocation1 + $0x24] sm:$0xff] }
 0x22a   : > { %8525 = vmatpush.bf16.msra.mxu3 %v13342_v36  ;;  %v2110_v36 = vld [vmem:[#allocation1 + $0x36] sm:$0xff] }
 0x22b   : > { %8487 = vmatpush.bf16.msra.mxu0 %v13317_v42  ;;  %v13347_v42 = vld [vmem:[%s13845_s25 + $0x1100] sm:$0xff] }
 0x22c   : > { %8500 = vmatpush.bf16.msra.mxu1 %v13325_v43  ;;  %v13355_v43 = vld [vmem:[%s13845_s25 + $0x1140] sm:$0xff] }
 0x22d   : > { %8513 = vmatpush.bf16.msra.mxu2 %v13333_v45  ;;  %v13371_v45 = vld [vmem:[%s13845_s25 + $0x11c0] sm:$0xff] }
 0x22e   : > { %8526 = vmatpush.bf16.msra.mxu3 %v13341_v46  ;;  %v13386_v46 = vld [vmem:[%s13845_s25 + $0x1238] sm:$0xff] }
 0x22f   : > { %8488 = vmatpush.bf16.msra.mxu0 %v13316_v47  ;;  %v13394_v47 = vld [vmem:[%s13845_s25 + $0x1278] sm:$0xff] }
 0x230   : > { %8501 = vmatpush.bf16.msra.mxu1 %v13324_v48  ;;  %v13402_v48 = vld [vmem:[%s13845_s25 + $0x12b8] sm:$0xff] }
 0x231   : > { %8514 = vmatpush.bf16.msra.mxu2 %v13332_v49  ;;  %v13410_v49 = vld [vmem:[%s13845_s25 + $0x12f8] sm:$0xff] }
 0x232   : > { %8527 = vmatpush.bf16.msra.mxu3 %v13340_v50  ;;  %v13385_v50 = vld [vmem:[%s13845_s25 + $0x1230] sm:$0xff] }
 0x233   : > { %8489 = vmatpush.bf16.msra.mxu0 %v13315_v53  ;;  %v8283_v9 = vpop.f32.mrf.mxu0  ;;  %v13409_v53 = vld [vmem:[%s13845_s25 + $0x12f0] sm:$0xff] }
 0x234   : > { %8502 = vmatpush.bf16.msra.mxu1 %v13323_v54  ;;  %v8284_v10 = vadd.f32 %v8283_v9, %v8271_v41  ;;  %v8296_v13 = vpop.f32.mrf.mxu1  ;;  %v225_v41 = vld [vmem:[%s13840_s21 + $0x48] sm:$0xff] }
 0x235   : > { %8515 = vmatpush.bf16.msra.mxu2 %v13331_v55  ;;  %2113 = vst [vmem:[#allocation1] ss:$9 sm:$0xff] %v225_v41  ;;  %v13384_v54 = vld [vmem:[%s13845_s25 + $0x1228] sm:$0xff] }
 0x236   : > { %8528 = vmatpush.bf16.msra.mxu3 %v13339_v56  ;;  %8490 = vmatmul.bf16.vlgmr.msra.gmra.mxu0 %v2104_v61  ;;  %v8297_v16 = vadd.f32 %v8296_v13, %v8284_v10  ;;  %v13392_v55 = vld [vmem:[%s13845_s25 + $0x1268] sm:$0xff]  ;;  %v13391_v61 = vld [vmem:[%s13845_s25 + $0x1260] sm:$0xff] }
 0x237   : > { %8534 = vmatpush.bf16.msrb.mxu0 %v13354_v57  ;;  %8503 = vmatmul.bf16.vlgmr.msra.gmra.mxu1 %v2105_v63  ;;  %v13400_v56 = vld [vmem:[%s13845_s25 + $0x12a8] sm:$0xff]  ;;  %v13399_v63 = vld [vmem:[%s13845_s25 + $0x12a0] sm:$0xff] }
 0x238   : > { %8547 = vmatpush.bf16.msrb.mxu1 %v13362_v58  ;;  %8516 = vmatmul.bf16.vlgmr.msra.gmra.mxu2 %v2106_v62  ;;  %v13408_v57 = vld [vmem:[%s13845_s25 + $0x12e8] sm:$0xff] }
 0x239   : > { %8560 = vmatpush.bf16.msrb.mxu2 %v13370_v59  ;;  %8529 = vmatmul.bf16.vlgmr.msra.gmra.mxu3 %v2107_v0  ;;  %v13407_v0 = vld [vmem:[%s13845_s25 + $0x12e0] sm:$0xff]  ;;  %v13440_v41 = vld [vmem:[%s13845_s25 + $0x13e8] sm:$0xff] }
 0x23a   : > { %8573 = vmatpush.bf16.msrb.mxu3 %v13378_v60  ;;  %v13383_v60 = vld [vmem:[%s13845_s25 + $0x1220] sm:$0xff] }
 0x23b   : > { %8535 = vmatpush.bf16.msrb.mxu0 %v13353_v1  ;;  %v8309_v21 = vpop.f32.mrf.mxu2  ;;  %v8285_v24 = vpop.f32.mrf.mxu0 }
 0x23c   : > { %8548 = vmatpush.bf16.msrb.mxu1 %v13361_v2  ;;  %v8310_v22 = vadd.f32 %v8309_v21, %v8297_v16  ;;  %v8322_v23 = vpop.f32.mrf.mxu3  ;;  %v8298_v28 = vpop.f32.mrf.mxu1  ;;  %v13382_v2 = vld [vmem:[%s13845_s25 + $0x1218] sm:$0xff]  ;;  %v13380_v16 = vld [vmem:[%s13845_s25 + $0x1208] sm:$0xff]  ;;  %v13395_v24 = vld [vmem:[%s13845_s25 + $0x1280] sm:$0xff] }
 0x23d   : > { %8561 = vmatpush.bf16.msrb.mxu2 %v13369_v3  ;;  %v13390_v3 = vld [vmem:[%s13845_s25 + $0x1258] sm:$0xff] }
 0x23e   : > { %8574 = vmatpush.bf16.msrb.mxu3 %v13377_v4  ;;  %v14439_v25 = vadd.f32 %v8322_v23, %v8310_v22  ;;  %v13398_v4 = vld [vmem:[%s13845_s25 + $0x1298] sm:$0xff]  ;;  %v13379_v22 = vld [vmem:[%s13845_s25 + $0x1200] sm:$0xff] }
 0x23f   : > { %8536 = vmatpush.bf16.msrb.mxu0 %v13352_v5  ;;  %v13406_v5 = vld [vmem:[%s13845_s25 + $0x12d8] sm:$0xff]  ;;  %v13387_v23 = vld [vmem:[%s13845_s25 + $0x1240] sm:$0xff] }
 0x240   : > { %8549 = vmatpush.bf16.msrb.mxu1 %v13360_v6  ;;  %v13434_v28 = vld [vmem:[%s13845_s25 + $0x13b8] sm:$0xff] }
 0x241   : > { %8562 = vmatpush.bf16.msrb.mxu2 %v13368_v7 }
 0x242   : > { %8575 = vmatpush.bf16.msrb.mxu3 %v13376_v8 }
 0x243   : > { %8537 = vmatpush.bf16.msrb.mxu0 %v13351_v11  ;;  %v8311_v37 = vpop.f32.mrf.mxu2  ;;  %v13381_v11 = vld [vmem:[%s13845_s25 + $0x1210] sm:$0xff] }
 0x244   : > { %8550 = vmatpush.bf16.msrb.mxu1 %v13359_v12  ;;  %v8324_v40 = vpop.f32.mrf.mxu3  ;;  %v13389_v12 = vld [vmem:[%s13845_s25 + $0x1250] sm:$0xff] }
 0x245   : > { %8563 = vmatpush.bf16.msrb.mxu2 %v13367_v14  ;;  %v13397_v14 = vld [vmem:[%s13845_s25 + $0x1290] sm:$0xff]  ;;  %v13432_v40 = vld [vmem:[%s13845_s25 + $0x13a8] sm:$0xff] }
 0x246   : > { %8576 = vmatpush.bf16.msrb.mxu3 %v13375_v15  ;;  %v13405_v15 = vld [vmem:[%s13845_s25 + $0x12d0] sm:$0xff] }
 0x247   : > { %8538 = vmatpush.bf16.msrb.mxu0 %v13350_v17  ;;  %v13388_v17 = vld [vmem:[%s13845_s25 + $0x1248] sm:$0xff]  ;;  %v13441_v37 = vld [vmem:[%s13845_s25 + $0x13f0] sm:$0xff] }
 0x248   : > { %8551 = vmatpush.bf16.msrb.mxu1 %v13358_v18  ;;  %v13396_v18 = vld [vmem:[%s13845_s25 + $0x1288] sm:$0xff] }
 0x249   : > { %8564 = vmatpush.bf16.msrb.mxu2 %v13366_v19  ;;  %v13404_v19 = vld [vmem:[%s13845_s25 + $0x12c8] sm:$0xff] }
 0x24a   : > { %8577 = vmatpush.bf16.msrb.mxu3 %v13374_v20 }
 0x24b   : > { %8539 = vmatpush.bf16.msrb.mxu0 %v13349_v26  ;;  %v13418_v26 = vld [vmem:[%s13845_s25 + $0x1338] sm:$0xff] }
 0x24c   : > { %8552 = vmatpush.bf16.msrb.mxu1 %v13357_v27  ;;  %v13426_v27 = vld [vmem:[%s13845_s25 + $0x1378] sm:$0xff] }
 0x24d   : > { %8565 = vmatpush.bf16.msrb.mxu2 %v13365_v29  ;;  %v13442_v29 = vld [vmem:[%s13845_s25 + $0x13f8] sm:$0xff] }
 0x24e   : > { %8578 = vmatpush.bf16.msrb.mxu3 %v13373_v30  ;;  %v2114_v30 = vld [vmem:[#allocation1] sm:$0xff] }
 0x24f   : > { %8540 = vmatpush.bf16.msrb.mxu0 %v13348_v31  ;;  %v2116_v31 = vld [vmem:[#allocation1 + $0x12] sm:$0xff] }
 0x250   : > { %8553 = vmatpush.bf16.msrb.mxu1 %v13356_v32  ;;  %v2115_v32 = vld [vmem:[#allocation1 + $0x9] sm:$0xff] }
 0x251   : > { %8566 = vmatpush.bf16.msrb.mxu2 %v13364_v33  ;;  %v2117_v33 = vld [vmem:[#allocation1 + $0x1b] sm:$0xff] }
 0x252   : > { %8579 = vmatpush.bf16.msrb.mxu3 %v13372_v34  ;;  %v13417_v34 = vld [vmem:[%s13845_s25 + $0x1330] sm:$0xff] }
 0x253   : > { %8541 = vmatpush.bf16.msrb.mxu0 %v13347_v42  ;;  %v8335_v58 = vpop.f32.mrf.mxu0 }
 0x254   : > { %8554 = vmatpush.bf16.msrb.mxu1 %v13355_v43  ;;  %v8336_v59 = vadd.f32 %v8335_v58, %v14439_v25  ;;  %v8348_v62 = vpop.f32.mrf.mxu1  ;;  %v13403_v25 = vld [vmem:[%s13845_s25 + $0x12c0] sm:$0xff] }
 0x255   : > { %8567 = vmatpush.bf16.msrb.mxu2 %v13363_v44  ;;  %v13415_v44 = vld [vmem:[%s13845_s25 + $0x1320] sm:$0xff] }
 0x256   : > { %8580 = vmatpush.bf16.msrb.mxu3 %v13371_v45  ;;  %8542 = vmatmul.bf16.vlgmr.msrb.gmra.mxu0 %v2108_v35  ;;  %v8349_v1 = vadd.f32 %v8348_v62, %v8336_v59  ;;  %v13425_v35 = vld [vmem:[%s13845_s25 + $0x1370] sm:$0xff]  ;;  %v13423_v45 = vld [vmem:[%s13845_s25 + $0x1360] sm:$0xff] }
 0x257   : > { %8586 = vmatpush.bf16.msra.mxu0 %v13386_v46  ;;  %8555 = vmatmul.bf16.vlgmr.msrb.gmra.mxu1 %v2109_v38  ;;  %v13416_v38 = vld [vmem:[%s13845_s25 + $0x1328] sm:$0xff]  ;;  %v13413_v59 = vld [vmem:[%s13845_s25 + $0x1310] sm:$0xff] }
 0x258   : > { %8599 = vmatpush.bf16.msra.mxu1 %v13394_v47  ;;  %8568 = vmatmul.bf16.vlgmr.msrb.gmra.mxu2 %v2110_v36  ;;  %v13433_v36 = vld [vmem:[%s13845_s25 + $0x13b0] sm:$0xff]  ;;  %v13431_v47 = vld [vmem:[%s13845_s25 + $0x13a0] sm:$0xff] }
 0x259   : > { %8612 = vmatpush.bf16.msra.mxu2 %v13402_v48  ;;  %8581 = vmatmul.bf16.vlgmr.msrb.gmra.mxu3 %v2111_v39  ;;  %v13424_v39 = vld [vmem:[%s13845_s25 + $0x1368] sm:$0xff]  ;;  %v13439_v48 = vld [vmem:[%s13845_s25 + $0x13e0] sm:$0xff]  ;;  %v13429_v62 = vld [vmem:[%s13845_s25 + $0x1390] sm:$0xff] }
 0x25a   : > { %8625 = vmatpush.bf16.msra.mxu3 %v13410_v49 }
 0x25b   : > { %8587 = vmatpush.bf16.msra.mxu0 %v13385_v50  ;;  %v8361_v6 = vpop.f32.mrf.mxu2  ;;  %v8337_v9 = vpop.f32.mrf.mxu0  ;;  %v13414_v50 = vld [vmem:[%s13845_s25 + $0x1318] sm:$0xff] }
 0x25c   : > { %8600 = vmatpush.bf16.msra.mxu1 %v13393_v51  ;;  %v8362_v7 = vadd.f32 %v8361_v6, %v8349_v1  ;;  %v8374_v8 = vpop.f32.mrf.mxu3  ;;  %v8350_v13 = vpop.f32.mrf.mxu1  ;;  %v13422_v51 = vld [vmem:[%s13845_s25 + $0x1358] sm:$0xff]  ;;  %v13420_v1 = vld [vmem:[%s13845_s25 + $0x1348] sm:$0xff] }
 0x25d   : > { %8613 = vmatpush.bf16.msra.mxu2 %v13401_v52  ;;  %v13430_v52 = vld [vmem:[%s13845_s25 + $0x1398] sm:$0xff]  ;;  %v13427_v13 = vld [vmem:[%s13845_s25 + $0x1380] sm:$0xff] }
 0x25e   : > { %8626 = vmatpush.bf16.msra.mxu3 %v13409_v53  ;;  %v8375_v10 = vadd.f32 %v8374_v8, %v8362_v7  ;;  %v13438_v53 = vld [vmem:[%s13845_s25 + $0x13d8] sm:$0xff]  ;;  %v2119_v7 = vld [vmem:[#allocation1 + $0x2d] sm:$0xff] }
 0x25f   : > { %8588 = vmatpush.bf16.msra.mxu0 %v13384_v54  ;;  %v2121_v8 = vld [vmem:[#allocation1 + $0x3f] sm:$0xff] }
 0x260   : > { %8601 = vmatpush.bf16.msra.mxu1 %v13392_v55 }
 0x261   : > { %8614 = vmatpush.bf16.msra.mxu2 %v13400_v56 }
 0x262   : > { %8627 = vmatpush.bf16.msra.mxu3 %v13408_v57 }
 0x263   : > { %8589 = vmatpush.bf16.msra.mxu0 %v13383_v60  ;;  %v8363_v20 = vpop.f32.mrf.mxu2  ;;  %v13421_v60 = vld [vmem:[%s13845_s25 + $0x1350] sm:$0xff] }
 0x264   : > { %8602 = vmatpush.bf16.msra.mxu1 %v13391_v61  ;;  %v8376_v21 = vpop.f32.mrf.mxu3  ;;  %v13457_v20 = vld [vmem:[%s13845_s25 + $0x1470] sm:$0xff] }
 0x265   : > { %8615 = vmatpush.bf16.msra.mxu2 %v13399_v63  ;;  %v13437_v63 = vld [vmem:[%s13845_s25 + $0x13d0] sm:$0xff] }
 0x266   : > { %8628 = vmatpush.bf16.msra.mxu3 %v13407_v0  ;;  %v13412_v0 = vld [vmem:[%s13845_s25 + $0x1308] sm:$0xff]  ;;  %v13465_v21 = vld [vmem:[%s13845_s25 + $0x14b0] sm:$0xff] }
 0x267   : > { %8590 = vmatpush.bf16.msra.mxu0 %v13382_v2  ;;  %v13428_v2 = vld [vmem:[%s13845_s25 + $0x1388] sm:$0xff] }
 0x268   : > { %8603 = vmatpush.bf16.msra.mxu1 %v13390_v3  ;;  %v13436_v3 = vld [vmem:[%s13845_s25 + $0x13c8] sm:$0xff] }
 0x269   : > { %8616 = vmatpush.bf16.msra.mxu2 %v13398_v4  ;;  %v2118_v4 = vld [vmem:[#allocation1 + $0x24] sm:$0xff] }
 0x26a   : > { %8629 = vmatpush.bf16.msra.mxu3 %v13406_v5  ;;  %v2120_v5 = vld [vmem:[#allocation1 + $0x36] sm:$0xff] }
 0x26b   : > { %8591 = vmatpush.bf16.msra.mxu0 %v13381_v11  ;;  %v13411_v11 = vld [vmem:[%s13845_s25 + $0x1300] sm:$0xff] }
 0x26c   : > { %8604 = vmatpush.bf16.msra.mxu1 %v13389_v12  ;;  %v13419_v12 = vld [vmem:[%s13845_s25 + $0x1340] sm:$0xff] }
 0x26d   : > { %8617 = vmatpush.bf16.msra.mxu2 %v13397_v14  ;;  %v13435_v14 = vld [vmem:[%s13845_s25 + $0x13c0] sm:$0xff] }
 0x26e   : > { %8630 = vmatpush.bf16.msra.mxu3 %v13405_v15  ;;  %v13450_v15 = vld [vmem:[%s13845_s25 + $0x1438] sm:$0xff] }
 0x26f   : > { %8592 = vmatpush.bf16.msra.mxu0 %v13380_v16  ;;  %v13458_v16 = vld [vmem:[%s13845_s25 + $0x1478] sm:$0xff] }
 0x270   : > { %8605 = vmatpush.bf16.msra.mxu1 %v13388_v17  ;;  %v13466_v17 = vld [vmem:[%s13845_s25 + $0x14b8] sm:$0xff] }
 0x271   : > { %8618 = vmatpush.bf16.msra.mxu2 %v13396_v18  ;;  %v13474_v18 = vld [vmem:[%s13845_s25 + $0x14f8] sm:$0xff] }
 0x272   : > { %8631 = vmatpush.bf16.msra.mxu3 %v13404_v19  ;;  %v13449_v19 = vld [vmem:[%s13845_s25 + $0x1430] sm:$0xff] }
 0x273   : > { %8593 = vmatpush.bf16.msra.mxu0 %v13379_v22  ;;  %v8387_v42 = vpop.f32.mrf.mxu0  ;;  %v13473_v22 = vld [vmem:[%s13845_s25 + $0x14f0] sm:$0xff] }
 0x274   : > { %8606 = vmatpush.bf16.msra.mxu1 %v13387_v23  ;;  %v8388_v43 = vadd.f32 %v8387_v42, %v8375_v10  ;;  %v8400_v46 = vpop.f32.mrf.mxu1  ;;  %v226_v10 = vld [vmem:[%s13840_s21 + $0x50] sm:$0xff]  ;;  %v13448_v23 = vld [vmem:[%s13845_s25 + $0x1428] sm:$0xff] }
 0x275   : > { %8619 = vmatpush.bf16.msra.mxu2 %v13395_v24  ;;  %2123 = vst [vmem:[#allocation1] ss:$9 sm:$0xff] %v226_v10  ;;  %v13456_v24 = vld [vmem:[%s13845_s25 + $0x1468] sm:$0xff] }
 0x276   : > { %8632 = vmatpush.bf16.msra.mxu3 %v13403_v25  ;;  %8594 = vmatmul.bf16.vlgmr.msra.gmra.mxu0 %v2114_v30  ;;  %v8401_v49 = vadd.f32 %v8400_v46, %v8388_v43  ;;  %v13464_v25 = vld [vmem:[%s13845_s25 + $0x14a8] sm:$0xff]  ;;  %v13455_v30 = vld [vmem:[%s13845_s25 + $0x1460] sm:$0xff] }
 0x277   : > { %8638 = vmatpush.bf16.msrb.mxu0 %v13418_v26  ;;  %8607 = vmatmul.bf16.vlgmr.msra.gmra.mxu1 %v2115_v32  ;;  %v13472_v26 = vld [vmem:[%s13845_s25 + $0x14e8] sm:$0xff]  ;;  %v13463_v32 = vld [vmem:[%s13845_s25 + $0x14a0] sm:$0xff] }
 0x278   : > { %8651 = vmatpush.bf16.msrb.mxu1 %v13426_v27  ;;  %8620 = vmatmul.bf16.vlgmr.msra.gmra.mxu2 %v2116_v31  ;;  %v13504_v10 = vld [vmem:[%s13845_s25 + $0x15e8] sm:$0xff] }
 0x279   : > { %8664 = vmatpush.bf16.msrb.mxu2 %v13434_v28  ;;  %8633 = vmatmul.bf16.vlgmr.msra.gmra.mxu3 %v2117_v33  ;;  %v13471_v33 = vld [vmem:[%s13845_s25 + $0x14e0] sm:$0xff] }
 0x27a   : > { %8677 = vmatpush.bf16.msrb.mxu3 %v13442_v29  ;;  %v13447_v29 = vld [vmem:[%s13845_s25 + $0x1420] sm:$0xff] }
 0x27b   : > { %8639 = vmatpush.bf16.msrb.mxu0 %v13417_v34  ;;  %v8413_v54 = vpop.f32.mrf.mxu2  ;;  %v8389_v57 = vpop.f32.mrf.mxu0 }
 0x27c   : > { %8652 = vmatpush.bf16.msrb.mxu1 %v13425_v35  ;;  %v8414_v55 = vadd.f32 %v8413_v54, %v8401_v49  ;;  %v8426_v56 = vpop.f32.mrf.mxu3  ;;  %v8402_v61 = vpop.f32.mrf.mxu1  ;;  %v13446_v35 = vld [vmem:[%s13845_s25 + $0x1418] sm:$0xff]  ;;  %v13444_v49 = vld [vmem:[%s13845_s25 + $0x1408] sm:$0xff]  ;;  %v13459_v57 = vld [vmem:[%s13845_s25 + $0x1480] sm:$0xff] }
 0x27d   : > { %8665 = vmatpush.bf16.msrb.mxu2 %v13433_v36  ;;  %v13454_v36 = vld [vmem:[%s13845_s25 + $0x1458] sm:$0xff] }
 0x27e   : > { %8678 = vmatpush.bf16.msrb.mxu3 %v13441_v37  ;;  %v14507_v58 = vadd.f32 %v8426_v56, %v8414_v55  ;;  %v13462_v37 = vld [vmem:[%s13845_s25 + $0x1498] sm:$0xff]  ;;  %v13443_v55 = vld [vmem:[%s13845_s25 + $0x1400] sm:$0xff] }
 0x27f   : > { %8640 = vmatpush.bf16.msrb.mxu0 %v13416_v38  ;;  %v13470_v38 = vld [vmem:[%s13845_s25 + $0x14d8] sm:$0xff]  ;;  %v13451_v56 = vld [vmem:[%s13845_s25 + $0x1440] sm:$0xff] }
 0x280   : > { %8653 = vmatpush.bf16.msrb.mxu1 %v13424_v39  ;;  %v13498_v61 = vld [vmem:[%s13845_s25 + $0x15b8] sm:$0xff] }
 0x281   : > { %8666 = vmatpush.bf16.msrb.mxu2 %v13432_v40 }
 0x282   : > { %8679 = vmatpush.bf16.msrb.mxu3 %v13440_v41 }
 0x283   : > { %8641 = vmatpush.bf16.msrb.mxu0 %v13415_v44  ;;  %v8415_v6 = vpop.f32.mrf.mxu2  ;;  %v13445_v44 = vld [vmem:[%s13845_s25 + $0x1410] sm:$0xff] }
 0x284   : > { %8654 = vmatpush.bf16.msrb.mxu1 %v13423_v45  ;;  %v8428_v9 = vpop.f32.mrf.mxu3  ;;  %v13453_v45 = vld [vmem:[%s13845_s25 + $0x1450] sm:$0xff] }
 0x285   : > { %8667 = vmatpush.bf16.msrb.mxu2 %v13431_v47  ;;  %v13461_v47 = vld [vmem:[%s13845_s25 + $0x1490] sm:$0xff]  ;;  %v13496_v9 = vld [vmem:[%s13845_s25 + $0x15a8] sm:$0xff] }
 0x286   : > { %8680 = vmatpush.bf16.msrb.mxu3 %v13439_v48  ;;  %v13469_v48 = vld [vmem:[%s13845_s25 + $0x14d0] sm:$0xff] }
 0x287   : > { %8642 = vmatpush.bf16.msrb.mxu0 %v13414_v50  ;;  %v13452_v50 = vld [vmem:[%s13845_s25 + $0x1448] sm:$0xff]  ;;  %v13505_v6 = vld [vmem:[%s13845_s25 + $0x15f0] sm:$0xff] }
 0x288   : > { %8655 = vmatpush.bf16.msrb.mxu1 %v13422_v51  ;;  %v13460_v51 = vld [vmem:[%s13845_s25 + $0x1488] sm:$0xff] }
 0x289   : > { %8668 = vmatpush.bf16.msrb.mxu2 %v13430_v52  ;;  %v13468_v52 = vld [vmem:[%s13845_s25 + $0x14c8] sm:$0xff] }
 0x28a   : > { %8681 = vmatpush.bf16.msrb.mxu3 %v13438_v53 }
 0x28b   : > { %8643 = vmatpush.bf16.msrb.mxu0 %v13413_v59  ;;  %v13482_v59 = vld [vmem:[%s13845_s25 + $0x1538] sm:$0xff] }
 0x28c   : > { %8656 = vmatpush.bf16.msrb.mxu1 %v13421_v60  ;;  %v13490_v60 = vld [vmem:[%s13845_s25 + $0x1578] sm:$0xff] }
 0x28d   : > { %8669 = vmatpush.bf16.msrb.mxu2 %v13429_v62  ;;  %v13506_v62 = vld [vmem:[%s13845_s25 + $0x15f8] sm:$0xff] }
 0x28e   : > { %8682 = vmatpush.bf16.msrb.mxu3 %v13437_v63  ;;  %v2124_v63 = vld [vmem:[#allocation1] sm:$0xff] }
 0x28f   : > { %8644 = vmatpush.bf16.msrb.mxu0 %v13412_v0  ;;  %v2126_v0 = vld [vmem:[#allocation1 + $0x12] sm:$0xff] }
 0x290   : > { %8657 = vmatpush.bf16.msrb.mxu1 %v13420_v1  ;;  %v2125_v1 = vld [vmem:[#allocation1 + $0x9] sm:$0xff] }
 0x291   : > { %8670 = vmatpush.bf16.msrb.mxu2 %v13428_v2  ;;  %v2127_v2 = vld [vmem:[#allocation1 + $0x1b] sm:$0xff] }
 0x292   : > { %8683 = vmatpush.bf16.msrb.mxu3 %v13436_v3  ;;  %v13481_v3 = vld [vmem:[%s13845_s25 + $0x1530] sm:$0xff] }
 0x293   : > { %8645 = vmatpush.bf16.msrb.mxu0 %v13411_v11  ;;  %v8439_v27 = vpop.f32.mrf.mxu0 }
 0x294   : > { %8658 = vmatpush.bf16.msrb.mxu1 %v13419_v12  ;;  %v8440_v28 = vadd.f32 %v8439_v27, %v14507_v58  ;;  %v8452_v31 = vpop.f32.mrf.mxu1  ;;  %v13467_v58 = vld [vmem:[%s13845_s25 + $0x14c0] sm:$0xff] }
 0x295   : > { %8671 = vmatpush.bf16.msrb.mxu2 %v13427_v13  ;;  %v13479_v13 = vld [vmem:[%s13845_s25 + $0x1520] sm:$0xff] }
 0x296   : > { %8684 = vmatpush.bf16.msrb.mxu3 %v13435_v14  ;;  %8646 = vmatmul.bf16.vlgmr.msrb.gmra.mxu0 %v2118_v4  ;;  %v8453_v34 = vadd.f32 %v8452_v31, %v8440_v28  ;;  %v13489_v4 = vld [vmem:[%s13845_s25 + $0x1570] sm:$0xff]  ;;  %v13487_v14 = vld [vmem:[%s13845_s25 + $0x1560] sm:$0xff] }
 0x297   : > { %8690 = vmatpush.bf16.msra.mxu0 %v13450_v15  ;;  %8659 = vmatmul.bf16.vlgmr.msrb.gmra.mxu1 %v2119_v7  ;;  %v13480_v7 = vld [vmem:[%s13845_s25 + $0x1528] sm:$0xff]  ;;  %v13477_v28 = vld [vmem:[%s13845_s25 + $0x1510] sm:$0xff] }
 0x298   : > { %8703 = vmatpush.bf16.msra.mxu1 %v13458_v16  ;;  %8672 = vmatmul.bf16.vlgmr.msrb.gmra.mxu2 %v2120_v5  ;;  %v13497_v5 = vld [vmem:[%s13845_s25 + $0x15b0] sm:$0xff]  ;;  %v13495_v16 = vld [vmem:[%s13845_s25 + $0x15a0] sm:$0xff] }
 0x299   : > { %8716 = vmatpush.bf16.msra.mxu2 %v13466_v17  ;;  %8685 = vmatmul.bf16.vlgmr.msrb.gmra.mxu3 %v2121_v8  ;;  %v13488_v8 = vld [vmem:[%s13845_s25 + $0x1568] sm:$0xff]  ;;  %v13503_v17 = vld [vmem:[%s13845_s25 + $0x15e0] sm:$0xff]  ;;  %v13493_v31 = vld [vmem:[%s13845_s25 + $0x1590] sm:$0xff] }
 0x29a   : > { %8729 = vmatpush.bf16.msra.mxu3 %v13474_v18 }
 0x29b   : > { %8691 = vmatpush.bf16.msra.mxu0 %v13449_v19  ;;  %v8465_v39 = vpop.f32.mrf.mxu2  ;;  %v8441_v42 = vpop.f32.mrf.mxu0  ;;  %v13478_v19 = vld [vmem:[%s13845_s25 + $0x1518] sm:$0xff] }
 0x29c   : > { %8704 = vmatpush.bf16.msra.mxu1 %v13457_v20  ;;  %v8466_v40 = vadd.f32 %v8465_v39, %v8453_v34  ;;  %v8478_v41 = vpop.f32.mrf.mxu3  ;;  %v8454_v46 = vpop.f32.mrf.mxu1  ;;  %v13486_v20 = vld [vmem:[%s13845_s25 + $0x1558] sm:$0xff]  ;;  %v13484_v34 = vld [vmem:[%s13845_s25 + $0x1548] sm:$0xff] }
 0x29d   : > { %8717 = vmatpush.bf16.msra.mxu2 %v13465_v21  ;;  %v13494_v21 = vld [vmem:[%s13845_s25 + $0x1598] sm:$0xff]  ;;  %v13491_v46 = vld [vmem:[%s13845_s25 + $0x1580] sm:$0xff] }
 0x29e   : > { %8730 = vmatpush.bf16.msra.mxu3 %v13473_v22  ;;  %v8479_v43 = vadd.f32 %v8478_v41, %v8466_v40  ;;  %v13502_v22 = vld [vmem:[%s13845_s25 + $0x15d8] sm:$0xff]  ;;  %v2129_v40 = vld [vmem:[#allocation1 + $0x2d] sm:$0xff] }
 0x29f   : > { %8692 = vmatpush.bf16.msra.mxu0 %v13448_v23  ;;  %v2131_v41 = vld [vmem:[#allocation1 + $0x3f] sm:$0xff] }
 0x2a0   : > { %8705 = vmatpush.bf16.msra.mxu1 %v13456_v24 }
 0x2a1   : > { %8718 = vmatpush.bf16.msra.mxu2 %v13464_v25 }
 0x2a2   : > { %8731 = vmatpush.bf16.msra.mxu3 %v13472_v26 }
 0x2a3   : > { %8693 = vmatpush.bf16.msra.mxu0 %v13447_v29  ;;  %v8467_v53 = vpop.f32.mrf.mxu2  ;;  %v13485_v29 = vld [vmem:[%s13845_s25 + $0x1550] sm:$0xff] }
 0x2a4   : > { %8706 = vmatpush.bf16.msra.mxu1 %v13455_v30  ;;  %v8480_v54 = vpop.f32.mrf.mxu3  ;;  %v13521_v53 = vld [vmem:[%s13845_s25 + $0x1670] sm:$0xff] }
 0x2a5   : > { %8719 = vmatpush.bf16.msra.mxu2 %v13463_v32  ;;  %v13501_v32 = vld [vmem:[%s13845_s25 + $0x15d0] sm:$0xff] }
 0x2a6   : > { %8732 = vmatpush.bf16.msra.mxu3 %v13471_v33  ;;  %v13476_v33 = vld [vmem:[%s13845_s25 + $0x1508] sm:$0xff]  ;;  %v13529_v54 = vld [vmem:[%s13845_s25 + $0x16b0] sm:$0xff] }
 0x2a7   : > { %8694 = vmatpush.bf16.msra.mxu0 %v13446_v35  ;;  %v13492_v35 = vld [vmem:[%s13845_s25 + $0x1588] sm:$0xff] }
 0x2a8   : > { %8707 = vmatpush.bf16.msra.mxu1 %v13454_v36  ;;  %v13500_v36 = vld [vmem:[%s13845_s25 + $0x15c8] sm:$0xff] }
 0x2a9   : > { %8720 = vmatpush.bf16.msra.mxu2 %v13462_v37  ;;  %v2128_v37 = vld [vmem:[#allocation1 + $0x24] sm:$0xff] }
 0x2aa   : > { %8733 = vmatpush.bf16.msra.mxu3 %v13470_v38  ;;  %v2130_v38 = vld [vmem:[#allocation1 + $0x36] sm:$0xff] }
 0x2ab   : > { %8695 = vmatpush.bf16.msra.mxu0 %v13445_v44  ;;  %v13475_v44 = vld [vmem:[%s13845_s25 + $0x1500] sm:$0xff] }
 0x2ac   : > { %8708 = vmatpush.bf16.msra.mxu1 %v13453_v45  ;;  %v13483_v45 = vld [vmem:[%s13845_s25 + $0x1540] sm:$0xff] }
 0x2ad   : > { %8721 = vmatpush.bf16.msra.mxu2 %v13461_v47  ;;  %v13499_v47 = vld [vmem:[%s13845_s25 + $0x15c0] sm:$0xff] }
 0x2ae   : > { %8734 = vmatpush.bf16.msra.mxu3 %v13469_v48  ;;  %v13514_v48 = vld [vmem:[%s13845_s25 + $0x1638] sm:$0xff] }
 0x2af   : > { %8696 = vmatpush.bf16.msra.mxu0 %v13444_v49  ;;  %v13522_v49 = vld [vmem:[%s13845_s25 + $0x1678] sm:$0xff] }
 0x2b0   : > { %8709 = vmatpush.bf16.msra.mxu1 %v13452_v50  ;;  %v13530_v50 = vld [vmem:[%s13845_s25 + $0x16b8] sm:$0xff] }
 0x2b1   : > { %8722 = vmatpush.bf16.msra.mxu2 %v13460_v51  ;;  %v13538_v51 = vld [vmem:[%s13845_s25 + $0x16f8] sm:$0xff] }
 0x2b2   : > { %8735 = vmatpush.bf16.msra.mxu3 %v13468_v52  ;;  %v13513_v52 = vld [vmem:[%s13845_s25 + $0x1630] sm:$0xff] }
 0x2b3   : > { %8697 = vmatpush.bf16.msra.mxu0 %v13443_v55  ;;  %v8491_v11 = vpop.f32.mrf.mxu0  ;;  %v13537_v55 = vld [vmem:[%s13845_s25 + $0x16f0] sm:$0xff] }
 0x2b4   : > { %8710 = vmatpush.bf16.msra.mxu1 %v13451_v56  ;;  %v8492_v12 = vadd.f32 %v8491_v11, %v8479_v43  ;;  %v8504_v15 = vpop.f32.mrf.mxu1  ;;  %v227_v43 = vld [vmem:[%s13840_s21 + $0x58] sm:$0xff]  ;;  %v13512_v56 = vld [vmem:[%s13845_s25 + $0x1628] sm:$0xff] }
 0x2b5   : > { %8723 = vmatpush.bf16.msra.mxu2 %v13459_v57  ;;  %2133 = vst [vmem:[#allocation1] ss:$9 sm:$0xff] %v227_v43  ;;  %v13520_v57 = vld [vmem:[%s13845_s25 + $0x1668] sm:$0xff] }
 0x2b6   : > { %8736 = vmatpush.bf16.msra.mxu3 %v13467_v58  ;;  %8698 = vmatmul.bf16.vlgmr.msra.gmra.mxu0 %v2124_v63  ;;  %v8505_v18 = vadd.f32 %v8504_v15, %v8492_v12  ;;  %v13528_v58 = vld [vmem:[%s13845_s25 + $0x16a8] sm:$0xff]  ;;  %v13519_v63 = vld [vmem:[%s13845_s25 + $0x1660] sm:$0xff] }
 0x2b7   : > { %8742 = vmatpush.bf16.msrb.mxu0 %v13482_v59  ;;  %8711 = vmatmul.bf16.vlgmr.msra.gmra.mxu1 %v2125_v1  ;;  %v13536_v59 = vld [vmem:[%s13845_s25 + $0x16e8] sm:$0xff]  ;;  %v13527_v1 = vld [vmem:[%s13845_s25 + $0x16a0] sm:$0xff] }
 0x2b8   : > { %8755 = vmatpush.bf16.msrb.mxu1 %v13490_v60  ;;  %8724 = vmatmul.bf16.vlgmr.msra.gmra.mxu2 %v2126_v0  ;;  %v13568_v43 = vld [vmem:[%s13845_s25 + $0x17e8] sm:$0xff] }
 0x2b9   : > { %8768 = vmatpush.bf16.msrb.mxu2 %v13498_v61  ;;  %8737 = vmatmul.bf16.vlgmr.msra.gmra.mxu3 %v2127_v2  ;;  %v13535_v2 = vld [vmem:[%s13845_s25 + $0x16e0] sm:$0xff] }
 0x2ba   : > { %8781 = vmatpush.bf16.msrb.mxu3 %v13506_v62  ;;  %v13511_v62 = vld [vmem:[%s13845_s25 + $0x1620] sm:$0xff] }
 0x2bb   : > { %8743 = vmatpush.bf16.msrb.mxu0 %v13481_v3  ;;  %v8517_v23 = vpop.f32.mrf.mxu2  ;;  %v8493_v26 = vpop.f32.mrf.mxu0 }
 0x2bc   : > { %8756 = vmatpush.bf16.msrb.mxu1 %v13489_v4  ;;  %v8518_v24 = vadd.f32 %v8517_v23, %v8505_v18  ;;  %v8530_v25 = vpop.f32.mrf.mxu3  ;;  %v8506_v30 = vpop.f32.mrf.mxu1  ;;  %v13510_v4 = vld [vmem:[%s13845_s25 + $0x1618] sm:$0xff]  ;;  %v13508_v18 = vld [vmem:[%s13845_s25 + $0x1608] sm:$0xff]  ;;  %v13523_v26 = vld [vmem:[%s13845_s25 + $0x1680] sm:$0xff] }
 0x2bd   : > { %8769 = vmatpush.bf16.msrb.mxu2 %v13497_v5  ;;  %v13518_v5 = vld [vmem:[%s13845_s25 + $0x1658] sm:$0xff] }
 0x2be   : > { %8782 = vmatpush.bf16.msrb.mxu3 %v13505_v6  ;;  %v14575_v27 = vadd.f32 %v8530_v25, %v8518_v24  ;;  %v13526_v6 = vld [vmem:[%s13845_s25 + $0x1698] sm:$0xff]  ;;  %v13507_v24 = vld [vmem:[%s13845_s25 + $0x1600] sm:$0xff] }
 0x2bf   : > { %8744 = vmatpush.bf16.msrb.mxu0 %v13480_v7  ;;  %v13534_v7 = vld [vmem:[%s13845_s25 + $0x16d8] sm:$0xff]  ;;  %v13515_v25 = vld [vmem:[%s13845_s25 + $0x1640] sm:$0xff] }
 0x2c0   : > { %8757 = vmatpush.bf16.msrb.mxu1 %v13488_v8  ;;  %v13562_v30 = vld [vmem:[%s13845_s25 + $0x17b8] sm:$0xff] }
 0x2c1   : > { %8770 = vmatpush.bf16.msrb.mxu2 %v13496_v9 }
 0x2c2   : > { %8783 = vmatpush.bf16.msrb.mxu3 %v13504_v10 }
 0x2c3   : > { %8745 = vmatpush.bf16.msrb.mxu0 %v13479_v13  ;;  %v8519_v39 = vpop.f32.mrf.mxu2  ;;  %v13509_v13 = vld [vmem:[%s13845_s25 + $0x1610] sm:$0xff] }
 0x2c4   : > { %8758 = vmatpush.bf16.msrb.mxu1 %v13487_v14  ;;  %v8532_v42 = vpop.f32.mrf.mxu3  ;;  %v13517_v14 = vld [vmem:[%s13845_s25 + $0x1650] sm:$0xff] }
 0x2c5   : > { %8771 = vmatpush.bf16.msrb.mxu2 %v13495_v16  ;;  %v13525_v16 = vld [vmem:[%s13845_s25 + $0x1690] sm:$0xff]  ;;  %v13560_v42 = vld [vmem:[%s13845_s25 + $0x17a8] sm:$0xff] }
 0x2c6   : > { %8784 = vmatpush.bf16.msrb.mxu3 %v13503_v17  ;;  %v13533_v17 = vld [vmem:[%s13845_s25 + $0x16d0] sm:$0xff] }
 0x2c7   : > { %8746 = vmatpush.bf16.msrb.mxu0 %v13478_v19  ;;  %v13516_v19 = vld [vmem:[%s13845_s25 + $0x1648] sm:$0xff]  ;;  %v13569_v39 = vld [vmem:[%s13845_s25 + $0x17f0] sm:$0xff] }
 0x2c8   : > { %8759 = vmatpush.bf16.msrb.mxu1 %v13486_v20  ;;  %v13524_v20 = vld [vmem:[%s13845_s25 + $0x1688] sm:$0xff] }
 0x2c9   : > { %8772 = vmatpush.bf16.msrb.mxu2 %v13494_v21  ;;  %v13532_v21 = vld [vmem:[%s13845_s25 + $0x16c8] sm:$0xff] }
 0x2ca   : > { %8785 = vmatpush.bf16.msrb.mxu3 %v13502_v22 }
 0x2cb   : > { %8747 = vmatpush.bf16.msrb.mxu0 %v13477_v28  ;;  %v13546_v28 = vld [vmem:[%s13845_s25 + $0x1738] sm:$0xff] }
 0x2cc   : > { %8760 = vmatpush.bf16.msrb.mxu1 %v13485_v29  ;;  %v13554_v29 = vld [vmem:[%s13845_s25 + $0x1778] sm:$0xff] }
 0x2cd   : > { %8773 = vmatpush.bf16.msrb.mxu2 %v13493_v31  ;;  %v13570_v31 = vld [vmem:[%s13845_s25 + $0x17f8] sm:$0xff] }
 0x2ce   : > { %8786 = vmatpush.bf16.msrb.mxu3 %v13501_v32  ;;  %v2134_v32 = vld [vmem:[#allocation1] sm:$0xff] }
 0x2cf   : > { %8748 = vmatpush.bf16.msrb.mxu0 %v13476_v33  ;;  %v2136_v33 = vld [vmem:[#allocation1 + $0x12] sm:$0xff] }
 0x2d0   : > { %8761 = vmatpush.bf16.msrb.mxu1 %v13484_v34  ;;  %v2135_v34 = vld [vmem:[#allocation1 + $0x9] sm:$0xff] }
 0x2d1   : > { %8774 = vmatpush.bf16.msrb.mxu2 %v13492_v35  ;;  %v2137_v35 = vld [vmem:[#allocation1 + $0x1b] sm:$0xff] }
 0x2d2   : > { %8787 = vmatpush.bf16.msrb.mxu3 %v13500_v36  ;;  %v13545_v36 = vld [vmem:[%s13845_s25 + $0x1730] sm:$0xff] }
 0x2d3   : > { %8749 = vmatpush.bf16.msrb.mxu0 %v13475_v44  ;;  %v8543_v60 = vpop.f32.mrf.mxu0 }
 0x2d4   : > { %8762 = vmatpush.bf16.msrb.mxu1 %v13483_v45  ;;  %v8544_v61 = vadd.f32 %v8543_v60, %v14575_v27  ;;  %v8556_v0 = vpop.f32.mrf.mxu1  ;;  %v13531_v27 = vld [vmem:[%s13845_s25 + $0x16c0] sm:$0xff] }
 0x2d5   : > { %8775 = vmatpush.bf16.msrb.mxu2 %v13491_v46  ;;  %v13543_v46 = vld [vmem:[%s13845_s25 + $0x1720] sm:$0xff] }
 0x2d6   : > { %8788 = vmatpush.bf16.msrb.mxu3 %v13499_v47  ;;  %8750 = vmatmul.bf16.vlgmr.msrb.gmra.mxu0 %v2128_v37  ;;  %v8557_v3 = vadd.f32 %v8556_v0, %v8544_v61  ;;  %v13553_v37 = vld [vmem:[%s13845_s25 + $0x1770] sm:$0xff]  ;;  %v13551_v47 = vld [vmem:[%s13845_s25 + $0x1760] sm:$0xff] }
 0x2d7   : > { %8794 = vmatpush.bf16.msra.mxu0 %v13514_v48  ;;  %8763 = vmatmul.bf16.vlgmr.msrb.gmra.mxu1 %v2129_v40  ;;  %v13544_v40 = vld [vmem:[%s13845_s25 + $0x1728] sm:$0xff]  ;;  %v13541_v61 = vld [vmem:[%s13845_s25 + $0x1710] sm:$0xff] }
 0x2d8   : > { %8807 = vmatpush.bf16.msra.mxu1 %v13522_v49  ;;  %8776 = vmatmul.bf16.vlgmr.msrb.gmra.mxu2 %v2130_v38  ;;  %v13561_v38 = vld [vmem:[%s13845_s25 + $0x17b0] sm:$0xff]  ;;  %v13559_v49 = vld [vmem:[%s13845_s25 + $0x17a0] sm:$0xff] }
 0x2d9   : > { %8820 = vmatpush.bf16.msra.mxu2 %v13530_v50  ;;  %8789 = vmatmul.bf16.vlgmr.msrb.gmra.mxu3 %v2131_v41  ;;  %v13552_v41 = vld [vmem:[%s13845_s25 + $0x1768] sm:$0xff]  ;;  %v13567_v50 = vld [vmem:[%s13845_s25 + $0x17e0] sm:$0xff]  ;;  %v13557_v0 = vld [vmem:[%s13845_s25 + $0x1790] sm:$0xff] }
 0x2da   : > { %8833 = vmatpush.bf16.msra.mxu3 %v13538_v51 }
 0x2db   : > { %8795 = vmatpush.bf16.msra.mxu0 %v13513_v52  ;;  %v8569_v8 = vpop.f32.mrf.mxu2  ;;  %v8545_v11 = vpop.f32.mrf.mxu0  ;;  %v13542_v52 = vld [vmem:[%s13845_s25 + $0x1718] sm:$0xff] }
 0x2dc   : > { %8808 = vmatpush.bf16.msra.mxu1 %v13521_v53  ;;  %v8570_v9 = vadd.f32 %v8569_v8, %v8557_v3  ;;  %v8582_v10 = vpop.f32.mrf.mxu3  ;;  %v8558_v15 = vpop.f32.mrf.mxu1  ;;  %v13550_v53 = vld [vmem:[%s13845_s25 + $0x1758] sm:$0xff]  ;;  %v13548_v3 = vld [vmem:[%s13845_s25 + $0x1748] sm:$0xff] }
 0x2dd   : > { %8821 = vmatpush.bf16.msra.mxu2 %v13529_v54  ;;  %v13558_v54 = vld [vmem:[%s13845_s25 + $0x1798] sm:$0xff]  ;;  %v13555_v15 = vld [vmem:[%s13845_s25 + $0x1780] sm:$0xff] }
 0x2de   : > { %8834 = vmatpush.bf16.msra.mxu3 %v13537_v55  ;;  %v8583_v12 = vadd.f32 %v8582_v10, %v8570_v9  ;;  %v13566_v55 = vld [vmem:[%s13845_s25 + $0x17d8] sm:$0xff]  ;;  %v2139_v9 = vld [vmem:[#allocation1 + $0x2d] sm:$0xff] }
 0x2df   : > { %8796 = vmatpush.bf16.msra.mxu0 %v13512_v56  ;;  %v2141_v10 = vld [vmem:[#allocation1 + $0x3f] sm:$0xff] }
 0x2e0   : > { %8809 = vmatpush.bf16.msra.mxu1 %v13520_v57 }
 0x2e1   : > { %8822 = vmatpush.bf16.msra.mxu2 %v13528_v58 }
 0x2e2   : > { %8835 = vmatpush.bf16.msra.mxu3 %v13536_v59 }
 0x2e3   : > { %8797 = vmatpush.bf16.msra.mxu0 %v13511_v62  ;;  %v8571_v22 = vpop.f32.mrf.mxu2  ;;  %v13549_v62 = vld [vmem:[%s13845_s25 + $0x1750] sm:$0xff] }
 0x2e4   : > { %8810 = vmatpush.bf16.msra.mxu1 %v13519_v63  ;;  %v8584_v23 = vpop.f32.mrf.mxu3  ;;  %v13585_v22 = vld [vmem:[%s13845_s25 + $0x1870] sm:$0xff] }
 0x2e5   : > { %8823 = vmatpush.bf16.msra.mxu2 %v13527_v1  ;;  %v13565_v1 = vld [vmem:[%s13845_s25 + $0x17d0] sm:$0xff] }
 0x2e6   : > { %8836 = vmatpush.bf16.msra.mxu3 %v13535_v2  ;;  %v13540_v2 = vld [vmem:[%s13845_s25 + $0x1708] sm:$0xff]  ;;  %v13593_v23 = vld [vmem:[%s13845_s25 + $0x18b0] sm:$0xff] }
 0x2e7   : > { %8798 = vmatpush.bf16.msra.mxu0 %v13510_v4  ;;  %v13556_v4 = vld [vmem:[%s13845_s25 + $0x1788] sm:$0xff] }
 0x2e8   : > { %8811 = vmatpush.bf16.msra.mxu1 %v13518_v5  ;;  %v13564_v5 = vld [vmem:[%s13845_s25 + $0x17c8] sm:$0xff] }
 0x2e9   : > { %8824 = vmatpush.bf16.msra.mxu2 %v13526_v6  ;;  %v2138_v6 = vld [vmem:[#allocation1 + $0x24] sm:$0xff] }
 0x2ea   : > { %8837 = vmatpush.bf16.msra.mxu3 %v13534_v7  ;;  %v2140_v7 = vld [vmem:[#allocation1 + $0x36] sm:$0xff] }
 0x2eb   : > { %8799 = vmatpush.bf16.msra.mxu0 %v13509_v13  ;;  %v13539_v13 = vld [vmem:[%s13845_s25 + $0x1700] sm:$0xff] }
 0x2ec   : > { %8812 = vmatpush.bf16.msra.mxu1 %v13517_v14  ;;  %v13547_v14 = vld [vmem:[%s13845_s25 + $0x1740] sm:$0xff] }
 0x2ed   : > { %8825 = vmatpush.bf16.msra.mxu2 %v13525_v16  ;;  %v13563_v16 = vld [vmem:[%s13845_s25 + $0x17c0] sm:$0xff] }
 0x2ee   : > { %8838 = vmatpush.bf16.msra.mxu3 %v13533_v17  ;;  %v13578_v17 = vld [vmem:[%s13845_s25 + $0x1838] sm:$0xff] }
 0x2ef   : > { %8800 = vmatpush.bf16.msra.mxu0 %v13508_v18  ;;  %v13586_v18 = vld [vmem:[%s13845_s25 + $0x1878] sm:$0xff] }
 0x2f0   : > { %8813 = vmatpush.bf16.msra.mxu1 %v13516_v19  ;;  %v13594_v19 = vld [vmem:[%s13845_s25 + $0x18b8] sm:$0xff] }
 0x2f1   : > { %8826 = vmatpush.bf16.msra.mxu2 %v13524_v20  ;;  %v13602_v20 = vld [vmem:[%s13845_s25 + $0x18f8] sm:$0xff] }
 0x2f2   : > { %8839 = vmatpush.bf16.msra.mxu3 %v13532_v21  ;;  %v13577_v21 = vld [vmem:[%s13845_s25 + $0x1830] sm:$0xff] }
 0x2f3   : > { %8801 = vmatpush.bf16.msra.mxu0 %v13507_v24  ;;  %v8595_v44 = vpop.f32.mrf.mxu0  ;;  %v13601_v24 = vld [vmem:[%s13845_s25 + $0x18f0] sm:$0xff] }
 0x2f4   : > { %8814 = vmatpush.bf16.msra.mxu1 %v13515_v25  ;;  %v8596_v45 = vadd.f32 %v8595_v44, %v8583_v12  ;;  %v8608_v48 = vpop.f32.mrf.mxu1  ;;  %v228_v12 = vld [vmem:[%s13840_s21 + $0x60] sm:$0xff]  ;;  %v13576_v25 = vld [vmem:[%s13845_s25 + $0x1828] sm:$0xff] }
 0x2f5   : > { %8827 = vmatpush.bf16.msra.mxu2 %v13523_v26  ;;  %2143 = vst [vmem:[#allocation1] ss:$9 sm:$0xff] %v228_v12  ;;  %v13584_v26 = vld [vmem:[%s13845_s25 + $0x1868] sm:$0xff] }
 0x2f6   : > { %8840 = vmatpush.bf16.msra.mxu3 %v13531_v27  ;;  %8802 = vmatmul.bf16.vlgmr.msra.gmra.mxu0 %v2134_v32  ;;  %v8609_v51 = vadd.f32 %v8608_v48, %v8596_v45  ;;  %v13592_v27 = vld [vmem:[%s13845_s25 + $0x18a8] sm:$0xff]  ;;  %v13583_v32 = vld [vmem:[%s13845_s25 + $0x1860] sm:$0xff] }
 0x2f7   : > { %8846 = vmatpush.bf16.msrb.mxu0 %v13546_v28  ;;  %8815 = vmatmul.bf16.vlgmr.msra.gmra.mxu1 %v2135_v34  ;;  %v13600_v28 = vld [vmem:[%s13845_s25 + $0x18e8] sm:$0xff]  ;;  %v13591_v34 = vld [vmem:[%s13845_s25 + $0x18a0] sm:$0xff] }
 0x2f8   : > { %8859 = vmatpush.bf16.msrb.mxu1 %v13554_v29  ;;  %8828 = vmatmul.bf16.vlgmr.msra.gmra.mxu2 %v2136_v33  ;;  %v13632_v12 = vld [vmem:[%s13845_s25 + $0x19e8] sm:$0xff] }
 0x2f9   : > { %8872 = vmatpush.bf16.msrb.mxu2 %v13562_v30  ;;  %8841 = vmatmul.bf16.vlgmr.msra.gmra.mxu3 %v2137_v35  ;;  %v13599_v35 = vld [vmem:[%s13845_s25 + $0x18e0] sm:$0xff] }
 0x2fa   : > { %8885 = vmatpush.bf16.msrb.mxu3 %v13570_v31  ;;  %v13575_v31 = vld [vmem:[%s13845_s25 + $0x1820] sm:$0xff] }
 0x2fb   : > { %8847 = vmatpush.bf16.msrb.mxu0 %v13545_v36  ;;  %v8621_v56 = vpop.f32.mrf.mxu2  ;;  %v8597_v59 = vpop.f32.mrf.mxu0 }
 0x2fc   : > { %8860 = vmatpush.bf16.msrb.mxu1 %v13553_v37  ;;  %v8622_v57 = vadd.f32 %v8621_v56, %v8609_v51  ;;  %v8634_v58 = vpop.f32.mrf.mxu3  ;;  %v8610_v63 = vpop.f32.mrf.mxu1  ;;  %v13574_v37 = vld [vmem:[%s13845_s25 + $0x1818] sm:$0xff]  ;;  %v13572_v51 = vld [vmem:[%s13845_s25 + $0x1808] sm:$0xff]  ;;  %v13587_v59 = vld [vmem:[%s13845_s25 + $0x1880] sm:$0xff] }
 0x2fd   : > { %8873 = vmatpush.bf16.msrb.mxu2 %v13561_v38  ;;  %v13582_v38 = vld [vmem:[%s13845_s25 + $0x1858] sm:$0xff] }
 0x2fe   : > { %8886 = vmatpush.bf16.msrb.mxu3 %v13569_v39  ;;  %v14643_v60 = vadd.f32 %v8634_v58, %v8622_v57  ;;  %v13590_v39 = vld [vmem:[%s13845_s25 + $0x1898] sm:$0xff]  ;;  %v13571_v57 = vld [vmem:[%s13845_s25 + $0x1800] sm:$0xff] }
 0x2ff   : > { %8848 = vmatpush.bf16.msrb.mxu0 %v13544_v40  ;;  %v13598_v40 = vld [vmem:[%s13845_s25 + $0x18d8] sm:$0xff]  ;;  %v13579_v58 = vld [vmem:[%s13845_s25 + $0x1840] sm:$0xff] }
 0x300   : > { %8861 = vmatpush.bf16.msrb.mxu1 %v13552_v41  ;;  %v13626_v63 = vld [vmem:[%s13845_s25 + $0x19b8] sm:$0xff] }
 0x301   : > { %8874 = vmatpush.bf16.msrb.mxu2 %v13560_v42 }
 0x302   : > { %8887 = vmatpush.bf16.msrb.mxu3 %v13568_v43 }
 0x303   : > { %8849 = vmatpush.bf16.msrb.mxu0 %v13543_v46  ;;  %v8623_v8 = vpop.f32.mrf.mxu2  ;;  %v13573_v46 = vld [vmem:[%s13845_s25 + $0x1810] sm:$0xff] }
 0x304   : > { %8862 = vmatpush.bf16.msrb.mxu1 %v13551_v47  ;;  %v8636_v11 = vpop.f32.mrf.mxu3  ;;  %v13581_v47 = vld [vmem:[%s13845_s25 + $0x1850] sm:$0xff] }
 0x305   : > { %8875 = vmatpush.bf16.msrb.mxu2 %v13559_v49  ;;  %v13589_v49 = vld [vmem:[%s13845_s25 + $0x1890] sm:$0xff]  ;;  %v13624_v11 = vld [vmem:[%s13845_s25 + $0x19a8] sm:$0xff] }
 0x306   : > { %8888 = vmatpush.bf16.msrb.mxu3 %v13567_v50  ;;  %v13597_v50 = vld [vmem:[%s13845_s25 + $0x18d0] sm:$0xff] }
 0x307   : > { %8850 = vmatpush.bf16.msrb.mxu0 %v13542_v52  ;;  %v13580_v52 = vld [vmem:[%s13845_s25 + $0x1848] sm:$0xff]  ;;  %v13633_v8 = vld [vmem:[%s13845_s25 + $0x19f0] sm:$0xff] }
 0x308   : > { %8863 = vmatpush.bf16.msrb.mxu1 %v13550_v53  ;;  %v13588_v53 = vld [vmem:[%s13845_s25 + $0x1888] sm:$0xff] }
 0x309   : > { %8876 = vmatpush.bf16.msrb.mxu2 %v13558_v54  ;;  %v13596_v54 = vld [vmem:[%s13845_s25 + $0x18c8] sm:$0xff] }
 0x30a   : > { %8889 = vmatpush.bf16.msrb.mxu3 %v13566_v55 }
 0x30b   : > { %8851 = vmatpush.bf16.msrb.mxu0 %v13541_v61  ;;  %v13610_v61 = vld [vmem:[%s13845_s25 + $0x1938] sm:$0xff] }
 0x30c   : > { %8864 = vmatpush.bf16.msrb.mxu1 %v13549_v62  ;;  %v13618_v62 = vld [vmem:[%s13845_s25 + $0x1978] sm:$0xff] }
 0x30d   : > { %8877 = vmatpush.bf16.msrb.mxu2 %v13557_v0  ;;  %v13634_v0 = vld [vmem:[%s13845_s25 + $0x19f8] sm:$0xff] }
 0x30e   : > { %8890 = vmatpush.bf16.msrb.mxu3 %v13565_v1  ;;  %v2144_v1 = vld [vmem:[#allocation1] sm:$0xff] }
 0x30f   : > { %8852 = vmatpush.bf16.msrb.mxu0 %v13540_v2  ;;  %v2146_v2 = vld [vmem:[#allocation1 + $0x12] sm:$0xff] }
 0x310   : > { %8865 = vmatpush.bf16.msrb.mxu1 %v13548_v3  ;;  %v2145_v3 = vld [vmem:[#allocation1 + $0x9] sm:$0xff] }
 0x311   : > { %8878 = vmatpush.bf16.msrb.mxu2 %v13556_v4  ;;  %v2147_v4 = vld [vmem:[#allocation1 + $0x1b] sm:$0xff] }
 0x312   : > { %8891 = vmatpush.bf16.msrb.mxu3 %v13564_v5  ;;  %v13609_v5 = vld [vmem:[%s13845_s25 + $0x1930] sm:$0xff] }
 0x313   : > { %8853 = vmatpush.bf16.msrb.mxu0 %v13539_v13  ;;  %v8647_v29 = vpop.f32.mrf.mxu0 }
 0x314   : > { %8866 = vmatpush.bf16.msrb.mxu1 %v13547_v14  ;;  %v8648_v30 = vadd.f32 %v8647_v29, %v14643_v60  ;;  %v8660_v33 = vpop.f32.mrf.mxu1  ;;  %v13595_v60 = vld [vmem:[%s13845_s25 + $0x18c0] sm:$0xff] }
 0x315   : > { %8879 = vmatpush.bf16.msrb.mxu2 %v13555_v15  ;;  %v13607_v15 = vld [vmem:[%s13845_s25 + $0x1920] sm:$0xff] }
 0x316   : > { %8892 = vmatpush.bf16.msrb.mxu3 %v13563_v16  ;;  %8854 = vmatmul.bf16.vlgmr.msrb.gmra.mxu0 %v2138_v6  ;;  %v8661_v36 = vadd.f32 %v8660_v33, %v8648_v30  ;;  %v13617_v6 = vld [vmem:[%s13845_s25 + $0x1970] sm:$0xff]  ;;  %v13615_v16 = vld [vmem:[%s13845_s25 + $0x1960] sm:$0xff] }
 0x317   : > { %8898 = vmatpush.bf16.msra.mxu0 %v13578_v17  ;;  %8867 = vmatmul.bf16.vlgmr.msrb.gmra.mxu1 %v2139_v9  ;;  %v13608_v9 = vld [vmem:[%s13845_s25 + $0x1928] sm:$0xff]  ;;  %v13605_v30 = vld [vmem:[%s13845_s25 + $0x1910] sm:$0xff] }
 0x318   : > { %8911 = vmatpush.bf16.msra.mxu1 %v13586_v18  ;;  %8880 = vmatmul.bf16.vlgmr.msrb.gmra.mxu2 %v2140_v7  ;;  %v13625_v7 = vld [vmem:[%s13845_s25 + $0x19b0] sm:$0xff]  ;;  %v13623_v18 = vld [vmem:[%s13845_s25 + $0x19a0] sm:$0xff] }
 0x319   : > { %8924 = vmatpush.bf16.msra.mxu2 %v13594_v19  ;;  %8893 = vmatmul.bf16.vlgmr.msrb.gmra.mxu3 %v2141_v10  ;;  %v13616_v10 = vld [vmem:[%s13845_s25 + $0x1968] sm:$0xff]  ;;  %v13631_v19 = vld [vmem:[%s13845_s25 + $0x19e0] sm:$0xff]  ;;  %v13621_v33 = vld [vmem:[%s13845_s25 + $0x1990] sm:$0xff] }
 0x31a   : > { %8937 = vmatpush.bf16.msra.mxu3 %v13602_v20 }
 0x31b   : > { %8899 = vmatpush.bf16.msra.mxu0 %v13577_v21  ;;  %v8673_v41 = vpop.f32.mrf.mxu2  ;;  %v8649_v44 = vpop.f32.mrf.mxu0  ;;  %v13606_v21 = vld [vmem:[%s13845_s25 + $0x1918] sm:$0xff] }
 0x31c   : > { %8912 = vmatpush.bf16.msra.mxu1 %v13585_v22  ;;  %v8674_v42 = vadd.f32 %v8673_v41, %v8661_v36  ;;  %v8686_v43 = vpop.f32.mrf.mxu3  ;;  %v8662_v48 = vpop.f32.mrf.mxu1  ;;  %v13614_v22 = vld [vmem:[%s13845_s25 + $0x1958] sm:$0xff]  ;;  %v13612_v36 = vld [vmem:[%s13845_s25 + $0x1948] sm:$0xff] }
 0x31d   : > { %8925 = vmatpush.bf16.msra.mxu2 %v13593_v23  ;;  %v13622_v23 = vld [vmem:[%s13845_s25 + $0x1998] sm:$0xff]  ;;  %v13619_v48 = vld [vmem:[%s13845_s25 + $0x1980] sm:$0xff] }
 0x31e   : > { %8938 = vmatpush.bf16.msra.mxu3 %v13601_v24  ;;  %v8687_v45 = vadd.f32 %v8686_v43, %v8674_v42  ;;  %v13630_v24 = vld [vmem:[%s13845_s25 + $0x19d8] sm:$0xff]  ;;  %v2149_v42 = vld [vmem:[#allocation1 + $0x2d] sm:$0xff] }
 0x31f   : > { %8900 = vmatpush.bf16.msra.mxu0 %v13576_v25  ;;  %v2151_v43 = vld [vmem:[#allocation1 + $0x3f] sm:$0xff] }
 0x320   : > { %8913 = vmatpush.bf16.msra.mxu1 %v13584_v26 }
 0x321   : > { %8926 = vmatpush.bf16.msra.mxu2 %v13592_v27 }
 0x322   : > { %8939 = vmatpush.bf16.msra.mxu3 %v13600_v28 }
 0x323   : > { %8901 = vmatpush.bf16.msra.mxu0 %v13575_v31  ;;  %v8675_v55 = vpop.f32.mrf.mxu2  ;;  %v13613_v31 = vld [vmem:[%s13845_s25 + $0x1950] sm:$0xff] }
 0x324   : > { %8914 = vmatpush.bf16.msra.mxu1 %v13583_v32  ;;  %v8688_v56 = vpop.f32.mrf.mxu3  ;;  %v13649_v55 = vld [vmem:[%s13845_s25 + $0x1a70] sm:$0xff] }
 0x325   : > { %8927 = vmatpush.bf16.msra.mxu2 %v13591_v34  ;;  %v13629_v34 = vld [vmem:[%s13845_s25 + $0x19d0] sm:$0xff] }
 0x326   : > { %8940 = vmatpush.bf16.msra.mxu3 %v13599_v35  ;;  %v13604_v35 = vld [vmem:[%s13845_s25 + $0x1908] sm:$0xff]  ;;  %v13657_v56 = vld [vmem:[%s13845_s25 + $0x1ab0] sm:$0xff] }
 0x327   : > { %8902 = vmatpush.bf16.msra.mxu0 %v13574_v37  ;;  %v13620_v37 = vld [vmem:[%s13845_s25 + $0x1988] sm:$0xff] }
 0x328   : > { %8915 = vmatpush.bf16.msra.mxu1 %v13582_v38  ;;  %v13628_v38 = vld [vmem:[%s13845_s25 + $0x19c8] sm:$0xff] }
 0x329   : > { %8928 = vmatpush.bf16.msra.mxu2 %v13590_v39  ;;  %v2148_v39 = vld [vmem:[#allocation1 + $0x24] sm:$0xff] }
 0x32a   : > { %8941 = vmatpush.bf16.msra.mxu3 %v13598_v40  ;;  %v2150_v40 = vld [vmem:[#allocation1 + $0x36] sm:$0xff] }
 0x32b   : > { %8903 = vmatpush.bf16.msra.mxu0 %v13573_v46  ;;  %v13603_v46 = vld [vmem:[%s13845_s25 + $0x1900] sm:$0xff] }
 0x32c   : > { %8916 = vmatpush.bf16.msra.mxu1 %v13581_v47  ;;  %v13611_v47 = vld [vmem:[%s13845_s25 + $0x1940] sm:$0xff] }
 0x32d   : > { %8929 = vmatpush.bf16.msra.mxu2 %v13589_v49  ;;  %v13627_v49 = vld [vmem:[%s13845_s25 + $0x19c0] sm:$0xff] }
 0x32e   : > { %8942 = vmatpush.bf16.msra.mxu3 %v13597_v50  ;;  %v13642_v50 = vld [vmem:[%s13845_s25 + $0x1a38] sm:$0xff] }
 0x32f   : > { %8904 = vmatpush.bf16.msra.mxu0 %v13572_v51  ;;  %v13650_v51 = vld [vmem:[%s13845_s25 + $0x1a78] sm:$0xff] }
 0x330   : > { %8917 = vmatpush.bf16.msra.mxu1 %v13580_v52  ;;  %v13658_v52 = vld [vmem:[%s13845_s25 + $0x1ab8] sm:$0xff] }
 0x331   : > { %8930 = vmatpush.bf16.msra.mxu2 %v13588_v53  ;;  %v13666_v53 = vld [vmem:[%s13845_s25 + $0x1af8] sm:$0xff] }
 0x332   : > { %8943 = vmatpush.bf16.msra.mxu3 %v13596_v54  ;;  %v13641_v54 = vld [vmem:[%s13845_s25 + $0x1a30] sm:$0xff] }
 0x333   : > { %8905 = vmatpush.bf16.msra.mxu0 %v13571_v57  ;;  %v8699_v13 = vpop.f32.mrf.mxu0  ;;  %v13665_v57 = vld [vmem:[%s13845_s25 + $0x1af0] sm:$0xff] }
 0x334   : > { %8918 = vmatpush.bf16.msra.mxu1 %v13579_v58  ;;  %v8700_v14 = vadd.f32 %v8699_v13, %v8687_v45  ;;  %v8712_v17 = vpop.f32.mrf.mxu1  ;;  %v229_v45 = vld [vmem:[%s13840_s21 + $0x68] sm:$0xff] }
 0x335   : > { %8931 = vmatpush.bf16.msra.mxu2 %v13587_v59  ;;  %2153 = vst [vmem:[#allocation1] ss:$9 sm:$0xff] %v229_v45  ;;  %v13640_v58 = vld [vmem:[%s13845_s25 + $0x1a28] sm:$0xff] }
 0x336   : > { %8944 = vmatpush.bf16.msra.mxu3 %v13595_v60  ;;  %8906 = vmatmul.bf16.vlgmr.msra.gmra.mxu0 %v2144_v1  ;;  %v8713_v20 = vadd.f32 %v8712_v17, %v8700_v14  ;;  %v13648_v59 = vld [vmem:[%s13845_s25 + $0x1a68] sm:$0xff]  ;;  %v13647_v1 = vld [vmem:[%s13845_s25 + $0x1a60] sm:$0xff] }
 0x337   : > { %8950 = vmatpush.bf16.msrb.mxu0 %v13610_v61  ;;  %8919 = vmatmul.bf16.vlgmr.msra.gmra.mxu1 %v2145_v3  ;;  %v13656_v60 = vld [vmem:[%s13845_s25 + $0x1aa8] sm:$0xff]  ;;  %v13655_v3 = vld [vmem:[%s13845_s25 + $0x1aa0] sm:$0xff] }
 0x338   : > { %8963 = vmatpush.bf16.msrb.mxu1 %v13618_v62  ;;  %8932 = vmatmul.bf16.vlgmr.msra.gmra.mxu2 %v2146_v2  ;;  %v13664_v61 = vld [vmem:[%s13845_s25 + $0x1ae8] sm:$0xff] }
 0x339   : > { %8976 = vmatpush.bf16.msrb.mxu2 %v13626_v63  ;;  %8945 = vmatmul.bf16.vlgmr.msra.gmra.mxu3 %v2147_v4  ;;  %v13663_v4 = vld [vmem:[%s13845_s25 + $0x1ae0] sm:$0xff]  ;;  %v13696_v45 = vld [vmem:[%s13845_s25 + $0x1be8] sm:$0xff] }
 0x33a   : > { %8989 = vmatpush.bf16.msrb.mxu3 %v13634_v0  ;;  %v13639_v0 = vld [vmem:[%s13845_s25 + $0x1a20] sm:$0xff] }
 0x33b   : > { %8951 = vmatpush.bf16.msrb.mxu0 %v13609_v5  ;;  %v8725_v25 = vpop.f32.mrf.mxu2  ;;  %v8701_v28 = vpop.f32.mrf.mxu0 }
 0x33c   : > { %8964 = vmatpush.bf16.msrb.mxu1 %v13617_v6  ;;  %v8726_v26 = vadd.f32 %v8725_v25, %v8713_v20  ;;  %v8738_v27 = vpop.f32.mrf.mxu3  ;;  %v8714_v32 = vpop.f32.mrf.mxu1  ;;  %v13638_v6 = vld [vmem:[%s13845_s25 + $0x1a18] sm:$0xff]  ;;  %v13636_v20 = vld [vmem:[%s13845_s25 + $0x1a08] sm:$0xff]  ;;  %v13651_v28 = vld [vmem:[%s13845_s25 + $0x1a80] sm:$0xff] }
 0x33d   : > { %8977 = vmatpush.bf16.msrb.mxu2 %v13625_v7  ;;  %v13646_v7 = vld [vmem:[%s13845_s25 + $0x1a58] sm:$0xff] }
 0x33e   : > { %8990 = vmatpush.bf16.msrb.mxu3 %v13633_v8  ;;  %v14711_v29 = vadd.f32 %v8738_v27, %v8726_v26  ;;  %v13654_v8 = vld [vmem:[%s13845_s25 + $0x1a98] sm:$0xff]  ;;  %v13635_v26 = vld [vmem:[%s13845_s25 + $0x1a00] sm:$0xff] }
 0x33f   : > { %8952 = vmatpush.bf16.msrb.mxu0 %v13608_v9  ;;  %v13662_v9 = vld [vmem:[%s13845_s25 + $0x1ad8] sm:$0xff]  ;;  %v13643_v27 = vld [vmem:[%s13845_s25 + $0x1a40] sm:$0xff] }
 0x340   : > { %8965 = vmatpush.bf16.msrb.mxu1 %v13616_v10  ;;  %v13690_v32 = vld [vmem:[%s13845_s25 + $0x1bb8] sm:$0xff] }
 0x341   : > { %8978 = vmatpush.bf16.msrb.mxu2 %v13624_v11 }
 0x342   : > { %8991 = vmatpush.bf16.msrb.mxu3 %v13632_v12 }
 0x343   : > { %8953 = vmatpush.bf16.msrb.mxu0 %v13607_v15  ;;  %v8727_v41 = vpop.f32.mrf.mxu2  ;;  %v13637_v15 = vld [vmem:[%s13845_s25 + $0x1a10] sm:$0xff] }
 0x344   : > { %8966 = vmatpush.bf16.msrb.mxu1 %v13615_v16  ;;  %v8740_v44 = vpop.f32.mrf.mxu3  ;;  %v13645_v16 = vld [vmem:[%s13845_s25 + $0x1a50] sm:$0xff] }
 0x345   : > { %8979 = vmatpush.bf16.msrb.mxu2 %v13623_v18  ;;  %v13653_v18 = vld [vmem:[%s13845_s25 + $0x1a90] sm:$0xff]  ;;  %v13688_v44 = vld [vmem:[%s13845_s25 + $0x1ba8] sm:$0xff] }
 0x346   : > { %8992 = vmatpush.bf16.msrb.mxu3 %v13631_v19  ;;  %v13661_v19 = vld [vmem:[%s13845_s25 + $0x1ad0] sm:$0xff] }
 0x347   : > { %8954 = vmatpush.bf16.msrb.mxu0 %v13606_v21  ;;  %v13644_v21 = vld [vmem:[%s13845_s25 + $0x1a48] sm:$0xff]  ;;  %v13697_v41 = vld [vmem:[%s13845_s25 + $0x1bf0] sm:$0xff] }
 0x348   : > { %8967 = vmatpush.bf16.msrb.mxu1 %v13614_v22  ;;  %v13652_v22 = vld [vmem:[%s13845_s25 + $0x1a88] sm:$0xff] }
 0x349   : > { %8980 = vmatpush.bf16.msrb.mxu2 %v13622_v23  ;;  %v13660_v23 = vld [vmem:[%s13845_s25 + $0x1ac8] sm:$0xff] }
 0x34a   : > { %8993 = vmatpush.bf16.msrb.mxu3 %v13630_v24 }
 0x34b   : > { %8955 = vmatpush.bf16.msrb.mxu0 %v13605_v30  ;;  %v13674_v30 = vld [vmem:[%s13845_s25 + $0x1b38] sm:$0xff] }
 0x34c   : > { %8968 = vmatpush.bf16.msrb.mxu1 %v13613_v31  ;;  %v13682_v31 = vld [vmem:[%s13845_s25 + $0x1b78] sm:$0xff] }
 0x34d   : > { %8981 = vmatpush.bf16.msrb.mxu2 %v13621_v33  ;;  %v13698_v33 = vld [vmem:[%s13845_s25 + $0x1bf8] sm:$0xff] }
 0x34e   : > { %8994 = vmatpush.bf16.msrb.mxu3 %v13629_v34  ;;  %v2154_v34 = vld [vmem:[#allocation1] sm:$0xff] }
 0x34f   : > { %8956 = vmatpush.bf16.msrb.mxu0 %v13604_v35  ;;  %v2156_v35 = vld [vmem:[#allocation1 + $0x12] sm:$0xff] }
 0x350   : > { %8969 = vmatpush.bf16.msrb.mxu1 %v13612_v36  ;;  %v2155_v36 = vld [vmem:[#allocation1 + $0x9] sm:$0xff] }
 0x351   : > { %8982 = vmatpush.bf16.msrb.mxu2 %v13620_v37  ;;  %v2157_v37 = vld [vmem:[#allocation1 + $0x1b] sm:$0xff] }
 0x352   : > { %8995 = vmatpush.bf16.msrb.mxu3 %v13628_v38  ;;  %v13673_v38 = vld [vmem:[%s13845_s25 + $0x1b30] sm:$0xff] }
 0x353   : > { %8957 = vmatpush.bf16.msrb.mxu0 %v13603_v46  ;;  %v8751_v62 = vpop.f32.mrf.mxu0 }
 0x354   : > { %8970 = vmatpush.bf16.msrb.mxu1 %v13611_v47  ;;  %v8752_v63 = vadd.f32 %v8751_v62, %v14711_v29  ;;  %v8764_v2 = vpop.f32.mrf.mxu1  ;;  %v13659_v29 = vld [vmem:[%s13845_s25 + $0x1ac0] sm:$0xff] }
 0x355   : > { %8983 = vmatpush.bf16.msrb.mxu2 %v13619_v48  ;;  %v13671_v48 = vld [vmem:[%s13845_s25 + $0x1b20] sm:$0xff] }
 0x356   : > { %8996 = vmatpush.bf16.msrb.mxu3 %v13627_v49  ;;  %8958 = vmatmul.bf16.vlgmr.msrb.gmra.mxu0 %v2148_v39  ;;  %v8765_v5 = vadd.f32 %v8764_v2, %v8752_v63  ;;  %v13681_v39 = vld [vmem:[%s13845_s25 + $0x1b70] sm:$0xff]  ;;  %v13679_v49 = vld [vmem:[%s13845_s25 + $0x1b60] sm:$0xff] }
 0x357   : > { %9002 = vmatpush.bf16.msra.mxu0 %v13642_v50  ;;  %8971 = vmatmul.bf16.vlgmr.msrb.gmra.mxu1 %v2149_v42  ;;  %v13672_v42 = vld [vmem:[%s13845_s25 + $0x1b28] sm:$0xff]  ;;  %v13669_v63 = vld [vmem:[%s13845_s25 + $0x1b10] sm:$0xff] }
 0x358   : > { %9015 = vmatpush.bf16.msra.mxu1 %v13650_v51  ;;  %8984 = vmatmul.bf16.vlgmr.msrb.gmra.mxu2 %v2150_v40  ;;  %v13689_v40 = vld [vmem:[%s13845_s25 + $0x1bb0] sm:$0xff]  ;;  %v13687_v51 = vld [vmem:[%s13845_s25 + $0x1ba0] sm:$0xff] }
 0x359   : > { %9028 = vmatpush.bf16.msra.mxu2 %v13658_v52  ;;  %8997 = vmatmul.bf16.vlgmr.msrb.gmra.mxu3 %v2151_v43  ;;  %v13680_v43 = vld [vmem:[%s13845_s25 + $0x1b68] sm:$0xff]  ;;  %v13695_v52 = vld [vmem:[%s13845_s25 + $0x1be0] sm:$0xff]  ;;  %v13685_v2 = vld [vmem:[%s13845_s25 + $0x1b90] sm:$0xff] }
 0x35a   : > { %9041 = vmatpush.bf16.msra.mxu3 %v13666_v53 }
 0x35b   : > { %9003 = vmatpush.bf16.msra.mxu0 %v13641_v54  ;;  %v8777_v10 = vpop.f32.mrf.mxu2  ;;  %v8753_v13 = vpop.f32.mrf.mxu0  ;;  %v13670_v54 = vld [vmem:[%s13845_s25 + $0x1b18] sm:$0xff] }
 0x35c   : > { %9016 = vmatpush.bf16.msra.mxu1 %v13649_v55  ;;  %v8778_v11 = vadd.f32 %v8777_v10, %v8765_v5  ;;  %v8790_v12 = vpop.f32.mrf.mxu3  ;;  %v8766_v17 = vpop.f32.mrf.mxu1  ;;  %v13678_v55 = vld [vmem:[%s13845_s25 + $0x1b58] sm:$0xff]  ;;  %v13676_v5 = vld [vmem:[%s13845_s25 + $0x1b48] sm:$0xff]  ;;  %v13667_v10 = vld [vmem:[%s13845_s25 + $0x1b00] sm:$0xff] }
 0x35d   : > { %9029 = vmatpush.bf16.msra.mxu2 %v13657_v56  ;;  %v13686_v56 = vld [vmem:[%s13845_s25 + $0x1b98] sm:$0xff]  ;;  %v13691_v13 = vld [vmem:[%s13845_s25 + $0x1bc0] sm:$0xff] }
 0x35e   : > { %9042 = vmatpush.bf16.msra.mxu3 %v13665_v57  ;;  %v8791_v14 = vadd.f32 %v8790_v12, %v8778_v11  ;;  %v13694_v57 = vld [vmem:[%s13845_s25 + $0x1bd8] sm:$0xff]  ;;  %v13675_v11 = vld [vmem:[%s13845_s25 + $0x1b40] sm:$0xff] }
 0x35f   : > { %9004 = vmatpush.bf16.msra.mxu0 %v13640_v58  ;;  %v13683_v12 = vld [vmem:[%s13845_s25 + $0x1b80] sm:$0xff] }
 0x360   : > { %9017 = vmatpush.bf16.msra.mxu1 %v13648_v59  ;;  %v2161_v17 = vld [vmem:[#allocation1 + $0x3f] sm:$0xff] }
 0x361   : > { %9030 = vmatpush.bf16.msra.mxu2 %v13656_v60 }
 0x362   : > { %9043 = vmatpush.bf16.msra.mxu3 %v13664_v61 }
 0x363   : > { %9005 = vmatpush.bf16.msra.mxu0 %v13639_v0  ;;  %v8779_v24 = vpop.f32.mrf.mxu2  ;;  %v13677_v0 = vld [vmem:[%s13845_s25 + $0x1b50] sm:$0xff] }
 0x364   : > { %9018 = vmatpush.bf16.msra.mxu1 %v13647_v1  ;;  %v8792_v25 = vpop.f32.mrf.mxu3 }
 0x365   : > { %9031 = vmatpush.bf16.msra.mxu2 %v13655_v3  ;;  %v13693_v3 = vld [vmem:[%s13845_s25 + $0x1bd0] sm:$0xff] }
 0x366   : > { %9044 = vmatpush.bf16.msra.mxu3 %v13663_v4  ;;  %v13668_v4 = vld [vmem:[%s13845_s25 + $0x1b08] sm:$0xff] }
 0x367   : > { %9006 = vmatpush.bf16.msra.mxu0 %v13638_v6  ;;  %v13684_v6 = vld [vmem:[%s13845_s25 + $0x1b88] sm:$0xff] }
 0x368   : > { %9019 = vmatpush.bf16.msra.mxu1 %v13646_v7  ;;  %v13692_v7 = vld [vmem:[%s13845_s25 + $0x1bc8] sm:$0xff] }
 0x369   : > { %9032 = vmatpush.bf16.msra.mxu2 %v13654_v8 }
 0x36a   : > { %9045 = vmatpush.bf16.msra.mxu3 %v13662_v9 }
 0x36b   : > { %9007 = vmatpush.bf16.msra.mxu0 %v13637_v15  ;;  %v2159_v15 = vld [vmem:[#allocation1 + $0x2d] sm:$0xff] }
 0x36c   : > { %9020 = vmatpush.bf16.msra.mxu1 %v13645_v16  ;;  %v2160_v16 = vld [vmem:[#allocation1 + $0x36] sm:$0xff] }
 0x36d   : > { %9033 = vmatpush.bf16.msra.mxu2 %v13653_v18 }
 0x36e   : > { %9046 = vmatpush.bf16.msra.mxu3 %v13661_v19 }
 0x36f   : > { %9008 = vmatpush.bf16.msra.mxu0 %v13636_v20 }
 0x370   : > { %9021 = vmatpush.bf16.msra.mxu1 %v13644_v21 }
 0x371   : > { %9034 = vmatpush.bf16.msra.mxu2 %v13652_v22 }
 0x372   : > { %9047 = vmatpush.bf16.msra.mxu3 %v13660_v23 }
 0x373   : > { %9009 = vmatpush.bf16.msra.mxu0 %v13635_v26  ;;  %v8803_v46 = vpop.f32.mrf.mxu0 }
 0x374   : > { %9022 = vmatpush.bf16.msra.mxu1 %v13643_v27  ;;  %v8804_v47 = vadd.f32 %v8803_v46, %v8791_v14  ;;  %v8816_v50 = vpop.f32.mrf.mxu1  ;;  %v2158_v14 = vld [vmem:[#allocation1 + $0x24] sm:$0xff] }
 0x375   : > { %9035 = vmatpush.bf16.msra.mxu2 %v13651_v28 }
 0x376   : > { %9048 = vmatpush.bf16.msra.mxu3 %v13659_v29  ;;  %9010 = vmatmul.bf16.vlgmr.msra.gmra.mxu0 %v2154_v34  ;;  %v8817_v53 = vadd.f32 %v8816_v50, %v8804_v47 }
 0x377   : > { %9054 = vmatpush.bf16.msrb.mxu0 %v13674_v30  ;;  %9023 = vmatmul.bf16.vlgmr.msra.gmra.mxu1 %v2155_v36 }
 0x378   : > { %9067 = vmatpush.bf16.msrb.mxu1 %v13682_v31  ;;  %9036 = vmatmul.bf16.vlgmr.msra.gmra.mxu2 %v2156_v35 }
 0x379   : > { %9080 = vmatpush.bf16.msrb.mxu2 %v13690_v32  ;;  %9049 = vmatmul.bf16.vlgmr.msra.gmra.mxu3 %v2157_v37 }
 0x37a   : > { %9093 = vmatpush.bf16.msrb.mxu3 %v13698_v33 }
 0x37b   : > { %9055 = vmatpush.bf16.msrb.mxu0 %v13673_v38  ;;  %v8829_v58 = vpop.f32.mrf.mxu2  ;;  %v8805_v61 = vpop.f32.mrf.mxu0 }
 0x37c   : > { %9068 = vmatpush.bf16.msrb.mxu1 %v13681_v39  ;;  %v8830_v59 = vadd.f32 %v8829_v58, %v8817_v53  ;;  %v8842_v60 = vpop.f32.mrf.mxu3  ;;  %v8818_v1 = vpop.f32.mrf.mxu1 }
 0x37d   : > { %9081 = vmatpush.bf16.msrb.mxu2 %v13689_v40 }
 0x37e   : > { %9094 = vmatpush.bf16.msrb.mxu3 %v13697_v41  ;;  %v8843_v62 = vadd.f32 %v8842_v60, %v8830_v59 }
 0x37f   : > { %9056 = vmatpush.bf16.msrb.mxu0 %v13672_v42 }
 0x380   : > { %9069 = vmatpush.bf16.msrb.mxu1 %v13680_v43 }
 0x381   : > { %9082 = vmatpush.bf16.msrb.mxu2 %v13688_v44 }
 0x382   : > { %9095 = vmatpush.bf16.msrb.mxu3 %v13696_v45 }
 0x383   : > { %9057 = vmatpush.bf16.msrb.mxu0 %v13671_v48  ;;  %v8831_v8 = vpop.f32.mrf.mxu2 }
 0x384   : > { %9070 = vmatpush.bf16.msrb.mxu1 %v13679_v49  ;;  %v8844_v9 = vpop.f32.mrf.mxu3 }
 0x385   : > { %9083 = vmatpush.bf16.msrb.mxu2 %v13687_v51 }
 0x386   : > { %9096 = vmatpush.bf16.msrb.mxu3 %v13695_v52 }
 0x387   : > { %9058 = vmatpush.bf16.msrb.mxu0 %v13670_v54 }
 0x388   : > { %9071 = vmatpush.bf16.msrb.mxu1 %v13678_v55 }
 0x389   : > { %9084 = vmatpush.bf16.msrb.mxu2 %v13686_v56 }
 0x38a   : > { %9097 = vmatpush.bf16.msrb.mxu3 %v13694_v57 }
 0x38b   : > { %9059 = vmatpush.bf16.msrb.mxu0 %v13669_v63 }
 0x38c   : > { %9072 = vmatpush.bf16.msrb.mxu1 %v13677_v0 }
 0x38d   : > { %9085 = vmatpush.bf16.msrb.mxu2 %v13685_v2 }
 0x38e   : > { %9098 = vmatpush.bf16.msrb.mxu3 %v13693_v3 }
 0x38f   : > { %9060 = vmatpush.bf16.msrb.mxu0 %v13668_v4 }
 0x390   : > { %9073 = vmatpush.bf16.msrb.mxu1 %v13676_v5 }
 0x391   : > { %9086 = vmatpush.bf16.msrb.mxu2 %v13684_v6 }
 0x392   : > { %9099 = vmatpush.bf16.msrb.mxu3 %v13692_v7 }
 0x393   : > { %9061 = vmatpush.bf16.msrb.mxu0 %v13667_v10  ;;  %v8855_v18 = vpop.f32.mrf.mxu0 }
 0x394   : > { %9074 = vmatpush.bf16.msrb.mxu1 %v13675_v11  ;;  %v8856_v19 = vadd.f32 %v8855_v18, %v8843_v62  ;;  %v8868_v20 = vpop.f32.mrf.mxu1  ;;  %v215_v11 = vld [vmem:[#allocation2] sm:$0x3] }
 0x395   : > { %9087 = vmatpush.bf16.msrb.mxu2 %v13683_v12 }
 0x396   : > { %9100 = vmatpush.bf16.msrb.mxu3 %v13691_v13  ;;  %9062 = vmatmul.bf16.vlgmr.msrb.gmra.mxu0 %v2158_v14  ;;  %v8869_v21 = vadd.f32 %v8868_v20, %v8856_v19 }
 0x397   : > { %9075 = vmatmul.bf16.vlgmr.msrb.gmra.mxu1 %v2159_v15 }
 0x398   : > { %9088 = vmatmul.bf16.vlgmr.msrb.gmra.mxu2 %v2160_v16 }
 0x399   : > { %9101 = vmatmul.bf16.vlgmr.msrb.gmra.mxu3 %v2161_v17 }
 0x39b   : > { %v8881_v22 = vpop.f32.mrf.mxu2  ;;  %v8857_v25 = vpop.f32.mrf.mxu0 }
 0x39c   : > { %v8882_v23 = vadd.f32 %v8881_v22, %v8869_v21  ;;  %v8894_v24 = vpop.f32.mrf.mxu3  ;;  %v8870_v27 = vpop.f32.mrf.mxu1 }
 0x39e   : > { %v8895_v26 = vadd.f32 %v8894_v24, %v8882_v23 }
 0x3a3   : > { %v8883_v28 = vpop.f32.mrf.mxu2 }
 0x3a4   : > { %v8896_v29 = vpop.f32.mrf.mxu3 }
 0x3b3   : > { %v8907_v30 = vpop.f32.mrf.mxu0 }
 0x3b4   : > { %v8908_v31 = vadd.f32 %v8907_v30, %v8895_v26  ;;  %v8920_v32 = vpop.f32.mrf.mxu1 }
 0x3b6   : > { %v8921_v33 = vadd.f32 %v8920_v32, %v8908_v31 }
 0x3bb   : > { %v8933_v34 = vpop.f32.mrf.mxu2  ;;  %v8909_v37 = vpop.f32.mrf.mxu0 }
 0x3bc   : > { %v8934_v35 = vadd.f32 %v8933_v34, %v8921_v33  ;;  %v8946_v36 = vpop.f32.mrf.mxu3  ;;  %v8922_v39 = vpop.f32.mrf.mxu1 }
 0x3be   : > { %v8947_v38 = vadd.f32 %v8946_v36, %v8934_v35 }
 0x3c3   : > { %v8935_v40 = vpop.f32.mrf.mxu2 }
 0x3c4   : > { %v8948_v41 = vpop.f32.mrf.mxu3 }
 0x3d3   : > { %v8959_v42 = vpop.f32.mrf.mxu0 }
 0x3d4   : > { %v8972_v43 = vpop.f32.mrf.mxu1  ;;  %v8960_v53 = vadd.f32 %v8959_v42, %v8947_v38 }
 0x3d6   : > { %v8973_v57 = vadd.f32 %v8972_v43, %v8960_v53 }
 0x3db   : > { %v8985_v44 = vpop.f32.mrf.mxu2  ;;  %v8961_v46 = vpop.f32.mrf.mxu0 }
 0x3dc   : > { %v8998_v45 = vpop.f32.mrf.mxu3  ;;  %v8974_v47 = vpop.f32.mrf.mxu1  ;;  %v8986_v58 = vadd.f32 %v8985_v44, %v8973_v57 }
 0x3de   : > { %v8999_v61 = vadd.f32 %v8998_v45, %v8986_v58 }
 0x3e3   : > { %v8987_v48 = vpop.f32.mrf.mxu2 }
 0x3e4   : > { %v9000_v49 = vpop.f32.mrf.mxu3 }
 0x3f3   : > { %v9011_v50 = vpop.f32.mrf.mxu0 }
 0x3f4   : > { %v9024_v51 = vpop.f32.mrf.mxu1  ;;  %v9012_v62 = vadd.f32 %v9011_v50, %v8999_v61 }
 0x3f6   : > { %v9025_v63 = vadd.f32 %v9024_v51, %v9012_v62 }
 0x3fb   : > { %v9037_v52 = vpop.f32.mrf.mxu2  ;;  %v9013_v55 = vpop.f32.mrf.mxu0 }
 0x3fc   : > { %v9050_v54 = vpop.f32.mrf.mxu3  ;;  %v9026_v56 = vpop.f32.mrf.mxu1  ;;  %v9038_v0 = vadd.f32 %v9037_v52, %v9025_v63 }
 0x3fe   : > { %v9051_v1 = vadd.f32 %v9050_v54, %v9038_v0 }
 0x403   : > { %v9039_v59 = vpop.f32.mrf.mxu2 }
 0x404   : > { %v9052_v60 = vpop.f32.mrf.mxu3 }
 0x413   : > { %v9063_v2 = vpop.f32.mrf.mxu0 }
 0x414   : > { %v9076_v3 = vpop.f32.mrf.mxu1  ;;  %v9064_v4 = vadd.f32 %v9063_v2, %v9051_v1 }
 0x416   : > { %v9077_v5 = vadd.f32 %v9076_v3, %v9064_v4 }
 0x41b   : > { %v9089_v6 = vpop.f32.mrf.mxu2  ;;  %v9065_v9 = vpop.f32.mrf.mxu0 }
 0x41c   : > { %v9102_v7 = vpop.f32.mrf.mxu3  ;;  %v9090_v8 = vadd.f32 %v9089_v6, %v9077_v5  ;;  %v9078_v10 = vpop.f32.mrf.mxu1 }
 0x41e   : > { %v9103_v12 = vadd.f32 %v9102_v7, %v9090_v8 }
 0x420   : > { %v9106_v13 = vadd.f32 %v9103_v12, %v215_v11  ;;  %9112 = sbr.rel (%p12798_p7) target bundleno = 1325 (0x52d), region = 40 }
 0x422   : > { %9108 = vst.msk [vmem:[#allocation2] sm:$0x3] %vm9107_vm1, %v9106_v13 }
 0x423   : > { %v9091_v14 = vpop.f32.mrf.mxu2 }
 0x424   : > { %v9104_v15 = vpop.f32.mrf.mxu3 }
 0x425   : > { %v13731_v17 = vld [vmem:[%s14815_s2] ss:$0 sm:$0xff] }
 0x429   : > { %v9113_v16 = vld [vmem:[#allocation2] sm:$0x3] }
 0x42a   : > { %v9118_v18 = vadd.f32 %v13731_v17, %v9113_v16 }
 0x42c   : > { %v9119_v19 = vsel %vm9107_vm1, %v9118_v18, -inf }
 0x42d   : > { %9120 = vmax.xlane.f32.xlu0 %v9119_v19 }
 0x4a0   : > { %v9121_v20 = vpop.xlane.xlu0 %9120 }
 0x4a1   : > { %v9122_v21 = vsub.f32 %v9118_v18, %v9121_v20 }
 0x4a3   : > { %v9123_v22 = vmul.f32 1.442695, %v9122_v21 }
 0x4a5   : > { %13732 = vpow2.f32 %v9123_v22 }
 0x4ab   : > { %v13733_v23 = vpop.eup %13732 }
 0x4ac   : > { %v9125_v24 = vsel %vm9107_vm1, %v13733_v23, 0.0 }
 0x4ad   : > { %9126 = vadd.xlane.f32.xlu0 %v9125_v24 }
 0x520   : > { %v9127_v25 = vpop.xlane.xlu0 %9126 }
 0x521   : > { %13734 = vlog2.f32 %v9127_v25 }
 0x527   : > { %v13735_v26 = vpop.eup %13734 }
 0x528   : > { %v9129_v27 = vmul.f32 0.6931472, %v13735_v26 }
 0x52a   : > { %v9130_v28 = vsub.f32 %v9122_v21, %v9129_v27 }
 0x52c   : > { %9131 = vst.msk [vmem:[#allocation2] sm:$0x3] %vm9107_vm1, %v9130_v28 }
 0x52d PF: > { %p13703_p8 = scmp.eq.s32.totalorder %s9208_s15, 6  ;;  %s9142_s30 = sshll.u32 %s14816_s3, 4  ;;  %s9143_s30 = int_to_ptr.hbm [resolvable:$true] %s9142_s30 }
 0x52e   : > { %s13793_s4 = smov [#allocation2]  }
 0x52f   : > { %s9140_s5 = sshll.u32 %s13793_s4, 4  ;;  %s9141_s5 = int_to_ptr.vmem [resolvable:$true] %s9140_s5 }
 0x530   : > { %13700 = dma.vmem_to_hbm [thread:$0]  (%p13703_p8), %s9141_s5, 32, %s9143_s30, [#allocation3]  }
 0x531   : > { %13777 = dma.done.wait (%p13703_p8), [#allocation3], 32  }
 0x532   : > { %13779 = vsyncadd (%p13703_p8), [#allocation3], 4294967264 }
 0x533 PF: > { %s14_s14 = sadd.s32 1, %s13790_s14   ;;  %s14817_s12 = smov %s13786_s13 }
 0x534   : > { %p11_p9 = scmp.ge.s32.totalorder %s14_s14, 9   ;;  %s14818_s13 = smov %s14820_s16 }
 0x536   :  { %13 = sbr.rel (!%p11_p9) target bundleno = 2 (0x2), region = 71 }
 0x53b   :  { %9156 = vsyncpa [#allocation3], 1 }
 0x53c   :  { %9158 = vsyncpa [#allocation3 + $0x1], 1 }

</bundles_post_ra>
